<compile_context>
chip_gen: v6e
topology: v6e:2x2x1
jax: 0.10.0
libtpu: 0.0.40
codegen_flags: <defaults>
</compile_context>

<pallas_src>
import jax
import jax.numpy as jnp
from jax.experimental import pallas as pl
from jax.experimental.pallas import tpu as pltpu


def _round_up(v, m):
    return ((v + m - 1) // m) * m


def up_conv_kernel(xm_ref, xh_ref, w_ref, shift_ref, out_ref, patch_ref):
    # xm_ref    : (1, tile_h, W+2, Cin)       main rows of the zero-padded 1x input
    # xh_ref    : (1, 1, 2, W+2, Cin)         the 2 halo rows just below the main block
    # w_ref     : (9*Cin, 4*Cout_pad)         folded (tap x phase) weights, BN scale baked in
    # shift_ref : (1, 4*Cout_pad)             conv bias + BN shift (f32)
    # out_ref   : (1, tile_h*W, 4*Cout_pad)   phases-in-lanes output tile
    # patch_ref : (tile_h*W, 9*Cin)           im2col patch scratch (compute dtype)
    th = xm_ref.shape[1]
    wd = xm_ref.shape[2] - 2
    cin = xm_ref.shape[3]

    # im2col over the 9 unique original-resolution taps.  Output pixel (r, c),
    # tap (dy, dx) reads padded input row r+dy, col c+dx; window rows >= tile_h
    # come from the halo ref (they belong to the next tile's main block).
    for dy in range(3):
        for dx in range(3):
            k = dy * 3 + dx
            n_main = max(th - dy, 0)           # window rows dy .. th-1 from main
            if n_main > 0:
                patch_ref[0:n_main * wd, k * cin:(k + 1) * cin] = (
                    xm_ref[0, dy:dy + n_main, dx:dx + wd, :]
                    .reshape(n_main * wd, cin).astype(patch_ref.dtype))
            h0 = max(dy - th, 0)               # halo-local start row
            if dy - h0 > 0:                    # window rows th .. th+dy-1 from halo
                patch_ref[n_main * wd:th * wd, k * cin:(k + 1) * cin] = (
                    xh_ref[0, 0, h0:dy, dx:dx + wd, :]
                    .reshape((dy - h0) * wd, cin).astype(patch_ref.dtype))

    # One MXU launch for all 4 subpixel phases: (M, 9*Cin) @ (9*Cin, 4*Cout_pad).
    acc = jnp.dot(patch_ref[...], w_ref[...], preferred_element_type=jnp.float32)
    # Epilogue (f32): folded conv-bias/BN shift + ReLU.  Scale already in w_ref.
    out_ref[0] = jnp.maximum(acc + shift_ref[...], 0.0).astype(out_ref.dtype)


def up_conv_forward(x_nchw, w, b, gamma, beta, rmean, rvar, eps=1e-5,
                    target_m=1024, compute_dtype=jnp.bfloat16):
    """x_nchw: (N, Cin, H, W). w: (Cout, Cin, 3, 3). Returns (N, Cout, 2H, 2W)."""
    n, cin, h, wd = x_nchw.shape
    cout = w.shape[0]
    cout_pad = _round_up(cout, 32)     # 4*cout_pad is a multiple of 128 -> lane-dense stores

    # Row-tile size: aim for M = tile_h*W around target_m matmul rows (amortizes
    # per-grid-step overhead and feeds the MXU a deep M), capped at H.
    tile_h = max(1, min(h, max(1, target_m // wd)))
    if tile_h < h:
        while (tile_h * wd) % 8 != 0 and tile_h < h:   # out-block sublane alignment
            tile_h += 1
    if tile_h >= h:
        tile_h = h
    n_tiles = -(-h // tile_h)
    h_t = n_tiles * tile_h

    # One zero-pad of the ORIGINAL-resolution tensor: 1-px spatial halo plus
    # bottom rows to fill the last row tile.  (The x2 upsample and the conv pad
    # of the 4x-sized tensor are fused into the kernel; no 4x intermediates.)
    # Cast to the compute dtype here (halves input HBM traffic); the real Cin
    # is kept - no channel zero-padding in HBM.
    x_nhwc = jnp.transpose(x_nchw, (0, 2, 3, 1)).astype(compute_dtype)
    xp = jnp.pad(x_nhwc, ((0, 0), (1, 1 + h_t - h), (1, 1), (0, 0)))  # (N, h_t+2, W+2, Cin)
    x_main = xp[:, :h_t]                                              # (N, h_t, W+2, Cin)
    # Per-tile bottom-halo rows (the two rows following each main block); tiny.
    x_halo = jnp.stack([xp[:, (t + 1) * tile_h:(t + 1) * tile_h + 2]
                        for t in range(n_tiles)], axis=1)             # (N, n_tiles, 2, W+2, Cin)

    # 3x3 conv over nearest-x2-upsampled pad-1 image == 4 subpixel phases, each
    # linear in the 9 original-resolution taps dy,dx in {0,1,2} of the 1-px
    # padded input.  B[py, dy, u] = contribution of conv-kernel row u to tap dy
    # for phase py (derived from the nearest-upsample index map).
    w_hwio = jnp.transpose(w, (2, 3, 1, 0)).astype(jnp.float32)        # (u, v, ci, co)
    B = jnp.array([[[1., 0., 0.], [0., 1., 1.], [0., 0., 0.]],
                   [[0., 0., 0.], [1., 1., 0.], [0., 0., 1.]]], jnp.float32)
    w9 = jnp.einsum('pdu,qev,uvio->deipqo', B, B, w_hwio)              # (dy,dx,ci,py,px,co)

    # Fold the BN scale into the weights and the conv bias into the BN shift:
    #   relu(((conv + b) - mean) * s + beta) == relu(conv*s + ((b - mean)*s + beta))
    scale = gamma / jnp.sqrt(rvar + eps)
    shift = (b - rmean) * scale + beta
    w9 = w9 * scale[None, None, None, None, None, :]
    w9 = jnp.pad(w9, ((0, 0),) * 5 + ((0, cout_pad - cout),))
    w_big = w9.reshape(9 * cin, 4 * cout_pad).astype(compute_dtype)    # K x (phase*Cout_pad)
    shift_big = jnp.tile(jnp.pad(shift, (0, cout_pad - cout)), 4)
    shift_big = shift_big.reshape(1, 4 * cout_pad).astype(jnp.float32)

    out_k = pl.pallas_call(
        up_conv_kernel,
        out_shape=jax.ShapeDtypeStruct((n, h_t * wd, 4 * cout_pad), jnp.float32),
        grid=(n, n_tiles),
        in_specs=[
            pl.BlockSpec((1, tile_h, wd + 2, cin), lambda i, t: (i, t, 0, 0)),     # main rows
            pl.BlockSpec((1, 1, 2, wd + 2, cin), lambda i, t: (i, t, 0, 0, 0)),    # halo rows
            pl.BlockSpec((9 * cin, 4 * cout_pad), lambda i, t: (0, 0)),            # weights
            pl.BlockSpec((1, 4 * cout_pad), lambda i, t: (0, 0)),                  # shift
        ],
        out_specs=pl.BlockSpec((1, tile_h * wd, 4 * cout_pad), lambda i, t: (i, t, 0)),
        scratch_shapes=[pltpu.VMEM((tile_h * wd, 9 * cin), compute_dtype)],        # im2col patch
        compiler_params=pltpu.CompilerParams(
            # Both axes are independent (no carried accumulator) -> megacore-split.
            # No vmem_limit_bytes: blocks are small; compiler default has headroom
            # on v5e/v6e/v7x alike.
            dimension_semantics=("parallel", "parallel")),
    )(x_main, x_halo, w_big, shift_big)

    # (N, H_t*W, 4*Cout_pad) -> (N, Cout, 2H, 2W).  The reshape below is already
    # the NHWC-with-subpixel layout; the single transpose is only for NCHW.
    # TODO(synk): consumers that accept NHWC can skip this transpose entirely.
    y = out_k.reshape(n, h_t, wd, 2, 2, cout_pad)[:, :h, :, :, :, :cout]
    y = jnp.transpose(y, (0, 5, 1, 3, 2, 4)).reshape(n, cout, 2 * h, 2 * wd)
    return y.astype(x_nchw.dtype)


def up_conv_reference(x, w, b, gamma, beta, rmean, rvar, eps=1e-5):
    x_up = jnp.repeat(jnp.repeat(x, 2, axis=2), 2, axis=3)
    y = jax.lax.conv_general_dilated(
        x_up, w, window_strides=(1, 1), padding=((1, 1), (1, 1)),
        dimension_numbers=("NCHW", "OIHW", "NCHW"))
    y = y + b[None, :, None, None]
    y = (y - rmean[None, :, None, None]) / jnp.sqrt(rvar + eps)[None, :, None, None]
    y = y * gamma[None, :, None, None] + beta[None, :, None, None]
    return jnp.maximum(y, 0.0)


if __name__ == "__main__":
    key = jax.random.PRNGKey(0)
    k1, k2, k3, k4, k5, k6, k7 = jax.random.split(key, 7)

    ch_in, ch_out = 4, 8
    x = jax.random.normal(k1, (2, ch_in, 16, 16), jnp.float32)

    # Deterministic synthetic parameters (shapes from up_conv.__init__)
    w = 0.1 * jax.random.normal(k2, (ch_out, ch_in, 3, 3), jnp.float32)
    b = 0.1 * jax.random.normal(k3, (ch_out,), jnp.float32)
    gamma = 1.0 + 0.1 * jax.random.normal(k4, (ch_out,), jnp.float32)
    beta = 0.1 * jax.random.normal(k5, (ch_out,), jnp.float32)
    rmean = 0.1 * jax.random.normal(k6, (ch_out,), jnp.float32)
    rvar = jax.random.uniform(k7, (ch_out,), jnp.float32, minval=0.5, maxval=1.5)

    out = up_conv_forward(x, w, b, gamma, beta, rmean, rvar)
    jax.block_until_ready(out)

    ref = up_conv_reference(x, w, b, gamma, beta, rmean, rvar)
    assert out.shape == (2, ch_out, 32, 32), out.shape
    err = float(jnp.max(jnp.abs(out - ref)))
    # bf16 patch/weights with f32 accumulation: allow ~bf16-level error.
    assert err < 5e-2, err

    print("KERNEL_OK")
</pallas_src>

<mosaic_0001>
module attributes {stable_mosaic.version = 11 : i64} {
  func.func @up_conv_kernel(%arg0: i32, %arg1: i32, %arg2: memref<1x16x18x4xbf16, #tpu.memory_space<vmem>>, %arg3: memref<1x1x2x18x4xbf16, #tpu.memory_space<vmem>>, %arg4: memref<36x128xbf16, #tpu.memory_space<vmem>>, %arg5: memref<1x128xf32, #tpu.memory_space<vmem>>, %arg6: memref<1x256x128xf32, #tpu.memory_space<vmem>>, %arg7: memref<256x36xbf16, #tpu.memory_space<vmem>>) attributes {dimension_semantics = [#tpu.dimension_semantics<parallel>, #tpu.dimension_semantics<parallel>], iteration_bounds = array<i64: 2, 1>, scalar_prefetch = 0 : i64, scratch_operands = 1 : i64, tpu.core_type = #tpu.core_type<tc>, window_params = [{transform_indices = @transform_0, window_bounds = array<i64: 1, 16, 18, 4>}, {transform_indices = @transform_1, window_bounds = array<i64: 1, 1, 2, 18, 4>}, {pipeline_mode = #tpu.pipeline_mode<synchronous>, transform_indices = @transform_2, window_bounds = array<i64: 36, 128>}, {pipeline_mode = #tpu.pipeline_mode<synchronous>, transform_indices = @transform_3, window_bounds = array<i64: 1, 128>}, {transform_indices = @transform_4, window_bounds = array<i64: 1, 256, 128>}]} {
    %c0 = arith.constant 0 : index
    %c0_0 = arith.constant 0 : index
    %c0_1 = arith.constant 0 : index
    %c0_2 = arith.constant 0 : index
    %0 = vector.load %arg2[%c0, %c0_0, %c0_1, %c0_2] : memref<1x16x18x4xbf16, #tpu.memory_space<vmem>>, vector<1x16x16x4xbf16>
    %1 = vector.shape_cast %0 : vector<1x16x16x4xbf16> to vector<16x16x4xbf16>
    %2 = vector.shape_cast %1 : vector<16x16x4xbf16> to vector<256x4xbf16>
    %c0_3 = arith.constant 0 : index
    %c0_4 = arith.constant 0 : index
    %3 = vector.load %arg7[%c0_3, %c0_4] : memref<256x36xbf16, #tpu.memory_space<vmem>>, vector<256x4xbf16>
    tpu.vector_store %arg7[%c0_3, %c0_4], %2 {strides = array<i32>} : memref<256x36xbf16, #tpu.memory_space<vmem>>, vector<256x4xbf16>,
    %c0_5 = arith.constant 0 : index
    %c0_6 = arith.constant 0 : index
    %c1 = arith.constant 1 : index
    %c0_7 = arith.constant 0 : index
    %4 = vector.load %arg2[%c0_5, %c0_6, %c1, %c0_7] : memref<1x16x18x4xbf16, #tpu.memory_space<vmem>>, vector<1x16x16x4xbf16>
    %5 = vector.shape_cast %4 : vector<1x16x16x4xbf16> to vector<16x16x4xbf16>
    %6 = vector.shape_cast %5 : vector<16x16x4xbf16> to vector<256x4xbf16>
    %c0_8 = arith.constant 0 : index
    %c4 = arith.constant 4 : index
    %7 = vector.load %arg7[%c0_8, %c4] : memref<256x36xbf16, #tpu.memory_space<vmem>>, vector<256x4xbf16>
    tpu.vector_store %arg7[%c0_8, %c4], %6 {strides = array<i32>} : memref<256x36xbf16, #tpu.memory_space<vmem>>, vector<256x4xbf16>,
    %c0_9 = arith.constant 0 : index
    %c0_10 = arith.constant 0 : index
    %c2 = arith.constant 2 : index
    %c0_11 = arith.constant 0 : index
    %8 = vector.load %arg2[%c0_9, %c0_10, %c2, %c0_11] : memref<1x16x18x4xbf16, #tpu.memory_space<vmem>>, vector<1x16x16x4xbf16>
    %9 = vector.shape_cast %8 : vector<1x16x16x4xbf16> to vector<16x16x4xbf16>
    %10 = vector.shape_cast %9 : vector<16x16x4xbf16> to vector<256x4xbf16>
    %c0_12 = arith.constant 0 : index
    %c8 = arith.constant 8 : index
    %11 = vector.load %arg7[%c0_12, %c8] : memref<256x36xbf16, #tpu.memory_space<vmem>>, vector<256x4xbf16>
    tpu.vector_store %arg7[%c0_12, %c8], %10 {strides = array<i32>} : memref<256x36xbf16, #tpu.memory_space<vmem>>, vector<256x4xbf16>,
    %c0_13 = arith.constant 0 : index
    %c1_14 = arith.constant 1 : index
    %c0_15 = arith.constant 0 : index
    %c0_16 = arith.constant 0 : index
    %12 = vector.load %arg2[%c0_13, %c1_14, %c0_15, %c0_16] : memref<1x16x18x4xbf16, #tpu.memory_space<vmem>>, vector<1x15x16x4xbf16>
    %13 = vector.shape_cast %12 : vector<1x15x16x4xbf16> to vector<15x16x4xbf16>
    %14 = vector.shape_cast %13 : vector<15x16x4xbf16> to vector<240x4xbf16>
    %c0_17 = arith.constant 0 : index
    %c12 = arith.constant 12 : index
    %15 = vector.load %arg7[%c0_17, %c12] : memref<256x36xbf16, #tpu.memory_space<vmem>>, vector<240x4xbf16>
    tpu.vector_store %arg7[%c0_17, %c12], %14 {strides = array<i32>} : memref<256x36xbf16, #tpu.memory_space<vmem>>, vector<240x4xbf16>,
    %c0_18 = arith.constant 0 : index
    %c0_19 = arith.constant 0 : index
    %c0_20 = arith.constant 0 : index
    %c0_21 = arith.constant 0 : index
    %c0_22 = arith.constant 0 : index
    %16 = vector.load %arg3[%c0_18, %c0_19, %c0_20, %c0_21, %c0_22] : memref<1x1x2x18x4xbf16, #tpu.memory_space<vmem>>, vector<1x1x1x16x4xbf16>
    %17 = vector.shape_cast %16 : vector<1x1x1x16x4xbf16> to vector<1x16x4xbf16>
    %18 = vector.shape_cast %17 : vector<1x16x4xbf16> to vector<16x4xbf16>
    %c240 = arith.constant 240 : index
    %c12_23 = arith.constant 12 : index
    %19 = vector.load %arg7[%c240, %c12_23] : memref<256x36xbf16, #tpu.memory_space<vmem>>, vector<16x4xbf16>
    tpu.vector_store %arg7[%c240, %c12_23], %18 {strides = array<i32>} : memref<256x36xbf16, #tpu.memory_space<vmem>>, vector<16x4xbf16>,
    %c0_24 = arith.constant 0 : index
    %c1_25 = arith.constant 1 : index
    %c1_26 = arith.constant 1 : index
    %c0_27 = arith.constant 0 : index
    %20 = vector.load %arg2[%c0_24, %c1_25, %c1_26, %c0_27] : memref<1x16x18x4xbf16, #tpu.memory_space<vmem>>, vector<1x15x16x4xbf16>
    %21 = vector.shape_cast %20 : vector<1x15x16x4xbf16> to vector<15x16x4xbf16>
    %22 = vector.shape_cast %21 : vector<15x16x4xbf16> to vector<240x4xbf16>
    %c0_28 = arith.constant 0 : index
    %c16 = arith.constant 16 : index
    %23 = vector.load %arg7[%c0_28, %c16] : memref<256x36xbf16, #tpu.memory_space<vmem>>, vector<240x4xbf16>
    tpu.vector_store %arg7[%c0_28, %c16], %22 {strides = array<i32>} : memref<256x36xbf16, #tpu.memory_space<vmem>>, vector<240x4xbf16>,
    %c0_29 = arith.constant 0 : index
    %c0_30 = arith.constant 0 : index
    %c0_31 = arith.constant 0 : index
    %c1_32 = arith.constant 1 : index
    %c0_33 = arith.constant 0 : index
    %24 = vector.load %arg3[%c0_29, %c0_30, %c0_31, %c1_32, %c0_33] : memref<1x1x2x18x4xbf16, #tpu.memory_space<vmem>>, vector<1x1x1x16x4xbf16>
    %25 = vector.shape_cast %24 : vector<1x1x1x16x4xbf16> to vector<1x16x4xbf16>
    %26 = vector.shape_cast %25 : vector<1x16x4xbf16> to vector<16x4xbf16>
    %c240_34 = arith.constant 240 : index
    %c16_35 = arith.constant 16 : index
    %27 = vector.load %arg7[%c240_34, %c16_35] : memref<256x36xbf16, #tpu.memory_space<vmem>>, vector<16x4xbf16>
    tpu.vector_store %arg7[%c240_34, %c16_35], %26 {strides = array<i32>} : memref<256x36xbf16, #tpu.memory_space<vmem>>, vector<16x4xbf16>,
    %c0_36 = arith.constant 0 : index
    %c1_37 = arith.constant 1 : index
    %c2_38 = arith.constant 2 : index
    %c0_39 = arith.constant 0 : index
    %28 = vector.load %arg2[%c0_36, %c1_37, %c2_38, %c0_39] : memref<1x16x18x4xbf16, #tpu.memory_space<vmem>>, vector<1x15x16x4xbf16>
    %29 = vector.shape_cast %28 : vector<1x15x16x4xbf16> to vector<15x16x4xbf16>
    %30 = vector.shape_cast %29 : vector<15x16x4xbf16> to vector<240x4xbf16>
    %c0_40 = arith.constant 0 : index
    %c20 = arith.constant 20 : index
    %31 = vector.load %arg7[%c0_40, %c20] : memref<256x36xbf16, #tpu.memory_space<vmem>>, vector<240x4xbf16>
    tpu.vector_store %arg7[%c0_40, %c20], %30 {strides = array<i32>} : memref<256x36xbf16, #tpu.memory_space<vmem>>, vector<240x4xbf16>,
    %c0_41 = arith.constant 0 : index
    %c0_42 = arith.constant 0 : index
    %c0_43 = arith.constant 0 : index
    %c2_44 = arith.constant 2 : index
    %c0_45 = arith.constant 0 : index
    %32 = vector.load %arg3[%c0_41, %c0_42, %c0_43, %c2_44, %c0_45] : memref<1x1x2x18x4xbf16, #tpu.memory_space<vmem>>, vector<1x1x1x16x4xbf16>
    %33 = vector.shape_cast %32 : vector<1x1x1x16x4xbf16> to vector<1x16x4xbf16>
    %34 = vector.shape_cast %33 : vector<1x16x4xbf16> to vector<16x4xbf16>
    %c240_46 = arith.constant 240 : index
    %c20_47 = arith.constant 20 : index
    %35 = vector.load %arg7[%c240_46, %c20_47] : memref<256x36xbf16, #tpu.memory_space<vmem>>, vector<16x4xbf16>
    tpu.vector_store %arg7[%c240_46, %c20_47], %34 {strides = array<i32>} : memref<256x36xbf16, #tpu.memory_space<vmem>>, vector<16x4xbf16>,
    %c0_48 = arith.constant 0 : index
    %c2_49 = arith.constant 2 : index
    %c0_50 = arith.constant 0 : index
    %c0_51 = arith.constant 0 : index
    %36 = vector.load %arg2[%c0_48, %c2_49, %c0_50, %c0_51] : memref<1x16x18x4xbf16, #tpu.memory_space<vmem>>, vector<1x14x16x4xbf16>
    %37 = vector.shape_cast %36 : vector<1x14x16x4xbf16> to vector<14x16x4xbf16>
    %38 = vector.shape_cast %37 : vector<14x16x4xbf16> to vector<224x4xbf16>
    %c0_52 = arith.constant 0 : index
    %c24 = arith.constant 24 : index
    %39 = vector.load %arg7[%c0_52, %c24] : memref<256x36xbf16, #tpu.memory_space<vmem>>, vector<224x4xbf16>
    tpu.vector_store %arg7[%c0_52, %c24], %38 {strides = array<i32>} : memref<256x36xbf16, #tpu.memory_space<vmem>>, vector<224x4xbf16>,
    %c0_53 = arith.constant 0 : index
    %c0_54 = arith.constant 0 : index
    %c0_55 = arith.constant 0 : index
    %c0_56 = arith.constant 0 : index
    %c0_57 = arith.constant 0 : index
    %40 = vector.load %arg3[%c0_53, %c0_54, %c0_55, %c0_56, %c0_57] : memref<1x1x2x18x4xbf16, #tpu.memory_space<vmem>>, vector<1x1x2x16x4xbf16>
    %41 = vector.shape_cast %40 : vector<1x1x2x16x4xbf16> to vector<2x16x4xbf16>
    %42 = vector.shape_cast %41 : vector<2x16x4xbf16> to vector<32x4xbf16>
    %c224 = arith.constant 224 : index
    %c24_58 = arith.constant 24 : index
    %43 = vector.load %arg7[%c224, %c24_58] : memref<256x36xbf16, #tpu.memory_space<vmem>>, vector<32x4xbf16>
    tpu.vector_store %arg7[%c224, %c24_58], %42 {strides = array<i32>} : memref<256x36xbf16, #tpu.memory_space<vmem>>, vector<32x4xbf16>,
    %c0_59 = arith.constant 0 : index
    %c2_60 = arith.constant 2 : index
    %c1_61 = arith.constant 1 : index
    %c0_62 = arith.constant 0 : index
    %44 = vector.load %arg2[%c0_59, %c2_60, %c1_61, %c0_62] : memref<1x16x18x4xbf16, #tpu.memory_space<vmem>>, vector<1x14x16x4xbf16>
    %45 = vector.shape_cast %44 : vector<1x14x16x4xbf16> to vector<14x16x4xbf16>
    %46 = vector.shape_cast %45 : vector<14x16x4xbf16> to vector<224x4xbf16>
    %c0_63 = arith.constant 0 : index
    %c28 = arith.constant 28 : index
    %47 = vector.load %arg7[%c0_63, %c28] : memref<256x36xbf16, #tpu.memory_space<vmem>>, vector<224x4xbf16>
    tpu.vector_store %arg7[%c0_63, %c28], %46 {strides = array<i32>} : memref<256x36xbf16, #tpu.memory_space<vmem>>, vector<224x4xbf16>,
    %c0_64 = arith.constant 0 : index
    %c0_65 = arith.constant 0 : index
    %c0_66 = arith.constant 0 : index
    %c1_67 = arith.constant 1 : index
    %c0_68 = arith.constant 0 : index
    %48 = vector.load %arg3[%c0_64, %c0_65, %c0_66, %c1_67, %c0_68] : memref<1x1x2x18x4xbf16, #tpu.memory_space<vmem>>, vector<1x1x2x16x4xbf16>
    %49 = vector.shape_cast %48 : vector<1x1x2x16x4xbf16> to vector<2x16x4xbf16>
    %50 = vector.shape_cast %49 : vector<2x16x4xbf16> to vector<32x4xbf16>
    %c224_69 = arith.constant 224 : index
    %c28_70 = arith.constant 28 : index
    %51 = vector.load %arg7[%c224_69, %c28_70] : memref<256x36xbf16, #tpu.memory_space<vmem>>, vector<32x4xbf16>
    tpu.vector_store %arg7[%c224_69, %c28_70], %50 {strides = array<i32>} : memref<256x36xbf16, #tpu.memory_space<vmem>>, vector<32x4xbf16>,
    %c0_71 = arith.constant 0 : index
    %c2_72 = arith.constant 2 : index
    %c2_73 = arith.constant 2 : index
    %c0_74 = arith.constant 0 : index
    %52 = vector.load %arg2[%c0_71, %c2_72, %c2_73, %c0_74] : memref<1x16x18x4xbf16, #tpu.memory_space<vmem>>, vector<1x14x16x4xbf16>
    %53 = vector.shape_cast %52 : vector<1x14x16x4xbf16> to vector<14x16x4xbf16>
    %54 = vector.shape_cast %53 : vector<14x16x4xbf16> to vector<224x4xbf16>
    %c0_75 = arith.constant 0 : index
    %c32 = arith.constant 32 : index
    %55 = vector.load %arg7[%c0_75, %c32] : memref<256x36xbf16, #tpu.memory_space<vmem>>, vector<224x4xbf16>
    tpu.vector_store %arg7[%c0_75, %c32], %54 {strides = array<i32>} : memref<256x36xbf16, #tpu.memory_space<vmem>>, vector<224x4xbf16>,
    %c0_76 = arith.constant 0 : index
    %c0_77 = arith.constant 0 : index
    %c0_78 = arith.constant 0 : index
    %c2_79 = arith.constant 2 : index
    %c0_80 = arith.constant 0 : index
    %56 = vector.load %arg3[%c0_76, %c0_77, %c0_78, %c2_79, %c0_80] : memref<1x1x2x18x4xbf16, #tpu.memory_space<vmem>>, vector<1x1x2x16x4xbf16>
    %57 = vector.shape_cast %56 : vector<1x1x2x16x4xbf16> to vector<2x16x4xbf16>
    %58 = vector.shape_cast %57 : vector<2x16x4xbf16> to vector<32x4xbf16>
    %c224_81 = arith.constant 224 : index
    %c32_82 = arith.constant 32 : index
    %59 = vector.load %arg7[%c224_81, %c32_82] : memref<256x36xbf16, #tpu.memory_space<vmem>>, vector<32x4xbf16>
    tpu.vector_store %arg7[%c224_81, %c32_82], %58 {strides = array<i32>} : memref<256x36xbf16, #tpu.memory_space<vmem>>, vector<32x4xbf16>,
    %c0_83 = arith.constant 0 : index
    %c0_84 = arith.constant 0 : index
    %60 = vector.load %arg7[%c0_83, %c0_84] : memref<256x36xbf16, #tpu.memory_space<vmem>>, vector<256x36xbf16>
    %c0_85 = arith.constant 0 : index
    %c0_86 = arith.constant 0 : index
    %61 = vector.load %arg4[%c0_85, %c0_86] : memref<36x128xbf16, #tpu.memory_space<vmem>>, vector<36x128xbf16>
    %cst = arith.constant dense<0.000000e+00> : vector<256x128xf32>
    %62 = tpu.matmul %60, %61, %cst {dimension_numbers = #tpu.dot_dimension_numbers<[1], [0], [0], [1], [0, 0, 1, 1], [], []>} : vector<256x36xbf16>, vector<36x128xbf16>, vector<256x128xf32> -> vector<256x128xf32>
    %c0_87 = arith.constant 0 : index
    %c0_88 = arith.constant 0 : index
    %63 = vector.load %arg5[%c0_87, %c0_88] : memref<1x128xf32, #tpu.memory_space<vmem>>, vector<1x128xf32>
    %64 = vector.broadcast %63 : vector<1x128xf32> to vector<256x128xf32>
    %65 = arith.addf %62, %64 : vector<256x128xf32>
    %cst_89 = arith.constant 0.000000e+00 : f32
    %66 = vector.broadcast %cst_89 : f32 to vector<256x128xf32>
    %67 = arith.maximumf %65, %66 : vector<256x128xf32>
    %c0_90 = arith.constant 0 : index
    %c0_91 = arith.constant 0 : index
    %c0_92 = arith.constant 0 : index
    %68 = vector.load %arg6[%c0_90, %c0_91, %c0_92] : memref<1x256x128xf32, #tpu.memory_space<vmem>>, vector<1x256x128xf32>
    %69 = vector.shape_cast %68 : vector<1x256x128xf32> to vector<256x128xf32>
    %70 = vector.shape_cast %67 : vector<256x128xf32> to vector<1x256x128xf32>
    tpu.vector_store %arg6[%c0_90, %c0_91, %c0_92], %70 {strides = array<i32>} : memref<1x256x128xf32, #tpu.memory_space<vmem>>, vector<1x256x128xf32>,
    return
  }
  func.func @transform_0(%arg0: i32, %arg1: i32) -> (i32, i32, i32, i32) {
    %c0_i32 = arith.constant 0 : i32
    %c0_i32_0 = arith.constant 0 : i32
    %c0_i32_1 = arith.constant 0 : i32
    return %arg0, %arg1, %c0_i32, %c0_i32_0 : i32, i32, i32, i32
  }
  func.func @transform_1(%arg0: i32, %arg1: i32) -> (i32, i32, i32, i32, i32) {
    %c0_i32 = arith.constant 0 : i32
    %c0_i32_0 = arith.constant 0 : i32
    %c0_i32_1 = arith.constant 0 : i32
    %c0_i32_2 = arith.constant 0 : i32
    return %arg0, %arg1, %c0_i32, %c0_i32_0, %c0_i32_1 : i32, i32, i32, i32, i32
  }
  func.func @transform_2(%arg0: i32, %arg1: i32) -> (i32, i32) {
    %c0_i32 = arith.constant 0 : i32
    %c0_i32_0 = arith.constant 0 : i32
    %c0_i32_1 = arith.constant 0 : i32
    return %c0_i32, %c0_i32_0 : i32, i32
  }
  func.func @transform_3(%arg0: i32, %arg1: i32) -> (i32, i32) {
    %c0_i32 = arith.constant 0 : i32
    %c0_i32_0 = arith.constant 0 : i32
    %c0_i32_1 = arith.constant 0 : i32
    return %c0_i32, %c0_i32_0 : i32, i32
  }
  func.func @transform_4(%arg0: i32, %arg1: i32) -> (i32, i32, i32) {
    %c0_i32 = arith.constant 0 : i32
    %c0_i32_0 = arith.constant 0 : i32
    return %arg0, %arg1, %c0_i32 : i32, i32, i32
  }
}

</mosaic_0001>

<bundles_post_ra>
// kernel: tpu_custom_call.1
= control target key start
LH: loop header
LB: loop body
LE: loop exit
PB: predicated region body
PF: predicated region fallthrough
CT: control target
= control target key end

     0   :  { %9 = vsyncpa [#allocation4], 0  ;;  %s6226_s0 = inlined_call_operand.vmem [shape: bf16[2,16,18,4], index: 0, kind: input, shape index: {}]   ;;  %s6227_s1 = inlined_call_operand.vmem [shape: bf16[2,1,2,18,4], index: 1, kind: input, shape index: {}]   ;;  %s6228_s2 = inlined_call_operand.vmem [shape: bf16[36,128], index: 2, kind: input, shape index: {}]   ;;  %s6229_s3 = inlined_call_operand.vmem [shape: f32[1,128], index: 3, kind: input, shape index: {}]   ;;  %s6230_s4 = inlined_call_operand.hbm [shape: f32[2,256,128], index: 4, kind: output, shape index: {}]  }
   0x1   :  { %11 = vsyncpa [#allocation4 + $0x1], 0  ;;  %s4547_s15 = smov 0   ;;  %s4549_s16 = smov 0  }
   0x2   :  { %s4551_s17 = smov 0   ;;  %s4553_s18 = smov 0  }
   0x3   :  { %s4555_s19 = smov 0   ;;  %s4557_s20 = smov 0  }
   0x4 LB: > { %s3954_s21 = sadd.s32 4294967295, %s4510_s20   ;;  %s3955_s22 = sadd.s32 4294967294, %s4510_s20   ;;  %s4510_s20 = sphi %s4557_s20, %s17_s20   ;;  %s4506_s19 = sphi %s4555_s19, %s6241_s19   ;;  %s4502_s18 = sphi %s4553_s18, %s6240_s18   ;;  %s4498_s17 = sphi %s4551_s17, %s6239_s17   ;;  %s4494_s16 = sphi %s4549_s16, %s6238_s16   ;;  %s4490_s15 = sphi %s4547_s15, %s6237_s15  }
   0x5   : > { %s29_s23 = sadd.s32 1, %s4506_s19  ;;  %s136_s24 = sadd.s32 1, %s4498_s17 }
   0x6   : > { %p31_p0 = scmp.ge.s32.totalorder %s29_s23, 2  ;;  %p146_p1 = scmp.ne.s32.totalorder %s4498_s17, %s4494_s16 }
   0x7   : > { %p147_p2 = scmp.eq.s32.totalorder %s3954_s21, 1  ;;  %p152_p3 = scmp.ne.s32.totalorder %s4494_s16, %s4490_s15 }
   0x8   : > { %s6243_s23 = smov (%p31_p0, %s29_s23), 0  ;;  %p153_p5 = scmp.eq.s32.totalorder %s3955_s22, 1 }
   0x9   : > { %p4587_p4 = por %p147_p2, %p146_p1  ;;  %s131_s26 = ssub.s32 %s4506_s19, %s6243_s23 }
   0xa   : > { %p3958_p6 = scmp.ge.s32.totalorder %s4510_s20, 1  ;;  %p134_p7 = scmp.eq.s32.totalorder %s131_s26, 0 }
   0xb   : > { %p4594_p8 = por %p153_p5, %p152_p3  ;;  %p203_p9 = scmp.lt.s32.totalorder %s4510_s20, 3 }
   0xc   : > { %s4600_s28 = scalar_select %p134_p7, %s4498_s17, %s136_s24  }
   0xd   : > { %p204_p10 = pnand %p3958_p6, %p203_p9 }
   0xe   : > { %p244_p11 = scmp.lt.s32.totalorder (!%p204_p10), %s4502_s18, 1  ;;  %s4512_s8 = smov (!%p204_p10), 4  }
   0xf   : > { %207 = sbr.rel (%p204_p10) target bundleno = 884 (0x374), region = 36  ;;  %s4513_s9 = smov (!%p204_p10), 8  }
  0x10   : > { %s4514_s10 = smov (!%p204_p10), 12   ;;  %s4515_s21 = smov (!%p204_p10), 16  }
  0x11   : > { %s4516_s22 = smov (!%p204_p10), 20   ;;  %s4517_s24 = smov (!%p204_p10), 24  }
  0x12   : > { %s4518_s26 = smov (!%p204_p10), 28   ;;  %s4520_s6 = smov (!%p204_p10), [#allocation3]  }
  0x14   : > { %s4604_s29 = scalar_select %p244_p11, %s4502_s18, 1  ;;  %vm378_vm0 = vsmask.f32 3328  ;;  %vm379_vm1 = vsmask.f32 7440  ;;  %vm297_vm3 = vcmask 27648  }
  0x15   : > { %vm4621_vm2 = vmor %vm378_vm0, %vm379_vm1  ;;  %vm990_vm4 = vcmask 1042432   ;;  %vm991_vm5 = vcmask 1046532   ;;  %vm861_vm7 = vcmask 60448   ;;  %vm1201_vm8 = vcmask 93248  }
  0x16   : > { %s4349_s30 = smul.u32 192, %s4604_s29  ;;  %vm4765_vm6 = vmor %vm990_vm4, %vm991_vm5  ;;  %vm1385_vm9 = vcmask 126048   ;;  %vm3606_vm10 = vcmask 1041408   ;;  %vm1923_vm11 = vcmask 158848   ;;  %vm2274_vm12 = vcmask 191648  }
  0x17   : > { %s4350_s11 = smul.u32 24, %s4604_s29  ;;  %vm2467_vm13 = vcmask 224448   ;;  %vm2982_vm14 = vcmask 257248   ;;  %vm3347_vm15 = vcmask 290048   ;;  %vm3557_vm0 = vcmask 293888  }
  0x18   : > { %s4610_s7 = scalar_lea.vmem %s6226_s0, %s4349_s30 }
  0x19   : > { %v333_v0 = vld [vmem:[%s4610_s7 + $0xc] sm:$0xf]  ;;  %v334_v1 = vld [vmem:[%s4610_s7 + $0x10] sm:$0xf]  ;;  %v330_v2 = vld [vmem:[%s4610_s7] sm:$0xf]  ;;  %s5088_s14 = scalar_lea.vmem %s6227_s1, %s4350_s11 }
  0x1a   : > { %v406_v3 = vshrl.u32 %v333_v0, 16  ;;  %v409_v4 = vshll.u32 %v333_v0, 16  ;;  %v415_v5 = vshll.u32 %v334_v1, 16  ;;  %v419_v6 = vshrl.u32 %v334_v1, 16  ;;  %v331_v7 = vld [vmem:[%s4610_s7 + $0x4] sm:$0xf] }
  0x1b   : > { %v382_v8 = vshrl.u32 %v330_v2, 16  ;;  %v385_v9 = vshll.u32 %v330_v2, 16  ;;  %v391_v10 = vshll.u32 %v331_v7, 16  ;;  %v395_v11 = vshrl.u32 %v331_v7, 16  ;;  %v335_v12 = vld [vmem:[%s4610_s7 + $0x14] sm:$0x1] }
  0x1c   : > { %v408_v13 = vrot.slane %v406_v3, 4  ;;  %v411_v14 = vrot.slane %v409_v4, 5  ;;  %v417_v15 = vrot.slane %v415_v5, 5  ;;  %v421_v16 = vrot.slane %v419_v6, 4  ;;  %v332_v17 = vld [vmem:[%s4610_s7 + $0x8] sm:$0x1] }
  0x1d   : > { %v384_v18 = vrot.slane %v382_v8, 4  ;;  %v387_v19 = vrot.slane %v385_v9, 5  ;;  %v393_v20 = vrot.slane %v391_v10, 5  ;;  %v397_v21 = vrot.slane %v395_v11, 4  ;;  %v337_v22 = vld [vmem:[%s4610_s7 + $0x1c] sm:$0xf] }
  0x1e   : > { %v412_v23 = vor.u32 %v411_v14, %v408_v13  ;;  %v422_v24 = vor.u32 %v421_v16, %v417_v15  ;;  %v425_v25 = vshll.u32 %v335_v12, 16  ;;  %v401_v26 = vshll.u32 %v332_v17, 16  ;;  %v338_v30 = vld [vmem:[%s4610_s7 + $0x20] sm:$0x1]  ;;  %v336_v33 = vld [vmem:[%s4610_s7 + $0x18] sm:$0xf] }
  0x1f   : > { %v388_v28 = vor.u32 %v387_v19, %v384_v18  ;;  %v398_v29 = vor.u32 %v397_v21, %v393_v20  ;;  %v439_v31 = vshll.u32 %v337_v22, 16  ;;  %v443_v32 = vshrl.u32 %v337_v22, 16  ;;  %v340_v42 = vld [vmem:[%s4610_s7 + $0x28] sm:$0xf]  ;;  %v341_v47 = vld [vmem:[%s4610_s7 + $0x2c] sm:$0x1] }
  0x20   : > { %v413_v34 = vrot.slane %v412_v23, 4  ;;  %v423_v35 = vrot.slane %v422_v24, 4  ;;  %v427_v36 = vrot.slane %v425_v25, 5  ;;  %v403_v37 = vrot.slane %v401_v26, 5  ;;  %v339_v48 = vld [vmem:[%s4610_s7 + $0x24] sm:$0xf] }
  0x21   : > { %v389_v38 = vrot.slane %v388_v28, 4  ;;  %v399_v39 = vrot.slane %v398_v29, 4  ;;  %v441_v40 = vrot.slane %v439_v31, 5  ;;  %v445_v41 = vrot.slane %v443_v32, 4  ;;  %v343_v53 = vld [vmem:[%s4610_s7 + $0x34] sm:$0xf] }
  0x22   : > { %v418_v43 = vsel %vm4621_vm2, %v413_v34, %v417_v15  ;;  %v428_v44 = vsel %vm4621_vm2, %v423_v35, %v427_v36  ;;  %v449_v45 = vshll.u32 %v338_v30, 16  ;;  %v430_v46 = vshrl.u32 %v336_v33, 16  ;;  %v344_v62 = vld [vmem:[%s4610_s7 + $0x38] sm:$0x1]  ;;  %v342_v3 = vld [vmem:[%s4610_s7 + $0x30] sm:$0xf] }
  0x23   : > { %769 = vrot.lane.b32.xlu1 %v418_v43, %s4512_s8  ;;  %v394_v49 = vsel %vm4621_vm2, %v389_v38, %v393_v20  ;;  %v404_v50 = vsel %vm4621_vm2, %v399_v39, %v403_v37  ;;  %v446_v51 = vor.u32 %v445_v41, %v441_v40  ;;  %v433_v52 = vshll.u32 %v336_v33, 16  ;;  %v346_v8 = vld [vmem:[%s4610_s7 + $0x40] sm:$0xf]  ;;  %v347_v17 = vld [vmem:[%s4610_s7 + $0x44] sm:$0x1]  ;;  %s4519_s11 = smov 32  }
  0x24   : > { %765 = vrot.lane.b32.xlu0 %v394_v49, %s4512_s8  ;;  %v451_v54 = vrot.slane %v449_v45, 5  ;;  %v432_v55 = vrot.slane %v430_v46, 4  ;;  %v463_v56 = vshll.u32 %v340_v42, 16  ;;  %v467_v57 = vshrl.u32 %v340_v42, 16  ;;  %v345_v22 = vld [vmem:[%s4610_s7 + $0x3c] sm:$0xf] }
  0x25   : > { %v447_v58 = vrot.slane %v446_v51, 4  ;;  %v435_v59 = vrot.slane %v433_v52, 5  ;;  %v473_v60 = vshll.u32 %v341_v47, 16  ;;  %v454_v61 = vshrl.u32 %v339_v48, 16  ;;  %v349_v28 = vld [vmem:[%s4610_s7 + $0x4c] sm:$0xf] }
  0x26   : > { %v465_v63 = vrot.slane %v463_v56, 5  ;;  %v469_v0 = vrot.slane %v467_v57, 4  ;;  %v457_v1 = vshll.u32 %v339_v48, 16  ;;  %v487_v2 = vshll.u32 %v343_v53, 16  ;;  %v350_v37 = vld [vmem:[%s4610_s7 + $0x50] sm:$0x1] }
  0x27   : > { %771 = vrot.lane.b32.xlu1 %v428_v44, %s4512_s8  ;;  %v452_v4 = vsel %vm4621_vm2, %v447_v58, %v451_v54  ;;  %v436_v5 = vor.u32 %v435_v59, %v432_v55  ;;  %v475_v6 = vrot.slane %v473_v60, 5  ;;  %v456_v7 = vrot.slane %v454_v61, 4  ;;  %v348_v42 = vld [vmem:[%s4610_s7 + $0x48] sm:$0xf]  ;;  %v352_v47 = vld [vmem:[%s4610_s7 + $0x58] sm:$0xf] }
  0x28   : > { %767 = vrot.lane.b32.xlu0 %v404_v50, %s4512_s8  ;;  %v470_v9 = vor.u32 %v469_v0, %v465_v63  ;;  %v459_v10 = vrot.slane %v457_v1, 5  ;;  %v489_v11 = vrot.slane %v487_v2, 5  ;;  %v491_v12 = vshrl.u32 %v343_v53, 16  ;;  %v353_v56 = vld [vmem:[%s4610_s7 + $0x5c] sm:$0x1] }
  0x29   : > { %v437_v13 = vrot.slane %v436_v5, 4  ;;  %v497_v14 = vshll.u32 %v344_v62, 16  ;;  %v478_v15 = vshrl.u32 %v342_v3, 16  ;;  %v481_v16 = vshll.u32 %v342_v3, 16  ;;  %v351_v61 = vld [vmem:[%s4610_s7 + $0x54] sm:$0xf] }
  0x2a   : > { %v471_v18 = vrot.slane %v470_v9, 4  ;;  %v460_v19 = vor.u32 %v459_v10, %v456_v7  ;;  %v493_v20 = vrot.slane %v491_v12, 4  ;;  %v511_v21 = vshll.u32 %v346_v8, 16 }
  0x2b   : > { %775 = vrot.lane.b32.xlu1 %v452_v4, %s4512_s8  ;;  %v442_v23 = vsel %vm4621_vm2, %v437_v13, %v441_v40  ;;  %v499_v24 = vrot.slane %v497_v14, 5  ;;  %v480_v25 = vrot.slane %v478_v15, 4  ;;  %v483_v26 = vrot.slane %v481_v16, 5  ;;  %v356_v15 = vld [vmem:[%s4610_s7 + $0x68] sm:$0x1] }
  0x2c   : > { %773 = vrot.lane.b32.xlu0 %v442_v23, %s4512_s8  ;;  %v476_v29 = vsel %vm4621_vm2, %v471_v18, %v475_v6  ;;  %v461_v30 = vrot.slane %v460_v19, 4  ;;  %v494_v31 = vor.u32 %v493_v20, %v489_v11  ;;  %v513_v32 = vrot.slane %v511_v21, 5  ;;  %v355_v6 = vld [vmem:[%s4610_s7 + $0x64] sm:$0xf]  ;;  %v354_v16 = vld [vmem:[%s4610_s7 + $0x60] sm:$0xf] }
  0x2d   : > { %v484_v33 = vor.u32 %v483_v26, %v480_v25  ;;  %v515_v34 = vshrl.u32 %v346_v8, 16  ;;  %v521_v35 = vshll.u32 %v347_v17, 16  ;;  %v502_v36 = vshrl.u32 %v345_v22, 16  ;;  %v358_v25 = vld [vmem:[%s4610_s7 + $0x70] sm:$0xf] }
  0x2e   : > { %v466_v38 = vsel %vm4621_vm2, %v461_v30, %v465_v63  ;;  %v495_v39 = vrot.slane %v494_v31, 4  ;;  %v505_v40 = vshll.u32 %v345_v22, 16  ;;  %v535_v41 = vshll.u32 %v349_v28, 16 }
  0x2f   : > { %779 = vrot.lane.b32.xlu1 %v476_v29, %s4512_s8  ;;  %v485_v43 = vrot.slane %v484_v33, 4  ;;  %v517_v44 = vrot.slane %v515_v34, 4  ;;  %v523_v45 = vrot.slane %v521_v35, 5  ;;  %v504_v46 = vrot.slane %v502_v36, 4  ;;  %v359_v35 = vld [vmem:[%s4610_s7 + $0x74] sm:$0x1] }
  0x30   : > { %777 = vrot.lane.b32.xlu0 %v466_v38, %s4512_s8  ;;  %v500_v48 = vsel %vm4621_vm2, %v495_v39, %v499_v24  ;;  %v507_v49 = vrot.slane %v505_v40, 5  ;;  %v537_v50 = vrot.slane %v535_v41, 5  ;;  %v539_v51 = vshrl.u32 %v349_v28, 16  ;;  %v357_v36 = vld [vmem:[%s4610_s7 + $0x6c] sm:$0xf] }
  0x31   : > { %v490_v52 = vsel %vm4621_vm2, %v485_v43, %v489_v11  ;;  %v518_v53 = vor.u32 %v517_v44, %v513_v32  ;;  %v545_v54 = vshll.u32 %v350_v37, 16  ;;  %v526_v55 = vshrl.u32 %v348_v42, 16 }
  0x32   : > { %v508_v57 = vor.u32 %v507_v49, %v504_v46  ;;  %v541_v58 = vrot.slane %v539_v51, 4  ;;  %v529_v59 = vshll.u32 %v348_v42, 16  ;;  %v559_v60 = vshll.u32 %v352_v47, 16 }
  0x33   : > { %783 = vrot.lane.b32.xlu1 %v500_v48, %s4512_s8  ;;  %v519_v62 = vrot.slane %v518_v53, 4  ;;  %v547_v63 = vrot.slane %v545_v54, 5  ;;  %v528_v0 = vrot.slane %v526_v55, 4  ;;  %v563_v1 = vshrl.u32 %v352_v47, 16  ;;  %v362_v54 = vld [vmem:[%s4610_s7 + $0x80] sm:$0x1] }
  0x34   : > { %781 = vrot.lane.b32.xlu0 %v490_v52, %s4512_s8  ;;  %v509_v2 = vrot.slane %v508_v57, 4  ;;  %v542_v3 = vor.u32 %v541_v58, %v537_v50  ;;  %v531_v4 = vrot.slane %v529_v59, 5  ;;  %v561_v5 = vrot.slane %v559_v60, 5  ;;  %v360_v55 = vld [vmem:[%s4610_s7 + $0x78] sm:$0xf] }
  0x35   : > { %v524_v7 = vsel %vm4621_vm2, %v519_v62, %v523_v45  ;;  %v565_v8 = vrot.slane %v563_v1, 4  ;;  %v569_v9 = vshll.u32 %v353_v56, 16  ;;  %v550_v10 = vshrl.u32 %v351_v61, 16  ;;  %v361_v45 = vld [vmem:[%s4610_s7 + $0x7c] sm:$0xf] }
  0x36   : > { %v514_v11 = vsel %vm4621_vm2, %v509_v2, %v513_v32  ;;  %v543_v12 = vrot.slane %v542_v3, 4  ;;  %v532_v13 = vor.u32 %v531_v4, %v528_v0  ;;  %v553_v14 = vshll.u32 %v351_v61, 16  ;;  %v364_v0 = vld [vmem:[%s4610_s7 + $0x88] sm:$0xf] }
  0x37   : > { %787 = vrot.lane.b32.xlu1 %v524_v7, %s4512_s8  ;;  %v566_v17 = vor.u32 %v565_v8, %v561_v5  ;;  %v571_v18 = vrot.slane %v569_v9, 5  ;;  %v552_v19 = vrot.slane %v550_v10, 4  ;;  %v583_v20 = vshll.u32 %v355_v6, 16  ;;  %v363_v10 = vld [vmem:[%s4610_s7 + $0x84] sm:$0xf] }
  0x38   : > { %785 = vrot.lane.b32.xlu0 %v514_v11, %s4512_s8  ;;  %v548_v21 = vsel %vm4621_vm2, %v543_v12, %v547_v63  ;;  %v533_v22 = vrot.slane %v532_v13, 4  ;;  %v555_v23 = vrot.slane %v553_v14, 5  ;;  %v587_v24 = vshrl.u32 %v355_v6, 16 }
  0x39   : > { %v567_v26 = vrot.slane %v566_v17, 4  ;;  %v585_v28 = vrot.slane %v583_v20, 5  ;;  %v593_v29 = vshll.u32 %v356_v15, 16  ;;  %v574_v30 = vshrl.u32 %v354_v16, 16 }
  0x3a   : > { %v538_v31 = vsel %vm4621_vm2, %v533_v22, %v537_v50  ;;  %v556_v32 = vor.u32 %v555_v23, %v552_v19  ;;  %v589_v33 = vrot.slane %v587_v24, 4  ;;  %v577_v34 = vshll.u32 %v354_v16, 16  ;;  %v367_v19 = vld [vmem:[%s4610_s7 + $0x94] sm:$0xf]  ;;  %v368_v24 = vld [vmem:[%s4610_s7 + $0x98] sm:$0x1] }
  0x3b   : > { %791 = vrot.lane.b32.xlu1 %v548_v21, %s4512_s8  ;;  %v572_v37 = vsel %vm4621_vm2, %v567_v26, %v571_v18  ;;  %v595_v38 = vrot.slane %v593_v29, 5  ;;  %v576_v39 = vrot.slane %v574_v30, 4  ;;  %v607_v40 = vshll.u32 %v358_v25, 16  ;;  %v366_v30 = vld [vmem:[%s4610_s7 + $0x90] sm:$0xf] }
  0x3c   : > { %789 = vrot.lane.b32.xlu0 %v538_v31, %s4512_s8  ;;  %v557_v41 = vrot.slane %v556_v32, 4  ;;  %v590_v42 = vor.u32 %v589_v33, %v585_v28  ;;  %v579_v43 = vrot.slane %v577_v34, 5  ;;  %v611_v44 = vshrl.u32 %v358_v25, 16 }
  0x3d   : > { %v609_v46 = vrot.slane %v607_v40, 5  ;;  %v617_v47 = vshll.u32 %v359_v35, 16  ;;  %v598_v48 = vshrl.u32 %v357_v36, 16  ;;  %v601_v49 = vshll.u32 %v357_v36, 16 }
  0x3e   : > { %v562_v50 = vsel %vm4621_vm2, %v557_v41, %v561_v5  ;;  %v591_v51 = vrot.slane %v590_v42, 4  ;;  %v580_v52 = vor.u32 %v579_v43, %v576_v39  ;;  %v613_v53 = vrot.slane %v611_v44, 4  ;;  %v365_v5 = vld [vmem:[%s4610_s7 + $0x8c] sm:$0x1]  ;;  %v370_v39 = vld [vmem:[%s4610_s7 + $0xa0] sm:$0xf] }
  0x3f   : > { %795 = vrot.lane.b32.xlu1 %v572_v37, %s4512_s8  ;;  %v619_v56 = vrot.slane %v617_v47, 5  ;;  %v600_v57 = vrot.slane %v598_v48, 4  ;;  %v603_v58 = vrot.slane %v601_v49, 5  ;;  %v631_v59 = vshll.u32 %v361_v45, 16  ;;  %v371_v48 = vld [vmem:[%s4610_s7 + $0xa4] sm:$0x1] }
  0x40   : > { %793 = vrot.lane.b32.xlu0 %v562_v50, %s4512_s8  ;;  %v596_v60 = vsel %vm4621_vm2, %v591_v51, %v595_v38  ;;  %v581_v61 = vrot.slane %v580_v52, 4  ;;  %v614_v62 = vor.u32 %v613_v53, %v609_v46  ;;  %v635_v63 = vshrl.u32 %v361_v45, 16  ;;  %v369_v49 = vld [vmem:[%s4610_s7 + $0x9c] sm:$0xf] }
  0x41   : > { %v604_v1 = vor.u32 %v603_v58, %v600_v57  ;;  %v633_v2 = vrot.slane %v631_v59, 5  ;;  %v641_v3 = vshll.u32 %v362_v54, 16  ;;  %v622_v4 = vshrl.u32 %v360_v55, 16  ;;  %v373_v58 = vld [vmem:[%s4610_s7 + $0xac] sm:$0xf] }
  0x42   : > { %v586_v6 = vsel %vm4621_vm2, %v581_v61, %v585_v28  ;;  %v615_v7 = vrot.slane %v614_v62, 4  ;;  %v637_v8 = vrot.slane %v635_v63, 4  ;;  %v625_v9 = vshll.u32 %v360_v55, 16 }
  0x43   : > { %799 = vrot.lane.b32.xlu1 %v596_v60, %s4512_s8  ;;  %v605_v11 = vrot.slane %v604_v1, 4  ;;  %v643_v12 = vrot.slane %v641_v3, 5  ;;  %v624_v13 = vrot.slane %v622_v4, 4  ;;  %v655_v14 = vshll.u32 %v364_v0, 16  ;;  %v374_v3 = vld [vmem:[%s4610_s7 + $0xb0] sm:$0x1] }
  0x44   : > { %797 = vrot.lane.b32.xlu0 %v586_v6, %s4512_s8  ;;  %v620_v15 = vsel %vm4621_vm2, %v615_v7, %v619_v56  ;;  %v638_v16 = vor.u32 %v637_v8, %v633_v2  ;;  %v627_v17 = vrot.slane %v625_v9, 5  ;;  %v659_v18 = vshrl.u32 %v364_v0, 16  ;;  %v372_v4 = vld [vmem:[%s4610_s7 + $0xa8] sm:$0xf] }
  0x45   : > { %v610_v20 = vsel %vm4621_vm2, %v605_v11, %v609_v46  ;;  %v657_v21 = vrot.slane %v655_v14, 5  ;;  %v665_v22 = vshll.u32 %v365_v5, 16  ;;  %v646_v23 = vshrl.u32 %v363_v10, 16 }
  0x46   : > { %v639_v25 = vrot.slane %v638_v16, 4  ;;  %v628_v26 = vor.u32 %v627_v17, %v624_v13  ;;  %v661_v28 = vrot.slane %v659_v18, 4  ;;  %v649_v29 = vshll.u32 %v363_v10, 16  ;;  %v376_v13 = vld [vmem:[%s4610_s7 + $0xb8] sm:$0xf] }
  0x47   : > { %803 = vrot.lane.b32.xlu1 %v620_v15, %s4512_s8  ;;  %v667_v31 = vrot.slane %v665_v22, 5  ;;  %v648_v32 = vrot.slane %v646_v23, 4  ;;  %v679_v33 = vshll.u32 %v367_v19, 16  ;;  %v683_v34 = vshrl.u32 %v367_v19, 16  ;;  %v377_v22 = vld [vmem:[%s4610_s7 + $0xbc] sm:$0x1] }
  0x48   : > { %801 = vrot.lane.b32.xlu0 %v610_v20, %s4512_s8  ;;  %v644_v35 = vsel %vm4621_vm2, %v639_v25, %v643_v12  ;;  %v629_v36 = vrot.slane %v628_v26, 4  ;;  %v662_v37 = vor.u32 %v661_v28, %v657_v21  ;;  %v651_v38 = vrot.slane %v649_v29, 5  ;;  %v375_v23 = vld [vmem:[%s4610_s7 + $0xb4] sm:$0xf] }
  0x49   : > { %v681_v40 = vrot.slane %v679_v33, 5  ;;  %v685_v41 = vrot.slane %v683_v34, 4  ;;  %v689_v42 = vshll.u32 %v368_v24, 16  ;;  %v670_v43 = vshrl.u32 %v366_v30, 16 }
  0x4a   : > { %v634_v44 = vsel %vm4621_vm2, %v629_v36, %v633_v2  ;;  %v663_v45 = vrot.slane %v662_v37, 4  ;;  %v652_v46 = vor.u32 %v651_v38, %v648_v32  ;;  %v673_v47 = vshll.u32 %v366_v30, 16  ;;  %v895_v37 = vld [vmem:[%s4610_s7 + $0x4] sm:$0xf] }
  0x4b   : > { %807 = vrot.lane.b32.xlu1 %v644_v35, %s4512_s8  ;;  %v686_v50 = vor.u32 %v685_v41, %v681_v40  ;;  %v691_v51 = vrot.slane %v689_v42, 5  ;;  %v672_v52 = vrot.slane %v670_v43, 4  ;;  %v703_v53 = vshll.u32 %v370_v39, 16 }
  0x4c   : > { %805 = vrot.lane.b32.xlu0 %v634_v44, %s4512_s8  ;;  %v668_v54 = vsel %vm4621_vm2, %v663_v45, %v667_v31  ;;  %v653_v55 = vrot.slane %v652_v46, 4  ;;  %v675_v56 = vrot.slane %v673_v47, 5  ;;  %v707_v57 = vshrl.u32 %v370_v39, 16 }
  0x4d   : > { %v687_v59 = vrot.slane %v686_v50, 4  ;;  %v705_v60 = vrot.slane %v703_v53, 5  ;;  %v713_v61 = vshll.u32 %v371_v48, 16  ;;  %v694_v62 = vshrl.u32 %v369_v49, 16  ;;  %v896_v48 = vld [vmem:[%s4610_s7 + $0x8] sm:$0x1] }
  0x4e   : > { %v658_v63 = vsel %vm4621_vm2, %v653_v55, %v657_v21  ;;  %v676_v0 = vor.u32 %v675_v56, %v672_v52  ;;  %v709_v1 = vrot.slane %v707_v57, 4  ;;  %v697_v2 = vshll.u32 %v369_v49, 16  ;;  %v267_v56 = vld [vmem:[%s4610_s7 + $0xc] sm:$0xf] }
  0x4f   : > { %811 = vrot.lane.b32.xlu1 %v668_v54, %s4512_s8  ;;  %v692_v5 = vsel %vm4621_vm2, %v687_v59, %v691_v51  ;;  %v715_v6 = vrot.slane %v713_v61, 5  ;;  %v696_v7 = vrot.slane %v694_v62, 4  ;;  %v727_v8 = vshll.u32 %v373_v58, 16  ;;  %v898_v51 = vld [vmem:[%s4610_s7 + $0x10] sm:$0xf] }
  0x50   : > { %809 = vrot.lane.b32.xlu0 %v658_v63, %s4512_s8  ;;  %v677_v9 = vrot.slane %v676_v0, 4  ;;  %v710_v10 = vor.u32 %v709_v1, %v705_v60  ;;  %v699_v11 = vrot.slane %v697_v2, 5  ;;  %v731_v12 = vshrl.u32 %v373_v58, 16  ;;  %v894_v54 = vld [vmem:[%s4610_s7] sm:$0xe] }
  0x51   : > { %v729_v14 = vrot.slane %v727_v8, 5  ;;  %v737_v15 = vshll.u32 %v374_v3, 16  ;;  %v718_v16 = vshrl.u32 %v372_v4, 16  ;;  %v721_v17 = vshll.u32 %v372_v4, 16  ;;  %300 = vst.msk [vmem:[#allocation2 + $0x8] sm:$0xf] %vm297_vm3, %v267_v56 }
  0x52   : > { %v682_v18 = vsel %vm4621_vm2, %v677_v9, %v681_v40  ;;  %v711_v19 = vrot.slane %v710_v10, 4  ;;  %v700_v20 = vor.u32 %v699_v11, %v696_v7  ;;  %v733_v21 = vrot.slane %v731_v12, 4  ;;  %v265_v61 = vld [vmem:[%s4610_s7] sm:$0xf]  ;;  %v899_v0 = vld [vmem:[%s4610_s7 + $0x14] sm:$0x1] }
  0x53   : > { %815 = vrot.lane.b32.xlu1 %v692_v5, %s4512_s8  ;;  %v739_v24 = vrot.slane %v737_v15, 5  ;;  %v720_v25 = vrot.slane %v718_v16, 4  ;;  %v723_v26 = vrot.slane %v721_v17, 5  ;;  %v751_v28 = vshll.u32 %v376_v13, 16  ;;  %v901_v1 = vld [vmem:[%s4610_s7 + $0x1c] sm:$0xf] }
  0x54   : > { %813 = vrot.lane.b32.xlu0 %v682_v18, %s4512_s8  ;;  %v716_v29 = vsel %vm4621_vm2, %v711_v19, %v715_v6  ;;  %v701_v30 = vrot.slane %v700_v20, 4  ;;  %v734_v31 = vor.u32 %v733_v21, %v729_v14  ;;  %v755_v32 = vshrl.u32 %v376_v13, 16  ;;  %298 = vst.msk [vmem:[#allocation2] sm:$0xf] %vm297_vm3, %v265_v61  ;;  %v897_v3 = vld [vmem:[%s4610_s7 + $0xc] sm:$0xe] }
  0x55   : > { %v724_v33 = vor.u32 %v723_v26, %v720_v25  ;;  %v753_v34 = vrot.slane %v751_v28, 5  ;;  %v761_v35 = vshll.u32 %v377_v22, 16  ;;  %v742_v36 = vshrl.u32 %v375_v23, 16  ;;  %v268_v4 = vld [vmem:[%s4610_s7 + $0x10] sm:$0xf] }
  0x56   : > { %v706_v38 = vsel %vm4621_vm2, %v701_v30, %v705_v60  ;;  %v735_v39 = vrot.slane %v734_v31, 4  ;;  %v757_v40 = vrot.slane %v755_v32, 4  ;;  %v745_v41 = vshll.u32 %v375_v23, 16  ;;  %v266_v5 = vld [vmem:[%s4610_s7 + $0x4] sm:$0xf] }
  0x57   : > { %819 = vrot.lane.b32.xlu1 %v716_v29, %s4512_s8  ;;  %v725_v42 = vrot.slane %v724_v33, 4  ;;  %v763_v43 = vrot.slane %v761_v35, 5  ;;  %v744_v44 = vrot.slane %v742_v36, 4  ;;  %v995_v49 = vrot.slane %v895_v37, 5  ;;  %301 = vst.msk [vmem:[#allocation2 + $0xc] sm:$0xf] %vm297_vm3, %v268_v4 }
  0x58   : > { %817 = vrot.lane.b32.xlu0 %v706_v38, %s4512_s8  ;;  %v740_v45 = vsel %vm4621_vm2, %v735_v39, %v739_v24  ;;  %v758_v46 = vor.u32 %v757_v40, %v753_v34  ;;  %v747_v47 = vrot.slane %v745_v41, 5  ;;  %v998_v55 = vrot.slane %v896_v48, 5  ;;  %299 = vst.msk [vmem:[#allocation2 + $0x4] sm:$0xf] %vm297_vm3, %v266_v5  ;;  %v902_v12 = vld [vmem:[%s4610_s7 + $0x20] sm:$0x1] }
  0x59   : > { %v730_v50 = vsel %vm4621_vm2, %v725_v42, %v729_v14  ;;  %v997_v59 = vrot.slane %v995_v49, 4  ;;  %v1002_v60 = vrot.slane %v898_v51, 5  ;;  %v3962_v63 = vrot.slane %v894_v54, 9  ;;  %v904_v13 = vld [vmem:[%s4610_s7 + $0x28] sm:$0xf] }
  0x5a   : > { %v759_v52 = vrot.slane %v758_v46, 4  ;;  %v748_v53 = vor.u32 %v747_v47, %v744_v44  ;;  %v1005_v8 = vrot.slane %v899_v0, 5  ;;  %v1009_v9 = vrot.slane %v901_v1, 5  ;;  %v900_v14 = vld [vmem:[%s4610_s7 + $0x18] sm:$0xe] }
  0x5b   : > { %823 = vrot.lane.b32.xlu1 %v740_v45, %s4512_s8  ;;  %v999_v6 = vsel %vm4765_vm6, %v997_v59, %v998_v55  ;;  %v1004_v7 = vrot.slane %v1002_v60, 4  ;;  %v996_v10 = vsel %vm4765_vm6, %v3962_v63, %v995_v49  ;;  %v3963_v11 = vrot.slane %v897_v3, 9  ;;  %v270_v15 = vld [vmem:[%s4610_s7 + $0x1c] sm:$0xf]  ;;  %v269_v16 = vld [vmem:[%s4610_s7 + $0x18] sm:$0xf] }
  0x5c   : > { %821 = vrot.lane.b32.xlu0 %v730_v50, %s4512_s8  ;;  %v764_v57 = vsel %vm4621_vm2, %v759_v52, %v763_v43  ;;  %v749_v58 = vrot.slane %v748_v53, 4  ;;  %303 = vst.msk [vmem:[#allocation2 + $0x14] sm:$0xf] %vm297_vm3, %v270_v15  ;;  %v1011_v18 = vrot.slane %v1009_v9, 4  ;;  %v1012_v19 = vrot.slane %v902_v12, 5 }
  0x5d   : > { %v1006_v17 = vsel %vm4765_vm6, %v1004_v7, %v1005_v8  ;;  %v1016_v20 = vrot.slane %v904_v13, 5  ;;  %302 = vst.msk [vmem:[#allocation2 + $0x10] sm:$0xf] %vm297_vm3, %v269_v16  ;;  %v1003_v21 = vsel %vm4765_vm6, %v3963_v11, %v1002_v60  ;;  %v3964_v22 = vrot.slane %v900_v14, 9  ;;  %v905_v23 = vld [vmem:[%s4610_s7 + $0x2c] sm:$0x1] }
  0x5e   : > { %v754_v2 = vsel %vm4621_vm2, %v749_v58, %v753_v34  ;;  %v907_v24 = vld [vmem:[%s4610_s7 + $0x34] sm:$0xf]  ;;  %v903_v25 = vld [vmem:[%s4610_s7 + $0x24] sm:$0xe]  ;;  %v272_v26 = vld [vmem:[%s4610_s7 + $0x28] sm:$0xf]  ;;  %v1013_v29 = vsel %vm4765_vm6, %v1011_v18, %v1012_v19 }
  0x5f   : > { %827 = vrot.lane.b32.xlu1 %v764_v57, %s4512_s8  ;;  %305 = vst.msk [vmem:[#allocation2 + $0x1c] sm:$0xf] %vm297_vm3, %v272_v26  ;;  %v271_v28 = vld [vmem:[%s4610_s7 + $0x24] sm:$0xf]  ;;  %v1018_v30 = vrot.slane %v1016_v20, 4  ;;  %v1019_v31 = vrot.slane %v905_v23, 5  ;;  %v1010_v34 = vsel %vm4765_vm6, %v3964_v22, %v1009_v9 }
  0x60   : > { %825 = vrot.lane.b32.xlu0 %v754_v2, %s4512_s8  ;;  %v908_v32 = vld [vmem:[%s4610_s7 + $0x38] sm:$0x1]  ;;  %v1023_v33 = vrot.slane %v907_v24, 5  ;;  %304 = vst.msk [vmem:[#allocation2 + $0x18] sm:$0xf] %vm297_vm3, %v271_v28  ;;  %v3965_v35 = vrot.slane %v903_v25, 9 }
  0x61   : > { %v910_v36 = vld [vmem:[%s4610_s7 + $0x40] sm:$0xf]  ;;  %v274_v37 = vld [vmem:[%s4610_s7 + $0x34] sm:$0xf]  ;;  %v906_v38 = vld [vmem:[%s4610_s7 + $0x30] sm:$0xe]  ;;  %v1020_v41 = vsel %vm4765_vm6, %v1018_v30, %v1019_v31 }
  0x62   : > { %307 = vst.msk [vmem:[#allocation2 + $0x24] sm:$0xf] %vm297_vm3, %v274_v37  ;;  %v273_v39 = vld [vmem:[%s4610_s7 + $0x30] sm:$0xf]  ;;  %v911_v40 = vld [vmem:[%s4610_s7 + $0x44] sm:$0x1]  ;;  %v1017_v46 = vsel %vm4765_vm6, %v3965_v35, %v1016_v20 }
  0x63   : > { %1107 = vrot.lane.b32.xlu1 %v999_v6, %s4513_s9  ;;  %306 = vst.msk [vmem:[#allocation2 + $0x20] sm:$0xf] %vm297_vm3, %v273_v39  ;;  %v1025_v42 = vrot.slane %v1023_v33, 4  ;;  %v1026_v43 = vrot.slane %v908_v32, 5  ;;  %v1030_v44 = vrot.slane %v910_v36, 5  ;;  %v3966_v47 = vrot.slane %v906_v38, 9 }
  0x64   : > { %1105 = vrot.lane.b32.xlu0 %v996_v10, %s4513_s9  ;;  %v276_v45 = vld [vmem:[%s4610_s7 + $0x40] sm:$0xf]  ;;  %v913_v48 = vld [vmem:[%s4610_s7 + $0x4c] sm:$0xf]  ;;  %v275_v49 = vld [vmem:[%s4610_s7 + $0x3c] sm:$0xf] }
  0x65   : > { %309 = vst.msk [vmem:[#allocation2 + $0x2c] sm:$0xf] %vm297_vm3, %v276_v45  ;;  %v909_v50 = vld [vmem:[%s4610_s7 + $0x3c] sm:$0xe]  ;;  %308 = vst.msk [vmem:[#allocation2 + $0x28] sm:$0xf] %vm297_vm3, %v275_v49  ;;  %v1027_v53 = vsel %vm4765_vm6, %v1025_v42, %v1026_v43  ;;  %v1024_v58 = vsel %vm4765_vm6, %v3966_v47, %v1023_v33 }
  0x66   : > { %v914_v51 = vld [vmem:[%s4610_s7 + $0x50] sm:$0x1]  ;;  %v278_v52 = vld [vmem:[%s4610_s7 + $0x4c] sm:$0xf]  ;;  %v1032_v54 = vrot.slane %v1030_v44, 4  ;;  %v1033_v55 = vrot.slane %v911_v40, 5 }
  0x67   : > { %1111 = vrot.lane.b32.xlu1 %v1006_v17, %s4513_s9  ;;  %v1037_v56 = vrot.slane %v913_v48, 5  ;;  %311 = vst.msk [vmem:[#allocation2 + $0x34] sm:$0xf] %vm297_vm3, %v278_v52  ;;  %v277_v57 = vld [vmem:[%s4610_s7 + $0x48] sm:$0xf]  ;;  %v3967_v59 = vrot.slane %v909_v50, 9 }
  0x68   : > { %1109 = vrot.lane.b32.xlu0 %v1003_v21, %s4513_s9  ;;  %v4842_v60 = vld [vmem:[%s4610_s7 + $0x58] sm:$0xf]  ;;  %310 = vst.msk [vmem:[#allocation2 + $0x30] sm:$0xf] %vm297_vm3, %v277_v57  ;;  %v912_v63 = vld [vmem:[%s4610_s7 + $0x48] sm:$0xe]  ;;  %v1034_v5 = vsel %vm4765_vm6, %v1032_v54, %v1033_v55 }
  0x69   : > { %v280_v61 = vld [vmem:[%s4610_s7 + $0x58] sm:$0xf]  ;;  %v917_v0 = vld [vmem:[%s4610_s7 + $0x5c] sm:$0x1]  ;;  %v279_v1 = vld [vmem:[%s4610_s7 + $0x54] sm:$0xf]  ;;  %v1031_v10 = vsel %vm4765_vm6, %v3967_v59, %v1030_v44 }
  0x6a   : > { %313 = vst.msk [vmem:[#allocation2 + $0x3c] sm:$0xf] %vm297_vm3, %v280_v61  ;;  %v1040_v2 = vrot.slane %v914_v51, 5  ;;  %312 = vst.msk [vmem:[#allocation2 + $0x38] sm:$0xf] %vm297_vm3, %v279_v1  ;;  %v1039_v6 = vrot.slane %v1037_v56, 4 }
  0x6b   : > { %1115 = vrot.lane.b32.xlu1 %v1013_v29, %s4513_s9  ;;  %v282_v3 = vld [vmem:[%s4610_s7 + $0x64] sm:$0xf]  ;;  %v281_v4 = vld [vmem:[%s4610_s7 + $0x60] sm:$0xf]  ;;  %v1044_v7 = vrot.slane %v4842_v60, 5  ;;  %v3968_v11 = vrot.slane %v912_v63, 9 }
  0x6c   : > { %1113 = vrot.lane.b32.xlu0 %v1010_v34, %s4513_s9  ;;  %315 = vst.msk [vmem:[#allocation2 + $0x44] sm:$0xf] %vm297_vm3, %v282_v3  ;;  %314 = vst.msk [vmem:[#allocation2 + $0x40] sm:$0xf] %vm297_vm3, %v281_v4  ;;  %v284_v8 = vld [vmem:[%s4610_s7 + $0x70] sm:$0xf]  ;;  %v1041_v20 = vsel %vm4765_vm6, %v1039_v6, %v1040_v2 }
  0x6d   : > { %v283_v9 = vld [vmem:[%s4610_s7 + $0x6c] sm:$0xf]  ;;  %v919_v12 = vld [vmem:[%s4610_s7 + $0x64] sm:$0xf]  ;;  %317 = vst.msk [vmem:[#allocation2 + $0x4c] sm:$0xf] %vm297_vm3, %v284_v8  ;;  %v1038_v25 = vsel %vm4765_vm6, %v3968_v11, %v1037_v56 }
  0x6e   : > { %316 = vst.msk [vmem:[#allocation2 + $0x48] sm:$0xf] %vm297_vm3, %v283_v9  ;;  %v286_v13 = vld [vmem:[%s4610_s7 + $0x7c] sm:$0xf]  ;;  %v915_v14 = vld [vmem:[%s4610_s7 + $0x54] sm:$0xe] }
  0x6f   : > { %1119 = vrot.lane.b32.xlu1 %v1020_v41, %s4513_s9  ;;  %v920_v15 = vld [vmem:[%s4610_s7 + $0x68] sm:$0x1]  ;;  %319 = vst.msk [vmem:[#allocation2 + $0x54] sm:$0xf] %vm297_vm3, %v286_v13  ;;  %v285_v16 = vld [vmem:[%s4610_s7 + $0x78] sm:$0xf] }
  0x70   : > { %1117 = vrot.lane.b32.xlu0 %v1017_v46, %s4513_s9  ;;  %v1047_v17 = vrot.slane %v917_v0, 5  ;;  %318 = vst.msk [vmem:[#allocation2 + $0x50] sm:$0xf] %vm297_vm3, %v285_v16  ;;  %v288_v18 = vld [vmem:[%s4610_s7 + $0x88] sm:$0xf]  ;;  %v1046_v21 = vrot.slane %v1044_v7, 4 }
  0x71   : > { %v287_v19 = vld [vmem:[%s4610_s7 + $0x84] sm:$0xf]  ;;  %v1051_v22 = vrot.slane %v919_v12, 5  ;;  %321 = vst.msk [vmem:[#allocation2 + $0x5c] sm:$0xf] %vm297_vm3, %v288_v18  ;;  %v3969_v26 = vrot.slane %v915_v14, 9 }
  0x72   : > { %320 = vst.msk [vmem:[#allocation2 + $0x58] sm:$0xf] %vm297_vm3, %v287_v19  ;;  %v290_v23 = vld [vmem:[%s4610_s7 + $0x94] sm:$0xf]  ;;  %v289_v24 = vld [vmem:[%s4610_s7 + $0x90] sm:$0xf]  ;;  %v1048_v35 = vsel %vm4765_vm6, %v1046_v21, %v1047_v17 }
  0x73   : > { %1123 = vrot.lane.b32.xlu1 %v1027_v53, %s4513_s9  ;;  %v922_v28 = vld [vmem:[%s4610_s7 + $0x70] sm:$0xf]  ;;  %323 = vst.msk [vmem:[#allocation2 + $0x64] sm:$0xf] %vm297_vm3, %v290_v23  ;;  %322 = vst.msk [vmem:[#allocation2 + $0x60] sm:$0xf] %vm297_vm3, %v289_v24  ;;  %v1045_v40 = vsel %vm4765_vm6, %v3969_v26, %v1044_v7 }
  0x74   : > { %1121 = vrot.lane.b32.xlu0 %v1024_v58, %s4513_s9  ;;  %v292_v29 = vld [vmem:[%s4610_s7 + $0xa0] sm:$0xf]  ;;  %v291_v31 = vld [vmem:[%s4610_s7 + $0x9c] sm:$0xf]  ;;  %v1054_v32 = vrot.slane %v920_v15, 5  ;;  %v1053_v36 = vrot.slane %v1051_v22, 4 }
  0x75   : > { %v918_v30 = vld [vmem:[%s4610_s7 + $0x60] sm:$0xe]  ;;  %325 = vst.msk [vmem:[#allocation2 + $0x6c] sm:$0xf] %vm297_vm3, %v292_v29  ;;  %324 = vst.msk [vmem:[#allocation2 + $0x68] sm:$0xf] %vm297_vm3, %v291_v31 }
  0x76   : > { %v294_v33 = vld [vmem:[%s4610_s7 + $0xac] sm:$0xf]  ;;  %v293_v34 = vld [vmem:[%s4610_s7 + $0xa8] sm:$0xf]  ;;  %v1058_v37 = vrot.slane %v922_v28, 5  ;;  %v3970_v41 = vrot.slane %v918_v30, 9  ;;  %v1055_v45 = vsel %vm4765_vm6, %v1053_v36, %v1054_v32 }
  0x77   : > { %1127 = vrot.lane.b32.xlu1 %v1034_v5, %s4513_s9  ;;  %327 = vst.msk [vmem:[#allocation2 + $0x74] sm:$0xf] %vm297_vm3, %v294_v33  ;;  %326 = vst.msk [vmem:[#allocation2 + $0x70] sm:$0xf] %vm297_vm3, %v293_v34  ;;  %v296_v38 = vld [vmem:[%s4610_s7 + $0xb8] sm:$0xf] }
  0x78   : > { %1125 = vrot.lane.b32.xlu0 %v1031_v10, %s4513_s9  ;;  %v295_v39 = vld [vmem:[%s4610_s7 + $0xb4] sm:$0xf]  ;;  %v925_v43 = vld [vmem:[%s4610_s7 + $0x7c] sm:$0xf]  ;;  %329 = vst.msk [vmem:[#allocation2 + $0x7c] sm:$0xf] %vm297_vm3, %v296_v38  ;;  %v1052_v49 = vsel %vm4765_vm6, %v3970_v41, %v1051_v22 }
  0x79   : > { %v923_v42 = vld [vmem:[%s4610_s7 + $0x74] sm:$0x1]  ;;  %328 = vst.msk [vmem:[#allocation2 + $0x78] sm:$0xf] %vm297_vm3, %v295_v39  ;;  %v921_v44 = vld [vmem:[%s4610_s7 + $0x6c] sm:$0xe] }
  0x7a   : > { %v1060_v46 = vrot.slane %v1058_v37, 4  ;;  %v1061_v47 = vrot.slane %v923_v42, 5  ;;  %v1065_v48 = vrot.slane %v925_v43, 5  ;;  %v3971_v50 = vrot.slane %v921_v44, 9  ;;  %v926_v51 = vld [vmem:[%s4610_s7 + $0x80] sm:$0x1] }
  0x7b   : > { %1131 = vrot.lane.b32.xlu1 %v1041_v20, %s4513_s9  ;;  %v928_v52 = vld [vmem:[%s4610_s7 + $0x88] sm:$0xf]  ;;  %v924_v53 = vld [vmem:[%s4610_s7 + $0x78] sm:$0xe]  ;;  %v1068_v56 = vrot.slane %v926_v51, 5  ;;  %s4438_s8 = sshll.u32 %s4520_s6, 4  ;;  %s4439_s8 = int_to_ptr.vmem [resolvable:$false] %s4438_s8 }
  0x7c   : > { %1129 = vrot.lane.b32.xlu0 %v1038_v25, %s4513_s9  ;;  %v1062_v54 = vsel %vm4765_vm6, %v1060_v46, %v1061_v47  ;;  %v1067_v55 = vrot.slane %v1065_v48, 4  ;;  %v1072_v57 = vrot.slane %v928_v52, 5  ;;  %v1059_v58 = vsel %vm4765_vm6, %v3971_v50, %v1058_v37  ;;  %v929_v60 = vld [vmem:[%s4610_s7 + $0x8c] sm:$0x1]  ;;  %v931_v61 = vld [vmem:[%s4610_s7 + $0x94] sm:$0xf] }
  0x7d   : > { %v3972_v59 = vrot.slane %v924_v53, 9  ;;  %v927_v63 = vld [vmem:[%s4610_s7 + $0x84] sm:$0xe]  ;;  %v1075_v2 = vrot.slane %v929_v60, 5  ;;  %v1079_v3 = vrot.slane %v931_v61, 5 }
  0x7e   : > { %v1069_v0 = vsel %vm4765_vm6, %v1067_v55, %v1068_v56  ;;  %v1074_v1 = vrot.slane %v1072_v57, 4  ;;  %v3973_v5 = vrot.slane %v927_v63, 9  ;;  %v932_v6 = vld [vmem:[%s4610_s7 + $0x98] sm:$0x1]  ;;  %v934_v7 = vld [vmem:[%s4610_s7 + $0xa0] sm:$0xf] }
  0x7f   : > { %1135 = vrot.lane.b32.xlu1 %v1048_v35, %s4513_s9  ;;  %v1066_v4 = vsel %vm4765_vm6, %v3972_v59, %v1065_v48  ;;  %v930_v8 = vld [vmem:[%s4610_s7 + $0x90] sm:$0xe]  ;;  %v1081_v10 = vrot.slane %v1079_v3, 4  ;;  %v1082_v11 = vrot.slane %v932_v6, 5  ;;  %v1086_v12 = vrot.slane %v934_v7, 5 }
  0x80   : > { %1133 = vrot.lane.b32.xlu0 %v1045_v40, %s4513_s9  ;;  %v1076_v9 = vsel %vm4765_vm6, %v1074_v1, %v1075_v2  ;;  %v1073_v13 = vsel %vm4765_vm6, %v3973_v5, %v1072_v57  ;;  %v3974_v14 = vrot.slane %v930_v8, 9  ;;  %v935_v15 = vld [vmem:[%s4610_s7 + $0xa4] sm:$0x1]  ;;  %v937_v16 = vld [vmem:[%s4610_s7 + $0xac] sm:$0xf] }
  0x81   : > { %v933_v17 = vld [vmem:[%s4610_s7 + $0x9c] sm:$0xe]  ;;  %v1083_v18 = vsel %vm4765_vm6, %v1081_v10, %v1082_v11  ;;  %v1088_v19 = vrot.slane %v1086_v12, 4  ;;  %v1089_v20 = vrot.slane %v935_v15, 5  ;;  %v1093_v21 = vrot.slane %v937_v16, 5 }
  0x82   : > { %v1080_v22 = vsel %vm4765_vm6, %v3974_v14, %v1079_v3  ;;  %v3975_v23 = vrot.slane %v933_v17, 9  ;;  %v938_v24 = vld [vmem:[%s4610_s7 + $0xb0] sm:$0x1]  ;;  %v940_v25 = vld [vmem:[%s4610_s7 + $0xb8] sm:$0xf] }
  0x83   : > { %1139 = vrot.lane.b32.xlu1 %v1055_v45, %s4513_s9  ;;  %v936_v26 = vld [vmem:[%s4610_s7 + $0xa8] sm:$0xe]  ;;  %v1090_v28 = vsel %vm4765_vm6, %v1088_v19, %v1089_v20  ;;  %v1095_v29 = vrot.slane %v1093_v21, 4  ;;  %v1096_v30 = vrot.slane %v938_v24, 5  ;;  %v1100_v31 = vrot.slane %v940_v25, 5 }
  0x84   : > { %1137 = vrot.lane.b32.xlu0 %v1052_v49, %s4513_s9  ;;  %v1087_v33 = vsel %vm4765_vm6, %v3975_v23, %v1086_v12  ;;  %v3976_v34 = vrot.slane %v936_v26, 9  ;;  %v941_v35 = vld [vmem:[%s4610_s7 + $0xbc] sm:$0x1]  ;;  %v939_v37 = vld [vmem:[%s4610_s7 + $0xb4] sm:$0xe] }
  0x85   : > { %v1097_v38 = vsel %vm4765_vm6, %v1095_v29, %v1096_v30  ;;  %v1102_v39 = vrot.slane %v1100_v31, 4  ;;  %v1103_v40 = vrot.slane %v941_v35, 5  ;;  %v3977_v43 = vrot.slane %v939_v37, 9  ;;  %v3979_v49 = vld [vmem:[%s4610_s7 + $0x10] sm:$0xf] }
  0x86   : > { %v1094_v42 = vsel %vm4765_vm6, %v3976_v34, %v1093_v21  ;;  %v3978_v51 = vld [vmem:[%s4610_s7 + $0xc] sm:$0xf]  ;;  %v3981_v53 = vld [vmem:[%s4610_s7 + $0x1c] sm:$0xf]  ;;  %v3980_v55 = vld [vmem:[%s4610_s7 + $0x18] sm:$0xf] }
  0x87   : > { %1143 = vrot.lane.b32.xlu1 %v1062_v54, %s4513_s9  ;;  %v1104_v45 = vsel %vm4765_vm6, %v1102_v39, %v1103_v40  ;;  %v1101_v47 = vsel %vm4765_vm6, %v3977_v43, %v1100_v31  ;;  %v3983_v57 = vld [vmem:[%s4610_s7 + $0x28] sm:$0xf]  ;;  %v3982_v59 = vld [vmem:[%s4610_s7 + $0x24] sm:$0xf]  ;;  %v3985_v61 = vld [vmem:[%s4610_s7 + $0x34] sm:$0xf] }
  0x88   : > { %1141 = vrot.lane.b32.xlu0 %v1059_v58, %s4513_s9  ;;  %v3987_v2 = vld [vmem:[%s4610_s7 + $0x40] sm:$0xf]  ;;  %v3989_v6 = vld [vmem:[%s4610_s7 + $0x4c] sm:$0xf]  ;;  %v3988_v8 = vld [vmem:[%s4610_s7 + $0x48] sm:$0xf] }
  0x89   : > { %v3991_v10 = vld [vmem:[%s4610_s7 + $0x58] sm:$0xf]  ;;  %v3990_v12 = vld [vmem:[%s4610_s7 + $0x54] sm:$0xf]  ;;  %v3993_v14 = vld [vmem:[%s4610_s7 + $0x64] sm:$0xf] }
  0x8a   : > { %v3992_v16 = vld [vmem:[%s4610_s7 + $0x60] sm:$0xf]  ;;  %v3994_v20 = vld [vmem:[%s4610_s7 + $0x6c] sm:$0xf]  ;;  %v3996_v24 = vld [vmem:[%s4610_s7 + $0x78] sm:$0xf] }
  0x8b   : > { %1147 = vrot.lane.b32.xlu1 %v1069_v0, %s4513_s9  ;;  %v3984_v0 = vld [vmem:[%s4610_s7 + $0x30] sm:$0xf]  ;;  %v3999_v26 = vld [vmem:[%s4610_s7 + $0x88] sm:$0xf]  ;;  %v3998_v29 = vld [vmem:[%s4610_s7 + $0x84] sm:$0xf] }
  0x8c   : > { %1145 = vrot.lane.b32.xlu0 %v1066_v4, %s4513_s9  ;;  %v3986_v4 = vld [vmem:[%s4610_s7 + $0x3c] sm:$0xf]  ;;  %v4001_v31 = vld [vmem:[%s4610_s7 + $0x94] sm:$0xf]  ;;  %v4000_v34 = vld [vmem:[%s4610_s7 + $0x90] sm:$0xf] }
  0x8d   : > { %v4008_v35 = vld [vmem:[%s4610_s7 + $0xc] sm:$0xf]  ;;  %v4003_v39 = vld [vmem:[%s4610_s7 + $0xa0] sm:$0xf] }
  0x8e   : > { %v1474_v40 = vshrl.u32 %v4008_v35, 16 }
  0x8f   : > { %1151 = vrot.lane.b32.xlu1 %v1076_v9, %s4513_s9 }
  0x90   : > { %1149 = vrot.lane.b32.xlu0 %v1073_v13, %s4513_s9 }
  0x93   : > { %1155 = vrot.lane.b32.xlu1 %v1083_v18, %s4513_s9  ;;  %v3995_v18 = vld [vmem:[%s4610_s7 + $0x70] sm:$0xf] }
  0x94   : > { %1153 = vrot.lane.b32.xlu0 %v1080_v22, %s4513_s9  ;;  %v3997_v22 = vld [vmem:[%s4610_s7 + $0x7c] sm:$0xf] }
  0x95   : > { %v770_v32 = vpop.permute.xlu1 %769 }
  0x96   : > { %864 = vst.msk [vmem:[#allocation2 + $0x8] sm:$0xf] %vm861_vm7, %v770_v32  ;;  %v766_v36 = vpop.permute.xlu0 %765  ;;  %v4009_v32 = vld [vmem:[%s4610_s7 + $0x10] sm:$0xf] }
  0x97   : > { %862 = vst.msk [vmem:[#allocation2] sm:$0xf] %vm861_vm7, %v766_v36  ;;  %1159 = vrot.lane.b32.xlu1 %v1090_v28, %s4513_s9  ;;  %v1483_v37 = vshll.u32 %v4009_v32, 16 }
  0x98   : > { %1157 = vrot.lane.b32.xlu0 %v1087_v33, %s4513_s9 }
  0x99   : > { %v772_v41 = vpop.permute.xlu1 %771 }
  0x9a   : > { %865 = vst.msk [vmem:[#allocation2 + $0xc] sm:$0xf] %vm861_vm7, %v772_v41  ;;  %v768_v44 = vpop.permute.xlu0 %767  ;;  %v1477_v41 = vshll.u32 %v4008_v35, 16 }
  0x9b   : > { %863 = vst.msk [vmem:[#allocation2 + $0x4] sm:$0xf] %vm861_vm7, %v768_v44  ;;  %1163 = vrot.lane.b32.xlu1 %v1097_v38, %s4513_s9  ;;  %v1487_v38 = vshrl.u32 %v4009_v32, 16  ;;  %v4002_v44 = vld [vmem:[%s4610_s7 + $0x9c] sm:$0xf] }
  0x9c   : > { %1161 = vrot.lane.b32.xlu0 %v1094_v42, %s4513_s9  ;;  %v4012_v42 = vld [vmem:[%s4610_s7 + $0x1c] sm:$0xf] }
  0x9d   : > { %v776_v46 = vpop.permute.xlu1 %775 }
  0x9e   : > { %867 = vst.msk [vmem:[#allocation2 + $0x14] sm:$0xf] %vm861_vm7, %v776_v46  ;;  %v774_v48 = vpop.permute.xlu0 %773 }
  0x9f   : > { %866 = vst.msk [vmem:[#allocation2 + $0x10] sm:$0xf] %vm861_vm7, %v774_v48  ;;  %1167 = vrot.lane.b32.xlu1 %v1104_v45, %s4513_s9  ;;  %v4011_v45 = vld [vmem:[%s4610_s7 + $0x18] sm:$0xf]  ;;  %v4014_v48 = vld [vmem:[%s4610_s7 + $0x24] sm:$0xf] }
  0xa0   : > { %1165 = vrot.lane.b32.xlu0 %v1101_v47, %s4513_s9  ;;  %v4015_v47 = vld [vmem:[%s4610_s7 + $0x28] sm:$0xf] }
  0xa1   : > { %v780_v50 = vpop.permute.xlu1 %779 }
  0xa2   : > { %869 = vst.msk [vmem:[#allocation2 + $0x1c] sm:$0xf] %vm861_vm7, %v780_v50  ;;  %v778_v52 = vpop.permute.xlu0 %777  ;;  %v5068_v50 = vrot.slane %v1483_v37, 5 }
  0xa3   : > { %868 = vst.msk [vmem:[#allocation2 + $0x18] sm:$0xf] %vm861_vm7, %v778_v52  ;;  %1297 = vrot.lane.b32.xlu1 %v3979_v49, %s4514_s10  ;;  %v4005_v49 = vld [vmem:[%s4610_s7 + $0xac] sm:$0xf]  ;;  %v1507_v52 = vshll.u32 %v4012_v42, 16 }
  0xa4   : > { %1295 = vrot.lane.b32.xlu0 %v3978_v51, %s4514_s10  ;;  %v1489_v51 = vrot.slane %v1487_v38, 4 }
  0xa5   : > { %v784_v54 = vpop.permute.xlu1 %783 }
  0xa6   : > { %871 = vst.msk [vmem:[#allocation2 + $0x24] sm:$0xf] %vm861_vm7, %v784_v54  ;;  %v782_v56 = vpop.permute.xlu0 %781  ;;  %v4010_v54 = vld [vmem:[%s4610_s7 + $0x14] sm:$0x1] }
  0xa7   : > { %870 = vst.msk [vmem:[#allocation2 + $0x20] sm:$0xf] %vm861_vm7, %v782_v56  ;;  %1301 = vrot.lane.b32.xlu1 %v3981_v53, %s4514_s10  ;;  %v1511_v53 = vshrl.u32 %v4012_v42, 16  ;;  %v1479_v56 = vrot.slane %v1477_v41, 5 }
  0xa8   : > { %1299 = vrot.lane.b32.xlu0 %v3980_v55, %s4514_s10  ;;  %v1476_v55 = vrot.slane %v1474_v40, 4 }
  0xa9   : > { %v788_v58 = vpop.permute.xlu1 %787 }
  0xaa   : > { %873 = vst.msk [vmem:[#allocation2 + $0x2c] sm:$0xf] %vm861_vm7, %v788_v58  ;;  %v786_v60 = vpop.permute.xlu0 %785  ;;  %v1501_v58 = vshll.u32 %v4011_v45, 16 }
  0xab   : > { %872 = vst.msk [vmem:[#allocation2 + $0x28] sm:$0xf] %vm861_vm7, %v786_v60  ;;  %1305 = vrot.lane.b32.xlu1 %v3983_v57, %s4514_s10  ;;  %v1498_v57 = vshrl.u32 %v4011_v45, 16  ;;  %v4004_v60 = vld [vmem:[%s4610_s7 + $0xa8] sm:$0xf] }
  0xac   : > { %1303 = vrot.lane.b32.xlu0 %v3982_v59, %s4514_s10 }
  0xad   : > { %v792_v63 = vpop.permute.xlu1 %791 }
  0xae   : > { %875 = vst.msk [vmem:[#allocation2 + $0x34] sm:$0xf] %vm861_vm7, %v792_v63  ;;  %v790_v1 = vpop.permute.xlu0 %789  ;;  %v1535_v63 = vshrl.u32 %v4015_v47, 16 }
  0xaf   : > { %874 = vst.msk [vmem:[#allocation2 + $0x30] sm:$0xf] %vm861_vm7, %v790_v1  ;;  %1309 = vrot.lane.b32.xlu1 %v3985_v61, %s4514_s10  ;;  %v1531_v61 = vshll.u32 %v4015_v47, 16 }
  0xb0   : > { %1307 = vrot.lane.b32.xlu0 %v3984_v0, %s4514_s10  ;;  %v1522_v0 = vshrl.u32 %v4014_v48, 16 }
  0xb1   : > { %v796_v3 = vpop.permute.xlu1 %795 }
  0xb2   : > { %877 = vst.msk [vmem:[#allocation2 + $0x3c] sm:$0xf] %vm861_vm7, %v796_v3  ;;  %v794_v5 = vpop.permute.xlu0 %793  ;;  %v4018_v3 = vld [vmem:[%s4610_s7 + $0x34] sm:$0xf] }
  0xb3   : > { %876 = vst.msk [vmem:[#allocation2 + $0x38] sm:$0xf] %vm861_vm7, %v794_v5  ;;  %1313 = vrot.lane.b32.xlu1 %v3987_v2, %s4514_s10  ;;  %v1525_v2 = vshll.u32 %v4014_v48, 16  ;;  %v1490_v5 = vor.u32 %v1489_v51, %v5068_v50 }
  0xb4   : > { %1311 = vrot.lane.b32.xlu0 %v3986_v4, %s4514_s10  ;;  %v4007_v4 = vld [vmem:[%s4610_s7 + $0xb8] sm:$0xf] }
  0xb5   : > { %v800_v7 = vpop.permute.xlu1 %799 }
  0xb6   : > { %879 = vst.msk [vmem:[#allocation2 + $0x44] sm:$0xf] %vm861_vm7, %v800_v7  ;;  %v798_v9 = vpop.permute.xlu0 %797  ;;  %v5079_v7 = vrot.slane %v1507_v52, 5 }
  0xb7   : > { %878 = vst.msk [vmem:[#allocation2 + $0x40] sm:$0xf] %vm861_vm7, %v798_v9  ;;  %1317 = vrot.lane.b32.xlu1 %v3989_v6, %s4514_s10  ;;  %v1493_v6 = vshll.u32 %v4010_v54, 16  ;;  %v1480_v9 = vor.u32 %v1479_v56, %v1476_v55 }
  0xb8   : > { %1315 = vrot.lane.b32.xlu0 %v3988_v8, %s4514_s10  ;;  %v4017_v8 = vld [vmem:[%s4610_s7 + $0x30] sm:$0xf] }
  0xb9   : > { %v804_v11 = vpop.permute.xlu1 %803 }
  0xba   : > { %881 = vst.msk [vmem:[#allocation2 + $0x4c] sm:$0xf] %vm861_vm7, %v804_v11  ;;  %v802_v13 = vpop.permute.xlu0 %801  ;;  %v1513_v11 = vrot.slane %v1511_v53, 4 }
  0xbb   : > { %880 = vst.msk [vmem:[#allocation2 + $0x48] sm:$0xf] %vm861_vm7, %v802_v13  ;;  %1321 = vrot.lane.b32.xlu1 %v3991_v10, %s4514_s10  ;;  %v4013_v10 = vld [vmem:[%s4610_s7 + $0x20] sm:$0x1]  ;;  %v1503_v13 = vrot.slane %v1501_v58, 5 }
  0xbc   : > { %1319 = vrot.lane.b32.xlu0 %v3990_v12, %s4514_s10  ;;  %v1500_v12 = vrot.slane %v1498_v57, 4  ;;  %v1514_v32 = vor.u32 %v1513_v11, %v5079_v7 }
  0xbd   : > { %v808_v15 = vpop.permute.xlu1 %807 }
  0xbe   : > { %883 = vst.msk [vmem:[#allocation2 + $0x54] sm:$0xf] %vm861_vm7, %v808_v15  ;;  %v806_v17 = vpop.permute.xlu0 %805  ;;  %v4006_v15 = vld [vmem:[%s4610_s7 + $0xb4] sm:$0xf]  ;;  %v1504_v37 = vor.u32 %v1503_v13, %v1500_v12  ;;  %v1515_v53 = vrot.slane %v1514_v32, 4 }
  0xbf   : > { %882 = vst.msk [vmem:[#allocation2 + $0x50] sm:$0xf] %vm861_vm7, %v806_v17  ;;  %1325 = vrot.lane.b32.xlu1 %v3993_v14, %s4514_s10  ;;  %v1537_v17 = vrot.slane %v1535_v63, 4 }
  0xc0   : > { %1323 = vrot.lane.b32.xlu0 %v3992_v16, %s4514_s10  ;;  %v5092_v16 = vrot.slane %v1531_v61, 5  ;;  %v1505_v57 = vrot.slane %v1504_v37, 4 }
  0xc1   : > { %v812_v19 = vpop.permute.xlu1 %811 }
  0xc2   : > { %885 = vst.msk [vmem:[#allocation2 + $0x5c] sm:$0xf] %vm861_vm7, %v812_v19  ;;  %v810_v21 = vpop.permute.xlu0 %809  ;;  %v1555_v19 = vshll.u32 %v4018_v3, 16  ;;  %v1538_v38 = vor.u32 %v1537_v17, %v5092_v16  ;;  %v1510_v13 = vsel %vm4621_vm2, %v1505_v57, %v5079_v7  ;;  %v4036_v17 = vld [vmem:[%s4610_s7 + $0x7c] sm:$0xf] }
  0xc3   : > { %884 = vst.msk [vmem:[#allocation2 + $0x58] sm:$0xf] %vm861_vm7, %v810_v21  ;;  %1329 = vrot.lane.b32.xlu1 %v3995_v18, %s4514_s10  ;;  %v1524_v18 = vrot.slane %v1522_v0, 4  ;;  %v4016_v21 = vld [vmem:[%s4610_s7 + $0x2c] sm:$0x1]  ;;  %v1703_v32 = vshrl.u32 %v4036_v17, 16 }
  0xc4   : > { %1327 = vrot.lane.b32.xlu0 %v3994_v20, %s4514_s10  ;;  %v5105_v40 = vrot.slane %v1555_v19, 5  ;;  %v1539_v63 = vrot.slane %v1538_v38, 4 }
  0xc5   : > { %v816_v23 = vpop.permute.xlu1 %815 }
  0xc6   : > { %887 = vst.msk [vmem:[#allocation2 + $0x64] sm:$0xf] %vm861_vm7, %v816_v23  ;;  %v814_v25 = vpop.permute.xlu0 %813  ;;  %v1559_v23 = vshrl.u32 %v4018_v3, 16  ;;  %v4032_v3 = vld [vmem:[%s4610_s7 + $0x6c] sm:$0xf] }
  0xc7   : > { %886 = vst.msk [vmem:[#allocation2 + $0x60] sm:$0xf] %vm861_vm7, %v814_v25  ;;  %1333 = vrot.lane.b32.xlu1 %v3997_v22, %s4514_s10  ;;  %v1527_v22 = vrot.slane %v1525_v2, 5  ;;  %v1549_v25 = vshll.u32 %v4017_v8, 16 }
  0xc8   : > { %1331 = vrot.lane.b32.xlu0 %v3996_v24, %s4514_s10  ;;  %v1546_v24 = vshrl.u32 %v4017_v8, 16 }
  0xc9   : > { %v820_v28 = vpop.permute.xlu1 %819  ;;  %v1528_v42 = vor.u32 %v1527_v22, %v1524_v18 }
  0xca   : > { %889 = vst.msk [vmem:[#allocation2 + $0x6c] sm:$0xf] %vm861_vm7, %v820_v28  ;;  %v818_v30 = vpop.permute.xlu0 %817  ;;  %v1495_v28 = vrot.slane %v1493_v6, 5  ;;  %v1548_v45 = vrot.slane %v1546_v24, 4 }
  0xcb   : > { %888 = vst.msk [vmem:[#allocation2 + $0x68] sm:$0xf] %vm861_vm7, %v818_v30  ;;  %1337 = vrot.lane.b32.xlu1 %v3999_v26, %s4514_s10  ;;  %v1417_v26 = vld [vmem:[%s5088_s14 + $0x4] sm:$0xf]  ;;  %v1491_v30 = vrot.slane %v1490_v5, 4  ;;  %v1529_v0 = vrot.slane %v1528_v42, 4 }
  0xcc   : > { %1335 = vrot.lane.b32.xlu0 %v3998_v29, %s4514_s10  ;;  %v1517_v29 = vshll.u32 %v4013_v10, 16 }
  0xcd   : > { %v824_v33 = vpop.permute.xlu1 %823  ;;  %v1496_v52 = vsel %vm4621_vm2, %v1491_v30, %v1495_v28  ;;  %v4034_v28 = vld [vmem:[%s4610_s7 + $0x74] sm:$0x1] }
  0xce   : > { %891 = vst.msk [vmem:[#allocation2 + $0x74] sm:$0xf] %vm861_vm7, %v824_v33  ;;  %v822_v36 = vpop.permute.xlu0 %821  ;;  %v4021_v33 = vld [vmem:[%s4610_s7 + $0x40] sm:$0xf]  ;;  %v1519_v54 = vrot.slane %v1517_v29, 5  ;;  %v1685_v42 = vshll.u32 %v4034_v28, 16 }
  0xcf   : > { %890 = vst.msk [vmem:[#allocation2 + $0x70] sm:$0xf] %vm861_vm7, %v822_v36  ;;  %1341 = vrot.lane.b32.xlu1 %v4001_v31, %s4514_s10  ;;  %v1481_v31 = vrot.slane %v1480_v9, 4  ;;  %v1416_v36 = vld [vmem:[%s5088_s14] sm:$0xf]  ;;  %v1579_v47 = vshll.u32 %v4021_v33, 16 }
  0xd0   : > { %1339 = vrot.lane.b32.xlu0 %v4000_v34, %s4514_s10  ;;  %v4020_v34 = vld [vmem:[%s4610_s7 + $0x3c] sm:$0xf]  ;;  %v1583_v48 = vshrl.u32 %v4021_v33, 16  ;;  %v1520_v9 = vsel %vm4621_vm2, %v1515_v53, %v1519_v54 }
  0xd1   : > { %v828_v43 = vpop.permute.xlu1 %827  ;;  %v1573_v51 = vshll.u32 %v4020_v34, 16  ;;  %v1486_v56 = vsel %vm4621_vm2, %v1481_v31, %v5068_v50  ;;  %v4022_v50 = vld [vmem:[%s4610_s7 + $0x44] sm:$0x1]  ;;  %v1699_v31 = vshll.u32 %v4036_v17, 16 }
  0xd2   : > { %893 = vst.msk [vmem:[#allocation2 + $0x7c] sm:$0xf] %vm861_vm7, %v828_v43  ;;  %v826_v46 = vpop.permute.xlu0 %825  ;;  %v4019_v43 = vld [vmem:[%s4610_s7 + $0x38] sm:$0x1]  ;;  %v1585_v5 = vrot.slane %v1583_v48, 4  ;;  %v1589_v22 = vshll.u32 %v4022_v50, 16 }
  0xd3   : > { %892 = vst.msk [vmem:[#allocation2 + $0x78] sm:$0xf] %vm861_vm7, %v826_v46  ;;  %1345 = vrot.lane.b32.xlu1 %v4003_v39, %s4514_s10  ;;  %v1541_v39 = vshll.u32 %v4016_v21, 16  ;;  %v1551_v46 = vrot.slane %v1549_v25, 5  ;;  %v1575_v8 = vrot.slane %v1573_v51, 5 }
  0xd4   : > { %1343 = vrot.lane.b32.xlu0 %v4002_v44, %s4514_s10  ;;  %v1561_v44 = vrot.slane %v1559_v23, 4  ;;  %v4035_v23 = vld [vmem:[%s4610_s7 + $0x78] sm:$0xf]  ;;  %v4037_v51 = vld [vmem:[%s4610_s7 + $0x80] sm:$0x1] }
  0xd5   : > { %v1108_v59 = vpop.permute.xlu1 %1107  ;;  %v1543_v58 = vrot.slane %v1541_v39, 5  ;;  %v1552_v2 = vor.u32 %v1551_v46, %v1548_v45  ;;  %v1701_v45 = vrot.slane %v1699_v31, 5  ;;  %v1705_v46 = vrot.slane %v1703_v32, 4  ;;  %v4058_v32 = vld [vmem:[%s4610_s7 + $0x20] sm:$0x1] }
  0xd6   : > { %1203 = vst.msk [vmem:[#allocation2 + $0x4] sm:$0xf] %vm1201_vm8, %v1108_v59  ;;  %v1106_v1 = vpop.permute.xlu0 %1105  ;;  %v1565_v59 = vshll.u32 %v4019_v43, 16 }
  0xd7   : > { %1202 = vst.msk [vmem:[#allocation2] sm:$0xf] %vm1201_vm8, %v1106_v1  ;;  %1349 = vrot.lane.b32.xlu1 %v4005_v49, %s4514_s10  ;;  %v1570_v49 = vshrl.u32 %v4020_v34, 16  ;;  %v1562_v1 = vor.u32 %v1561_v44, %v5105_v40  ;;  %v1544_v19 = vsel %vm4621_vm2, %v1539_v63, %v1543_v58  ;;  %v1553_v24 = vrot.slane %v1552_v2, 4 }
  0xd8   : > { %1347 = vrot.lane.b32.xlu0 %v4004_v60, %s4514_s10  ;;  %v4033_v60 = vld [vmem:[%s4610_s7 + $0x70] sm:$0xf]  ;;  %v1567_v21 = vrot.slane %v1565_v59, 5  ;;  %v1706_v57 = vor.u32 %v1705_v46, %v1701_v45  ;;  %v1709_v58 = vshll.u32 %v4037_v51, 16 }
  0xd9   : > { %v1112_v14 = vpop.permute.xlu1 %1111  ;;  %v1572_v6 = vrot.slane %v1570_v49, 4  ;;  %v1675_v10 = vshll.u32 %v4033_v60, 16  ;;  %v1679_v11 = vshrl.u32 %v4033_v60, 16  ;;  %v1563_v7 = vrot.slane %v1562_v1, 4 }
  0xda   : > { %1205 = vst.msk [vmem:[#allocation2 + $0xc] sm:$0xf] %vm1201_vm8, %v1112_v14  ;;  %v1110_v20 = vpop.permute.xlu0 %1109  ;;  %v1666_v14 = vshrl.u32 %v4032_v3, 16  ;;  %v1558_v39 = vsel %vm4621_vm2, %v1553_v24, %v5105_v40  ;;  %v1687_v40 = vrot.slane %v1685_v42, 5  ;;  %v1711_v50 = vrot.slane %v1709_v58, 5 }
  0xdb   : > { %1204 = vst.msk [vmem:[#allocation2 + $0x8] sm:$0xf] %vm1201_vm8, %v1110_v20  ;;  %1353 = vrot.lane.b32.xlu1 %v4007_v4, %s4514_s10  ;;  %v5124_v4 = vrot.slane %v1579_v47, 5  ;;  %v1534_v20 = vsel %vm4621_vm2, %v1529_v0, %v5092_v16  ;;  %v1677_v29 = vrot.slane %v1675_v10, 5  ;;  %v1681_v30 = vrot.slane %v1679_v11, 4 }
  0xdc   : > { %1351 = vrot.lane.b32.xlu0 %v4006_v15, %s4514_s10  ;;  %v1669_v15 = vshll.u32 %v4032_v3, 16  ;;  %v1668_v33 = vrot.slane %v1666_v14, 4  ;;  %v1568_v38 = vsel %vm4621_vm2, %v1563_v7, %v1567_v21  ;;  %v4054_v0 = vld [vmem:[%s4610_s7 + $0x10] sm:$0xf]  ;;  %v1707_v3 = vrot.slane %v1706_v57, 4 }
  0xdd   : > { %v1116_v35 = vpop.permute.xlu1 %1115  ;;  %v1586_v25 = vor.u32 %v1585_v5, %v5124_v4  ;;  %v1682_v44 = vor.u32 %v1681_v30, %v1677_v29  ;;  %v4078_v10 = vld [vmem:[%s4610_s7 + $0x70] sm:$0xf]  ;;  %v4079_v21 = vld [vmem:[%s4610_s7 + $0x74] sm:$0x1]  ;;  %v4077_v7 = vld [vmem:[%s4610_s7 + $0x6c] sm:$0xe] }
  0xde   : > { %1207 = vst.msk [vmem:[#allocation2 + $0x14] sm:$0xf] %vm1201_vm8, %v1116_v35  ;;  %v1114_v41 = vpop.permute.xlu0 %1113  ;;  %v1671_v34 = vrot.slane %v1669_v15, 5  ;;  %v1690_v35 = vshrl.u32 %v4035_v23, 16  ;;  %v2137_v17 = vrot.slane %v4078_v10, 5  ;;  %v4106_v31 = vrot.slane %v4077_v7, 9 }
  0xdf   : > { %1206 = vst.msk [vmem:[#allocation2 + $0x10] sm:$0xf] %vm1201_vm8, %v1114_v41  ;;  %1422 = vrot.lane.b32.xlu1 %v1417_v26, %s4514_s10  ;;  %v1576_v26 = vor.u32 %v1575_v8, %v1572_v6  ;;  %v1591_v41 = vrot.slane %v1589_v22, 5  ;;  %v1587_v43 = vrot.slane %v1586_v25, 4  ;;  %v4057_v22 = vld [vmem:[%s4610_s7 + $0x1c] sm:$0xf] }
  0xe0   : > { %1420 = vrot.lane.b32.xlu0 %v1416_v36, %s4514_s10  ;;  %v1693_v36 = vshll.u32 %v4035_v23, 16  ;;  %v1672_v49 = vor.u32 %v1671_v34, %v1668_v33  ;;  %v2139_v25 = vrot.slane %v2137_v17, 4  ;;  %v2088_v28 = vrot.slane %v4057_v22, 5  ;;  %v4056_v34 = vld [vmem:[%s4610_s7 + $0x18] sm:$0xe]  ;;  %s4440_s10 = scalar_lea.vmem %s4439_s8, 8192 }
  0xe1   : > { %v1120_v55 = vpop.permute.xlu1 %1119  ;;  %v1577_v48 = vrot.slane %v1576_v26, 4  ;;  %v2140_v26 = vrot.slane %v4079_v21, 5  ;;  %v4099_v42 = vrot.slane %v4056_v34, 9 }
  0xe2   : > { %1209 = vst.msk [vmem:[#allocation2 + $0x1c] sm:$0xf] %vm1201_vm8, %v1120_v55  ;;  %v1118_v61 = vpop.permute.xlu0 %1117  ;;  %v1695_v53 = vrot.slane %v1693_v36, 5  ;;  %v1592_v55 = vsel %vm4621_vm2, %v1587_v43, %v1591_v41  ;;  %v2090_v36 = vrot.slane %v2088_v28, 4  ;;  %v2138_v41 = vsel %vm4765_vm6, %v4106_v31, %v2137_v17  ;;  %v4082_v43 = vld [vmem:[%s4610_s7 + $0x80] sm:$0x1] }
  0xe3   : > { %1208 = vst.msk [vmem:[#allocation2 + $0x18] sm:$0xf] %vm1201_vm8, %v1118_v61  ;;  %1835 = vrot.lane.b32.xlu1 %v1496_v52, %s4515_s21  ;;  %v1692_v52 = vrot.slane %v1690_v35, 4  ;;  %v1582_v60 = vsel %vm4621_vm2, %v1577_v48, %v5124_v4  ;;  %v1673_v61 = vrot.slane %v1672_v49, 4  ;;  %v2081_v4 = vrot.slane %v4054_v0, 5 }
  0xe4   : > { %1833 = vrot.lane.b32.xlu0 %v1486_v56, %s4515_s21  ;;  %v1683_v56 = vrot.slane %v1682_v44, 4  ;;  %v2141_v35 = vsel %vm4765_vm6, %v2139_v25, %v2140_v26  ;;  %v2147_v48 = vrot.slane %v4082_v43, 5  ;;  %v2089_v51 = vsel %vm4765_vm6, %v4099_v42, %v2088_v28  ;;  %v4115_v0 = vld [vmem:[%s4610_s7 + $0x1c] sm:$0xf]  ;;  %v4146_v17 = vld [vmem:[%s4610_s7 + $0x28] sm:$0xf] }
  0xe5   : > { %v1124_v12 = vpop.permute.xlu1 %1123  ;;  %v1696_v63 = vor.u32 %v1695_v53, %v1692_v52  ;;  %v1678_v6 = vsel %vm4621_vm2, %v1673_v61, %v1677_v29  ;;  %v2083_v14 = vrot.slane %v2081_v4, 4  ;;  %v2596_v28 = vshll.u32 %v4146_v17, 16  ;;  %v4133_v42 = vld [vmem:[%s4610_s7 + $0x88] sm:$0xf] }
  0xe6   : > { %1211 = vst.msk [vmem:[#allocation2 + $0x24] sm:$0xf] %vm1201_vm8, %v1124_v12  ;;  %v1122_v18 = vpop.permute.xlu0 %1121  ;;  %v1688_v2 = vsel %vm4621_vm2, %v1683_v56, %v1687_v40  ;;  %v4053_v12 = vld [vmem:[%s4610_s7 + $0xc] sm:$0xe] }
  0xe7   : > { %1210 = vst.msk [vmem:[#allocation2 + $0x20] sm:$0xf] %vm1201_vm8, %v1122_v18  ;;  %1839 = vrot.lane.b32.xlu1 %v1520_v9, %s4515_s21  ;;  %v1697_v8 = vrot.slane %v1696_v63, 4  ;;  %v4055_v9 = vld [vmem:[%s4610_s7 + $0x14] sm:$0x1] }
  0xe8   : > { %1837 = vrot.lane.b32.xlu0 %v1510_v13, %s4515_s21  ;;  %v1712_v13 = vsel %vm4621_vm2, %v1707_v3, %v1711_v50  ;;  %v2084_v15 = vrot.slane %v4055_v9, 5  ;;  %v4114_v3 = vld [vmem:[%s4610_s7 + $0x18] sm:$0xf] }
  0xe9   : > { %v1128_v16 = vpop.permute.xlu1 %1127  ;;  %v4166_v50 = vld [vmem:[%s4610_s7 + $0x78] sm:$0xf] }
  0xea   : > { %1213 = vst.msk [vmem:[#allocation2 + $0x2c] sm:$0xf] %vm1201_vm8, %v1128_v16  ;;  %v1126_v37 = vpop.permute.xlu0 %1125  ;;  %v2085_v24 = vsel %vm4765_vm6, %v2083_v14, %v2084_v15  ;;  %v4081_v16 = vld [vmem:[%s4610_s7 + $0x7c] sm:$0xf]  ;;  %v2755_v14 = vshrl.u32 %v4166_v50, 16  ;;  %v2758_v15 = vshll.u32 %v4166_v50, 16 }
  0xeb   : > { %1212 = vst.msk [vmem:[#allocation2 + $0x28] sm:$0xf] %vm1201_vm8, %v1126_v37  ;;  %1843 = vrot.lane.b32.xlu1 %v1544_v19, %s4515_s21  ;;  %v1702_v19 = vsel %vm4621_vm2, %v1697_v8, %v1701_v45  ;;  %v2091_v37 = vrot.slane %v4058_v32, 5  ;;  %v4080_v45 = vld [vmem:[%s4610_s7 + $0x78] sm:$0xe]  ;;  %v2600_v32 = vshrl.u32 %v4146_v17, 16 }
  0xec   : > { %1841 = vrot.lane.b32.xlu0 %v1534_v20, %s4515_s21  ;;  %v4098_v20 = vrot.slane %v4053_v12, 9  ;;  %v4107_v52 = vrot.slane %v4080_v45, 9  ;;  %v4144_v8 = vld [vmem:[%s4610_s7 + $0x20] sm:$0x1]  ;;  %v2760_v31 = vrot.slane %v2758_v15, 5 }
  0xed   : > { %v1132_v47 = vpop.permute.xlu1 %1131  ;;  %v2092_v46 = vsel %vm4765_vm6, %v2090_v36, %v2091_v37  ;;  %v2582_v22 = vshll.u32 %v4144_v8, 16  ;;  %v4170_v36 = vld [vmem:[%s4610_s7 + $0x88] sm:$0xf]  ;;  %v4171_v8 = vld [vmem:[%s4610_s7 + $0x8c] sm:$0x1] }
  0xee   : > { %1215 = vst.msk [vmem:[#allocation2 + $0x34] sm:$0xf] %vm1201_vm8, %v1132_v47  ;;  %v1130_v54 = vpop.permute.xlu0 %1129  ;;  %v2082_v30 = vsel %vm4765_vm6, %v4098_v20, %v2081_v4  ;;  %v2798_v15 = vshll.u32 %v4171_v8, 16 }
  0xef   : > { %1214 = vst.msk [vmem:[#allocation2 + $0x30] sm:$0xf] %vm1201_vm8, %v1130_v54  ;;  %1847 = vrot.lane.b32.xlu1 %v1568_v38, %s4515_s21  ;;  %v2144_v38 = vrot.slane %v4081_v16, 5  ;;  %v4143_v54 = vld [vmem:[%s4610_s7 + $0x1c] sm:$0xf] }
  0xf0   : > { %1845 = vrot.lane.b32.xlu0 %v1558_v39, %s4515_s21 }
  0xf1   : > { %v1136_v59 = vpop.permute.xlu1 %1135  ;;  %v2146_v47 = vrot.slane %v2144_v38, 4  ;;  %v2145_v57 = vsel %vm4765_vm6, %v4107_v52, %v2144_v38  ;;  %v2584_v38 = vrot.slane %v2582_v22, 5  ;;  %v2792_v52 = vshrl.u32 %v4170_v36, 16 }
  0xf2   : > { %1217 = vst.msk [vmem:[#allocation2 + $0x3c] sm:$0xf] %vm1201_vm8, %v1136_v59  ;;  %v1134_v1 = vpop.permute.xlu0 %1133  ;;  %v2572_v59 = vshll.u32 %v4143_v54, 16 }
  0xf3   : > { %1216 = vst.msk [vmem:[#allocation2 + $0x38] sm:$0xf] %vm1201_vm8, %v1134_v1  ;;  %1851 = vrot.lane.b32.xlu1 %v1592_v55, %s4515_s21  ;;  %v2148_v40 = vsel %vm4765_vm6, %v2146_v47, %v2147_v48  ;;  %v4142_v55 = vld [vmem:[%s4610_s7 + $0x18] sm:$0xf]  ;;  %v4167_v1 = vld [vmem:[%s4610_s7 + $0x7c] sm:$0xf] }
  0xf4   : > { %1849 = vrot.lane.b32.xlu0 %v1582_v60, %s4515_s21  ;;  %v2576_v60 = vshrl.u32 %v4143_v54, 16  ;;  %v2563_v61 = vshrl.u32 %v4142_v55, 16  ;;  %v2566_v63 = vshll.u32 %v4142_v55, 16  ;;  %v2768_v12 = vshrl.u32 %v4167_v1, 16  ;;  %v4147_v48 = vld [vmem:[%s4610_s7 + $0x2c] sm:$0x1] }
  0xf5   : > { %v1140_v5 = vpop.permute.xlu1 %1139  ;;  %v4132_v54 = vld [vmem:[%s4610_s7 + $0x84] sm:$0xf] }
  0xf6   : > { %1219 = vst.msk [vmem:[#allocation2 + $0x44] sm:$0xf] %vm1201_vm8, %v1140_v5  ;;  %v1138_v11 = vpop.permute.xlu0 %1137  ;;  %v5235_v5 = vrot.slane %v2572_v59, 5  ;;  %v2565_v9 = vrot.slane %v2563_v61, 4  ;;  %v2568_v10 = vrot.slane %v2566_v63, 5  ;;  %v2770_v26 = vrot.slane %v2768_v12, 4 }
  0xf7   : > { %1218 = vst.msk [vmem:[#allocation2 + $0x40] sm:$0xf] %vm1201_vm8, %v1138_v11  ;;  %1867 = vrot.lane.b32.xlu1 %v1688_v2, %s4515_s21  ;;  %v2764_v11 = vshll.u32 %v4167_v1, 16  ;;  %v2606_v63 = vshll.u32 %v4147_v48, 16 }
  0xf8   : > { %1865 = vrot.lane.b32.xlu0 %v1678_v6, %s4515_s21  ;;  %v2578_v6 = vrot.slane %v2576_v60, 4  ;;  %v2569_v7 = vor.u32 %v2568_v10, %v2565_v9 }
  0xf9   : > { %v1144_v18 = vpop.permute.xlu1 %1143  ;;  %v5250_v25 = vrot.slane %v2764_v11, 5  ;;  %v2608_v11 = vrot.slane %v2606_v63, 5 }
  0xfa   : > { %1221 = vst.msk [vmem:[#allocation2 + $0x4c] sm:$0xf] %vm1201_vm8, %v1144_v18  ;;  %v1142_v23 = vpop.permute.xlu0 %1141  ;;  %v2579_v21 = vor.u32 %v2578_v6, %v5235_v5 }
  0xfb   : > { %1220 = vst.msk [vmem:[#allocation2 + $0x48] sm:$0xf] %vm1201_vm8, %v1142_v23  ;;  %1871 = vrot.lane.b32.xlu1 %v1712_v13, %s4515_s21  ;;  %v4131_v13 = vld [vmem:[%s4610_s7 + $0x7c] sm:$0xf]  ;;  %v4145_v23 = vld [vmem:[%s4610_s7 + $0x24] sm:$0xf]  ;;  %v2771_v45 = vor.u32 %v2770_v26, %v5250_v25 }
  0xfc   : > { %1869 = vrot.lane.b32.xlu0 %v1702_v19, %s4515_s21  ;;  %v4130_v19 = vld [vmem:[%s4610_s7 + $0x78] sm:$0xf]  ;;  %v2587_v34 = vshrl.u32 %v4145_v23, 16  ;;  %v2580_v43 = vrot.slane %v2579_v21, 4  ;;  %v4185_v21 = vld [vmem:[%s4610_s7 + $0x1c] sm:$0xf] }
  0xfd   : > { %v1148_v29 = vpop.permute.xlu1 %1147  ;;  %v4209_v26 = vld [vmem:[%s4610_s7 + $0x7c] sm:$0xf] }
  0xfe   : > { %1223 = vst.msk [vmem:[#allocation2 + $0x54] sm:$0xf] %vm1201_vm8, %v1148_v29  ;;  %v1146_v33 = vpop.permute.xlu0 %1145  ;;  %v4117_v29 = vld [vmem:[%s4610_s7 + $0x28] sm:$0xf]  ;;  %v2585_v59 = vsel %vm4621_vm2, %v2580_v43, %v2584_v38 }
  0xff   : > { %1222 = vst.msk [vmem:[#allocation2 + $0x50] sm:$0xf] %vm1201_vm8, %v1146_v33  ;;  %2186 = vrot.lane.b32.xlu1 %v2085_v24, %s4516_s22  ;;  %v4168_v24 = vld [vmem:[%s4610_s7 + $0x80] sm:$0x1]  ;;  %v4116_v33 = vld [vmem:[%s4610_s7 + $0x24] sm:$0xf] }
 0x100   : > { %2184 = vrot.lane.b32.xlu0 %v2082_v30, %s4516_s22  ;;  %v2757_v30 = vrot.slane %v2755_v14, 4 }
 0x101   : > { %v1152_v39 = vpop.permute.xlu1 %1151 }
 0x102   : > { %1225 = vst.msk [vmem:[#allocation2 + $0x5c] sm:$0xf] %vm1201_vm8, %v1152_v39  ;;  %v1150_v44 = vpop.permute.xlu0 %1149  ;;  %v2774_v39 = vshll.u32 %v4168_v24, 16  ;;  %v2761_v47 = vor.u32 %v2760_v31, %v2757_v30  ;;  %v2800_v24 = vrot.slane %v2798_v15, 5  ;;  %v4186_v31 = vld [vmem:[%s4610_s7 + $0x20] sm:$0x1] }
 0x103   : > { %1224 = vst.msk [vmem:[#allocation2 + $0x58] sm:$0xf] %vm1201_vm8, %v1150_v44  ;;  %2218 = vrot.lane.b32.xlu1 %v2141_v35, %s4516_s22  ;;  %v2590_v35 = vshll.u32 %v4145_v23, 16  ;;  %v2570_v44 = vrot.slane %v2569_v7, 4 }
 0x104   : > { %2216 = vrot.lane.b32.xlu0 %v2138_v41, %s4516_s22  ;;  %v4169_v41 = vld [vmem:[%s4610_s7 + $0x84] sm:$0xf]  ;;  %v2776_v61 = vrot.slane %v2774_v39, 5  ;;  %v3170_v39 = vrot.slane %v4186_v31, 5 }
 0x105   : > { %v1156_v49 = vpop.permute.xlu1 %1155  ;;  %v2592_v55 = vrot.slane %v2590_v35, 5  ;;  %v2575_v60 = vsel %vm4621_vm2, %v2570_v44, %v5235_v5  ;;  %v3223_v35 = vrot.slane %v4209_v26, 5 }
 0x106   : > { %1227 = vst.msk [vmem:[#allocation2 + $0x64] sm:$0xf] %vm1201_vm8, %v1156_v49  ;;  %v1154_v53 = vpop.permute.xlu0 %1153  ;;  %v2602_v49 = vrot.slane %v2600_v32, 4 }
 0x107   : > { %1226 = vst.msk [vmem:[#allocation2 + $0x60] sm:$0xf] %vm1201_vm8, %v1154_v53  ;;  %2190 = vrot.lane.b32.xlu1 %v2092_v46, %s4516_s22  ;;  %v5262_v46 = vrot.slane %v2596_v28, 5 }
 0x108   : > { %2188 = vrot.lane.b32.xlu0 %v2089_v51, %s4516_s22  ;;  %v2788_v51 = vshll.u32 %v4170_v36, 16  ;;  %v4208_v36 = vld [vmem:[%s4610_s7 + $0x78] sm:$0xe] }
 0x109   : > { %v1160_v56 = vpop.permute.xlu1 %1159  ;;  %v2603_v1 = vor.u32 %v2602_v49, %v5262_v46  ;;  %v4234_v48 = vrot.slane %v4208_v36, 9  ;;  %v4038_v49 = vld [vmem:[%s4610_s7 + $0x84] sm:$0xf] }
 0x10a   : > { %1229 = vst.msk [vmem:[#allocation2 + $0x6c] sm:$0xf] %vm1201_vm8, %v1160_v56  ;;  %v1158_v58 = vpop.permute.xlu0 %1157  ;;  %v2779_v56 = vshrl.u32 %v4169_v41, 16  ;;  %v1714_v63 = vshrl.u32 %v4038_v49, 16 }
 0x10b   : > { %1228 = vst.msk [vmem:[#allocation2 + $0x68] sm:$0xf] %vm1201_vm8, %v1158_v58  ;;  %2222 = vrot.lane.b32.xlu1 %v2148_v40, %s4516_s22  ;;  %v2589_v40 = vrot.slane %v2587_v34, 4  ;;  %v4210_v34 = vld [vmem:[%s4610_s7 + $0x80] sm:$0x1] }
 0x10c   : > { %2220 = vrot.lane.b32.xlu0 %v2145_v57, %s4516_s22  ;;  %v2782_v57 = vshll.u32 %v4169_v41, 16  ;;  %v2781_v9 = vrot.slane %v2779_v56, 4  ;;  %v5315_v41 = vld [vmem:[%s4610_s7 + $0x28] sm:$0xf]  ;;  %v4187_v56 = vld [vmem:[%s4610_s7 + $0x24] sm:$0xe] }
 0x10d   : > { %v1164_v2 = vpop.permute.xlu1 %1163  ;;  %v2593_v6 = vor.u32 %v2592_v55, %v2589_v40  ;;  %v3174_v40 = vrot.slane %v5315_v41, 5 }
 0x10e   : > { %1231 = vst.msk [vmem:[#allocation2 + $0x74] sm:$0xf] %vm1201_vm8, %v1164_v2  ;;  %v1162_v4 = vpop.permute.xlu0 %1161  ;;  %v5277_v2 = vrot.slane %v2788_v51, 5  ;;  %v2784_v10 = vrot.slane %v2782_v57, 5  ;;  %v4416_v51 = vld [vmem:[%s6228_s2 + $0x8] sm:$0xff]  }
 0x10f   : > { %1230 = vst.msk [vmem:[#allocation2 + $0x70] sm:$0xf] %vm1201_vm8, %v1162_v4  ;;  %2385 = vrot.lane.b32.xlu1 %v4115_v0, %s4517_s24  ;;  %v2772_v0 = vrot.slane %v2771_v45, 4  ;;  %v2762_v4 = vrot.slane %v2761_v47, 4  ;;  %v5335_v57 = vld [vmem:[%s4610_s7 + $0x88] sm:$0xf] }
 0x110   : > { %2383 = vrot.lane.b32.xlu0 %v4114_v3, %s4517_s24  ;;  %v2794_v3 = vrot.slane %v2792_v52, 4  ;;  %v3225_v52 = vrot.slane %v3223_v35, 4 }
 0x111   : > { %v1168_v18 = vpop.permute.xlu1 %1167  ;;  %v2777_v12 = vsel %vm4621_vm2, %v2772_v0, %v2776_v61  ;;  %v1717_v0 = vshll.u32 %v4038_v49, 16  ;;  %v4060_v49 = vld [vmem:[%s4610_s7 + $0x28] sm:$0xf] }
 0x112   : > { %1233 = vst.msk [vmem:[#allocation2 + $0x7c] sm:$0xf] %vm1201_vm8, %v1168_v18  ;;  %v1166_v20 = vpop.permute.xlu0 %1165  ;;  %v2795_v14 = vor.u32 %v2794_v3, %v5277_v2  ;;  %v2767_v18 = vsel %vm4621_vm2, %v2762_v4, %v5250_v25  ;;  %v3167_v25 = vrot.slane %v4185_v21, 5  ;;  %v3224_v3 = vsel %vm4765_vm6, %v4234_v48, %v3223_v35  ;;  %v4041_v4 = vld [vmem:[%s4610_s7 + $0x90] sm:$0xf] }
 0x113   : > { %1232 = vst.msk [vmem:[#allocation2 + $0x78] sm:$0xf] %vm1201_vm8, %v1166_v20  ;;  %2417 = vrot.lane.b32.xlu1 %v4131_v13, %s4517_s24  ;;  %v2604_v13 = vrot.slane %v2603_v1, 4  ;;  %v2785_v20 = vor.u32 %v2784_v10, %v2781_v9  ;;  %v4042_v1 = vld [vmem:[%s4610_s7 + $0x94] sm:$0xf]  ;;  %v3176_v9 = vrot.slane %v3174_v40, 4 }
 0x114   : > { %2415 = vrot.lane.b32.xlu0 %v4130_v19, %s4517_s24  ;;  %v2594_v19 = vrot.slane %v2593_v6, 4  ;;  %v2796_v7 = vrot.slane %v2795_v14, 4  ;;  %v3169_v38 = vrot.slane %v3167_v25, 4  ;;  %v4418_v6 = vld [vmem:[%s6228_s2] sm:$0xff]   ;;  %v4227_v10 = vrot.slane %v4187_v56, 9 }
 0x115   : > { %v1298_v16 = vpop.permute.xlu1 %1297  ;;  %v2609_v23 = vsel %vm4621_vm2, %v2604_v13, %v2608_v11  ;;  %v2786_v30 = vrot.slane %v2785_v20, 4  ;;  %v4213_v11 = vld [vmem:[%s4610_s7 + $0x8c] sm:$0x1]  ;;  %v1747_v14 = vshll.u32 %v4042_v1, 16  ;;  %v1751_v15 = vshrl.u32 %v4042_v1, 16 }
 0x116   : > { %1387 = vst.msk [vmem:[#allocation2 + $0x4] sm:$0xf] %vm1385_vm9, %v1298_v16  ;;  %v1296_v37 = vpop.permute.xlu0 %1295  ;;  %v4184_v16 = vld [vmem:[%s4610_s7 + $0x18] sm:$0xe]  ;;  %v3171_v55 = vsel %vm4765_vm6, %v3169_v38, %v3170_v39  ;;  %v1719_v20 = vrot.slane %v1717_v0, 5  ;;  %v1738_v21 = vshrl.u32 %v4041_v4, 16 }
 0x117   : > { %1386 = vst.msk [vmem:[#allocation2] sm:$0xf] %vm1385_vm9, %v1296_v37  ;;  %2389 = vrot.lane.b32.xlu1 %v4117_v29, %s4517_s24  ;;  %v2599_v29 = vsel %vm4621_vm2, %v2594_v19, %v5262_v46  ;;  %v2801_v37 = vsel %vm4621_vm2, %v2796_v7, %v2800_v24  ;;  %v2791_v44 = vsel %vm4621_vm2, %v2786_v30, %v5277_v2  ;;  %v4226_v45 = vrot.slane %v4184_v16, 9  ;;  %v4039_v46 = vld [vmem:[%s4610_s7 + $0x88] sm:$0xf] }
 0x118   : > { %2387 = vrot.lane.b32.xlu0 %v4116_v33, %s4517_s24  ;;  %v4415_v33 = vld [vmem:[%s6228_s2 + $0x10] ss:$0 sps:$4 sm:$0x33]   ;;  %v1716_v19 = vrot.slane %v1714_v63, 4  ;;  %v4211_v7 = vld [vmem:[%s4610_s7 + $0x84] sm:$0xe] }
 0x119   : > { %v1302_v53 = vpop.permute.xlu1 %1301  ;;  %4347 = vmatprep.subr.msk.bf16.mxu0 %vm3606_vm10, %v4415_v33  ;;  %4348 = vmatprep.subr.msk.bf16.mxu1 %vm3606_vm10, %v4415_v33  ;;  %v3168_v61 = vsel %vm4765_vm6, %v4226_v45, %v3167_v25  ;;  %v3175_v25 = vsel %vm4765_vm6, %v4227_v10, %v3174_v40  ;;  %v1749_v31 = vrot.slane %v1747_v14, 5  ;;  %v4043_v35 = vld [vmem:[%s4610_s7 + $0x98] sm:$0x1]  ;;  %v1740_v36 = vrot.slane %v1738_v21, 4  ;;  %v4083_v10 = vld [vmem:[%s4610_s7 + $0x84] sm:$0xe] }
 0x11a   : > { %1389 = vst.msk [vmem:[#allocation2 + $0xc] sm:$0xf] %vm1385_vm9, %v1302_v53  ;;  %v1300_v58 = vpop.permute.xlu0 %1299  ;;  %v3226_v53 = vrot.slane %v4210_v34, 5  ;;  %v1720_v34 = vor.u32 %v1719_v20, %v1716_v19  ;;  %v2095_v40 = vrot.slane %v4060_v49, 5  ;;  %v4087_v19 = vld [vmem:[%s4610_s7 + $0x94] sm:$0xf] }
 0x11b   : > { %1388 = vst.msk [vmem:[#allocation2 + $0x8] sm:$0xf] %vm1385_vm9, %v1300_v58  ;;  %2421 = vrot.lane.b32.xlu1 %v4133_v42, %s4517_s24  ;;  %v3608_v42 = vsel %vm3606_vm10, %v4415_v33, 0  ;;  %v1723_v58 = vshll.u32 %v4039_v46, 16  ;;  %v4235_v33 = vrot.slane %v4211_v7, 9 }
 0x11c   : > { %2419 = vrot.lane.b32.xlu0 %v4132_v54, %s4517_s24  ;;  %4304 = vmatpush3.bf16.msra.mxu0 %v3608_v42  ;;  %v4189_v54 = vld [vmem:[%s4610_s7 + $0x2c] sm:$0x1]  ;;  %v3227_v8 = vsel %vm4765_vm6, %v3225_v52, %v3226_v53  ;;  %v2097_v0 = vrot.slane %v2095_v40, 4  ;;  %v4062_v21 = vld [vmem:[%s4610_s7 + $0x30] sm:$0xe] }
 0x11d   : > { %v1306_v50 = vpop.permute.xlu1 %1305  ;;  %4344 = vmatpush3.bf16.msra.mxu1 %v3608_v42  ;;  %4305 = vmatprep.subr.bf16.mxu0 %v4416_v51  ;;  %v4119_v49 = vld [vmem:[%s4610_s7 + $0x34] sm:$0xf] }
 0x11e   : > { %1391 = vst.msk [vmem:[#allocation2 + $0x14] sm:$0xf] %vm1385_vm9, %v1306_v50  ;;  %v1304_v5 = vpop.permute.xlu0 %1303  ;;  %4342 = vmatprep.subr.bf16.mxu1 %v4416_v51  ;;  %v3177_v50 = vrot.slane %v4189_v54, 5 }
 0x11f   : > { %1390 = vst.msk [vmem:[#allocation2 + $0x10] sm:$0xf] %vm1385_vm9, %v1304_v5  ;;  %2900 = vrot.lane.b32.xlu1 %v2585_v59, %s4518_s26  ;;  %v1727_v59 = vshrl.u32 %v4039_v46, 16  ;;  %v3230_v5 = vrot.slane %v5335_v57, 5 }
 0x120   : > { %2898 = vrot.lane.b32.xlu0 %v2575_v60, %s4518_s26  ;;  %4306 = vmatpush3.bf16.msra.mxu0 %v4416_v51  ;;  %v3178_v24 = vsel %vm4765_vm6, %v3176_v9, %v3177_v50 }
 0x121   : > { %v1310_v17 = vpop.permute.xlu1 %1309  ;;  %4345 = vmatpush3.bf16.msra.mxu1 %v4416_v51  ;;  %v1729_v13 = vrot.slane %v1727_v59, 4  ;;  %4307 = vmatprep.subr.bf16.mxu0 %v4418_v6  ;;  %v3232_v26 = vrot.slane %v3230_v5, 4  ;;  %v3231_v46 = vsel %vm4765_vm6, %v4235_v33, %v3230_v5  ;;  %v4084_v59 = vld [vmem:[%s4610_s7 + $0x88] sm:$0xf] }
 0x122   : > { %1393 = vst.msk [vmem:[#allocation2 + $0x1c] sm:$0xf] %vm1385_vm9, %v1310_v17  ;;  %v1308_v22 = vpop.permute.xlu0 %1307  ;;  %4343 = vmatprep.subr.bf16.mxu1 %v4418_v6 }
 0x123   : > { %1392 = vst.msk [vmem:[#allocation2 + $0x18] sm:$0xf] %vm1385_vm9, %v1308_v22  ;;  %2932 = vrot.lane.b32.xlu1 %v2777_v12, %s4518_s26  ;;  %v5354_v12 = vrot.slane %v1723_v58, 5  ;;  %v1741_v22 = vshll.u32 %v4041_v4, 16  ;;  %v4061_v58 = vld [vmem:[%s4610_s7 + $0x2c] sm:$0x1] }
 0x124   : > { %2930 = vrot.lane.b32.xlu0 %v2767_v18, %s4518_s26  ;;  %v4040_v18 = vld [vmem:[%s4610_s7 + $0x8c] sm:$0x1]  ;;  %4308 = vmatpush3.bf16.msra.mxu0 %v4418_v6  ;;  %v2098_v1 = vrot.slane %v4061_v58, 5 }
 0x125   : > { %v1314_v28 = vpop.permute.xlu1 %1313  ;;  %4346 = vmatpush3.bf16.msra.mxu1 %v4418_v6  ;;  %v1733_v30 = vshll.u32 %v4040_v18, 16  ;;  %v4085_v6 = vld [vmem:[%s4610_s7 + $0x8c] sm:$0x1]  ;;  %v4064_v18 = vld [vmem:[%s4610_s7 + $0x38] sm:$0x1] }
 0x126   : > { %1395 = vst.msk [vmem:[#allocation2 + $0x24] sm:$0xf] %vm1385_vm9, %v1314_v28  ;;  %v1312_v32 = vpop.permute.xlu0 %1311  ;;  %v3233_v28 = vrot.slane %v4213_v11, 5  ;;  %v2099_v5 = vsel %vm4765_vm6, %v2097_v0, %v2098_v1  ;;  %v2105_v7 = vrot.slane %v4064_v18, 5  ;;  %v4135_v1 = vld [vmem:[%s4610_s7 + $0x94] sm:$0xf] }
 0x127   : > { %1394 = vst.msk [vmem:[#allocation2 + $0x20] sm:$0xf] %vm1385_vm9, %v1312_v32  ;;  %2904 = vrot.lane.b32.xlu1 %v2609_v23, %s4518_s26  ;;  %v1753_v32 = vrot.slane %v1751_v15, 4  ;;  %v1735_v42 = vrot.slane %v1733_v30, 5 }
 0x128   : > { %2902 = vrot.lane.b32.xlu0 %v2599_v29, %s4518_s26  ;;  %v1730_v29 = vor.u32 %v1729_v13, %v5354_v12  ;;  %v3234_v39 = vsel %vm4765_vm6, %v3232_v26, %v3233_v28  ;;  %v4101_v28 = vrot.slane %v4062_v21, 9 }
 0x129   : > { %v1318_v43 = vpop.permute.xlu1 %1317 }
 0x12a   : > { %1397 = vst.msk [vmem:[#allocation2 + $0x2c] sm:$0xf] %vm1385_vm9, %v1318_v43  ;;  %v1316_v47 = vpop.permute.xlu0 %1315  ;;  %v1731_v41 = vrot.slane %v1730_v29, 4  ;;  %v1754_v43 = vor.u32 %v1753_v32, %v1749_v31  ;;  %v4088_v29 = vld [vmem:[%s4610_s7 + $0x98] sm:$0x1] }
 0x12b   : > { %1396 = vst.msk [vmem:[#allocation2 + $0x28] sm:$0xf] %vm1385_vm9, %v1316_v47  ;;  %2936 = vrot.lane.b32.xlu1 %v2801_v37, %s4518_s26  ;;  %v1743_v37 = vrot.slane %v1741_v22, 5  ;;  %v1721_v47 = vrot.slane %v1720_v34, 4  ;;  %v2161_v33 = vrot.slane %v4088_v29, 5 }
 0x12c   : > { %2934 = vrot.lane.b32.xlu0 %v2791_v44, %s4518_s26  ;;  %v1757_v44 = vshll.u32 %v4043_v35, 16  ;;  %v1736_v52 = vsel %vm4621_vm2, %v1731_v41, %v1735_v42  ;;  %v1755_v53 = vrot.slane %v1754_v43, 4 }
 0x12d   : > { %v1322_v60 = vpop.permute.xlu1 %1321  ;;  %v1744_v48 = vor.u32 %v1743_v37, %v1740_v36  ;;  %v1726_v56 = vsel %vm4621_vm2, %v1721_v47, %v5354_v12  ;;  %v2154_v12 = vrot.slane %v4085_v6, 5 }
 0x12e   : > { %1399 = vst.msk [vmem:[#allocation2 + $0x34] sm:$0xf] %vm1385_vm9, %v1322_v60  ;;  %v1320_v2 = vpop.permute.xlu0 %1319  ;;  %v1759_v54 = vrot.slane %v1757_v44, 5 }
 0x12f   : > { %1398 = vst.msk [vmem:[#allocation2 + $0x30] sm:$0xf] %vm1385_vm9, %v1320_v2  ;;  %3265 = vrot.lane.b32.xlu1 %v3171_v55, %s4519_s11  ;;  %v1745_v57 = vrot.slane %v1744_v48, 4  ;;  %v2151_v2 = vrot.slane %v4084_v59, 5  ;;  %v4150_v59 = vld [vmem:[%s4610_s7 + $0x38] sm:$0x1] }
 0x130   : > { %3263 = vrot.lane.b32.xlu0 %v3168_v61, %s4519_s11  ;;  %v4059_v61 = vld [vmem:[%s4610_s7 + $0x24] sm:$0xe]  ;;  %v1760_v63 = vsel %vm4621_vm2, %v1755_v53, %v1759_v54  ;;  %v4118_v54 = vld [vmem:[%s4610_s7 + $0x30] sm:$0xf] }
 0x131   : > { %v1326_v17 = vpop.permute.xlu1 %1325  ;;  %v1750_v50 = vsel %vm4621_vm2, %v1745_v57, %v1749_v31  ;;  %v4100_v4 = vrot.slane %v4059_v61, 9  ;;  %v2153_v11 = vrot.slane %v2151_v2, 4  ;;  %v4086_v31 = vld [vmem:[%s4610_s7 + $0x90] sm:$0xe] }
 0x132   : > { %1401 = vst.msk [vmem:[#allocation2 + $0x3c] sm:$0xf] %vm1385_vm9, %v1326_v17  ;;  %v1324_v23 = vpop.permute.xlu0 %1323  ;;  %v4108_v17 = vrot.slane %v4083_v10, 9  ;;  %v4109_v36 = vrot.slane %v4086_v31, 9  ;;  %v4151_v10 = vld [vmem:[%s4610_s7 + $0x3c] sm:$0xf] }
 0x133   : > { %1400 = vst.msk [vmem:[#allocation2 + $0x38] sm:$0xf] %vm1385_vm9, %v1324_v23  ;;  %3297 = vrot.lane.b32.xlu1 %v3227_v8, %s4519_s11  ;;  %v4063_v8 = vld [vmem:[%s4610_s7 + $0x34] sm:$0xf]  ;;  %v2096_v15 = vsel %vm4765_vm6, %v4100_v4, %v2095_v40  ;;  %v2155_v22 = vsel %vm4765_vm6, %v2153_v11, %v2154_v12  ;;  %v2635_v21 = vshrl.u32 %v4151_v10, 16 }
 0x134   : > { %3295 = vrot.lane.b32.xlu0 %v3224_v3, %s4519_s11  ;;  %v2102_v13 = vrot.slane %v4063_v8, 5  ;;  %v2152_v26 = vsel %vm4765_vm6, %v4108_v17, %v2151_v2  ;;  %v2630_v8 = vshll.u32 %v4150_v59, 16 }
 0x135   : > { %v1330_v16 = vpop.permute.xlu1 %1329 }
 0x136   : > { %1403 = vst.msk [vmem:[#allocation2 + $0x44] sm:$0xf] %vm1385_vm9, %v1330_v16  ;;  %v1328_v38 = vpop.permute.xlu0 %1327  ;;  %v2104_v23 = vrot.slane %v2102_v13, 4  ;;  %v2103_v35 = vsel %vm4765_vm6, %v4101_v28, %v2102_v13  ;;  %v4137_v28 = vld [vmem:[%s4610_s7 + $0xa0] sm:$0xf] }
 0x137   : > { %1402 = vst.msk [vmem:[#allocation2 + $0x40] sm:$0xf] %vm1385_vm9, %v1328_v38  ;;  %3269 = vrot.lane.b32.xlu1 %v3178_v24, %s4519_s11  ;;  %v2158_v24 = vrot.slane %v4087_v19, 5  ;;  %v4149_v38 = vld [vmem:[%s4610_s7 + $0x34] sm:$0xf] }
 0x138   : > { %3267 = vrot.lane.b32.xlu0 %v3175_v25, %s4519_s11  ;;  %v2106_v32 = vsel %vm4765_vm6, %v2104_v23, %v2105_v7  ;;  %v4176_v23 = vld [vmem:[%s4610_s7 + $0xa0] sm:$0xf] }
 0x139   : > { %v1334_v45 = vpop.permute.xlu1 %1333  ;;  %v2160_v16 = vrot.slane %v2158_v24, 4  ;;  %v2159_v43 = vsel %vm4765_vm6, %v4109_v36, %v2158_v24  ;;  %v2840_v36 = vshrl.u32 %v4176_v23, 16 }
 0x13a   : > { %1405 = vst.msk [vmem:[#allocation2 + $0x4c] sm:$0xf] %vm1385_vm9, %v1334_v45  ;;  %v1332_v51 = vpop.permute.xlu0 %1331  ;;  %v2620_v45 = vshll.u32 %v4149_v38, 16 }
 0x13b   : > { %1404 = vst.msk [vmem:[#allocation2 + $0x48] sm:$0xf] %vm1385_vm9, %v1332_v51  ;;  %3301 = vrot.lane.b32.xlu1 %v3234_v39, %s4519_s11  ;;  %v4148_v39 = vld [vmem:[%s4610_s7 + $0x30] sm:$0xf]  ;;  %v2162_v41 = vsel %vm4765_vm6, %v2160_v16, %v2161_v33  ;;  %v4173_v51 = vld [vmem:[%s4610_s7 + $0x94] sm:$0xf] }
 0x13c   : > { %3299 = vrot.lane.b32.xlu0 %v3231_v46, %s4519_s11  ;;  %v2624_v46 = vshrl.u32 %v4149_v38, 16  ;;  %v2611_v47 = vshrl.u32 %v4148_v39, 16  ;;  %v2614_v48 = vshll.u32 %v4148_v39, 16  ;;  %v2816_v61 = vshrl.u32 %v4173_v51, 16  ;;  %v4136_v16 = vld [vmem:[%s4610_s7 + $0x9c] sm:$0xf] }
 0x13d   : > { %v1338_v55 = vpop.permute.xlu1 %1337  ;;  %v4153_v38 = vld [vmem:[%s4610_s7 + $0x44] sm:$0x1]  ;;  %v2637_v39 = vrot.slane %v2635_v21, 4  ;;  %v4194_v21 = vld [vmem:[%s4610_s7 + $0x40] sm:$0xf] }
 0x13e   : > { %1407 = vst.msk [vmem:[#allocation2 + $0x54] sm:$0xf] %vm1385_vm9, %v1338_v55  ;;  %v1336_v60 = vpop.permute.xlu0 %1335  ;;  %v5448_v55 = vrot.slane %v2620_v45, 5  ;;  %v2613_v57 = vrot.slane %v2611_v47, 4  ;;  %v2616_v58 = vrot.slane %v2614_v48, 5  ;;  %v2818_v11 = vrot.slane %v2816_v61, 4 }
 0x13f   : > { %1406 = vst.msk [vmem:[#allocation2 + $0x50] sm:$0xf] %vm1385_vm9, %v1336_v60  ;;  %1875 = vrot.lane.b32.xlu1 %v1736_v52, %s4515_s21  ;;  %v4172_v52 = vld [vmem:[%s4610_s7 + $0x90] sm:$0xf]  ;;  %v2812_v60 = vshll.u32 %v4173_v51, 16  ;;  %v2654_v51 = vshll.u32 %v4153_v38, 16 }
 0x140   : > { %1873 = vrot.lane.b32.xlu0 %v1726_v56, %s4515_s21  ;;  %v2626_v56 = vrot.slane %v2624_v46, 4  ;;  %v2806_v0 = vshll.u32 %v4172_v52, 16 }
 0x141   : > { %v1342_v3 = vpop.permute.xlu1 %1341 }
 0x142   : > { %1409 = vst.msk [vmem:[#allocation2 + $0x5c] sm:$0xf] %vm1385_vm9, %v1342_v3  ;;  %v1340_v9 = vpop.permute.xlu0 %1339  ;;  %v4134_v3 = vld [vmem:[%s4610_s7 + $0x90] sm:$0xf]  ;;  %v2627_v6 = vor.u32 %v2626_v56, %v5448_v55  ;;  %v2808_v13 = vrot.slane %v2806_v0, 5 }
 0x143   : > { %1408 = vst.msk [vmem:[#allocation2 + $0x58] sm:$0xf] %vm1385_vm9, %v1340_v9  ;;  %1879 = vrot.lane.b32.xlu1 %v1760_v63, %s4515_s21  ;;  %v2803_v63 = vshrl.u32 %v4172_v52, 16  ;;  %v2617_v9 = vor.u32 %v2616_v58, %v2613_v57  ;;  %v4177_v57 = vld [vmem:[%s4610_s7 + $0xa4] sm:$0x1] }
 0x144   : > { %1877 = vrot.lane.b32.xlu0 %v1750_v50, %s4515_s21  ;;  %v4152_v50 = vld [vmem:[%s4610_s7 + $0x40] sm:$0xf]  ;;  %v2628_v24 = vrot.slane %v2627_v6, 4 }
 0x145   : > { %v1346_v14 = vpop.permute.xlu1 %1345  ;;  %v2805_v12 = vrot.slane %v2803_v63, 4  ;;  %v2644_v17 = vshll.u32 %v4152_v50, 16  ;;  %v2648_v18 = vshrl.u32 %v4152_v50, 16  ;;  %v2618_v29 = vrot.slane %v2617_v9, 4 }
 0x146   : > { %1411 = vst.msk [vmem:[#allocation2 + $0x64] sm:$0xf] %vm1385_vm9, %v1346_v14  ;;  %v1344_v20 = vpop.permute.xlu0 %1343  ;;  %v4121_v14 = vld [vmem:[%s4610_s7 + $0x40] sm:$0xf]  ;;  %v2656_v63 = vrot.slane %v2654_v51, 5 }
 0x147   : > { %1410 = vst.msk [vmem:[#allocation2 + $0x60] sm:$0xf] %vm1385_vm9, %v1344_v20  ;;  %2194 = vrot.lane.b32.xlu1 %v2099_v5, %s4516_s22  ;;  %v5462_v5 = vrot.slane %v2812_v60, 5  ;;  %v4120_v20 = vld [vmem:[%s4610_s7 + $0x3c] sm:$0xf]  ;;  %v5477_v33 = vrot.slane %v2644_v17, 5  ;;  %v2623_v46 = vsel %vm4621_vm2, %v2618_v29, %v5448_v55 }
 0x148   : > { %2192 = vrot.lane.b32.xlu0 %v2096_v15, %s4516_s22  ;;  %v4174_v15 = vld [vmem:[%s4610_s7 + $0x98] sm:$0x1]  ;;  %v5515_v17 = vld [vmem:[%s4610_s7 + $0x94] sm:$0xf] }
 0x149   : > { %v1350_v25 = vpop.permute.xlu1 %1349  ;;  %v2822_v31 = vshll.u32 %v4174_v15, 16  ;;  %v4192_v15 = vld [vmem:[%s4610_s7 + $0x38] sm:$0x1] }
 0x14a   : > { %1413 = vst.msk [vmem:[#allocation2 + $0x6c] sm:$0xf] %vm1385_vm9, %v1350_v25  ;;  %v1348_v30 = vpop.permute.xlu0 %1347  ;;  %v2632_v25 = vrot.slane %v2630_v8, 5 }
 0x14b   : > { %1412 = vst.msk [vmem:[#allocation2 + $0x68] sm:$0xf] %vm1385_vm9, %v1348_v30  ;;  %2226 = vrot.lane.b32.xlu1 %v2155_v22, %s4516_s22  ;;  %v2638_v22 = vshll.u32 %v4151_v10, 16  ;;  %v2819_v30 = vor.u32 %v2818_v11, %v5462_v5  ;;  %v2824_v48 = vrot.slane %v2822_v31, 5  ;;  %v4214_v31 = vld [vmem:[%s4610_s7 + $0x90] sm:$0xe] }
 0x14c   : > { %2224 = vrot.lane.b32.xlu0 %v2152_v26, %s4516_s22  ;;  %v4175_v26 = vld [vmem:[%s4610_s7 + $0x9c] sm:$0xf]  ;;  %v2633_v45 = vsel %vm4621_vm2, %v2628_v24, %v2632_v25  ;;  %v4045_v24 = vld [vmem:[%s4610_s7 + $0xa0] sm:$0xf] }
 0x14d   : > { %v1354_v34 = vpop.permute.xlu1 %1353  ;;  %v2820_v47 = vrot.slane %v2819_v30, 4  ;;  %v4044_v25 = vld [vmem:[%s4610_s7 + $0x9c] sm:$0xf]  ;;  %v4216_v30 = vld [vmem:[%s4610_s7 + $0x98] sm:$0x1] }
 0x14e   : > { %1415 = vst.msk [vmem:[#allocation2 + $0x74] sm:$0xf] %vm1385_vm9, %v1354_v34  ;;  %v1352_v37 = vpop.permute.xlu0 %1351  ;;  %v2650_v34 = vrot.slane %v2648_v18, 4  ;;  %v1762_v38 = vshrl.u32 %v4044_v25, 16 }
 0x14f   : > { %1414 = vst.msk [vmem:[#allocation2 + $0x70] sm:$0xf] %vm1385_vm9, %v1352_v37  ;;  %2198 = vrot.lane.b32.xlu1 %v2106_v32, %s4516_s22  ;;  %v2809_v32 = vor.u32 %v2808_v13, %v2805_v12  ;;  %v2825_v60 = vsel %vm4621_vm2, %v2820_v47, %v2824_v48  ;;  %v4024_v47 = vld [vmem:[%s4610_s7 + $0x4c] sm:$0xf] }
 0x150   : > { %2196 = vrot.lane.b32.xlu0 %v2103_v35, %s4516_s22  ;;  %v2836_v35 = vshll.u32 %v4176_v23, 16  ;;  %v3184_v23 = vrot.slane %v4192_v15, 5 }
 0x151   : > { %v1423_v42 = vpop.permute.xlu1 %1422 }
 0x152   : > { %1427 = vst.msk [vmem:[#allocation2 + $0x7c] sm:$0xf] %vm1385_vm9, %v1423_v42  ;;  %v1421_v44 = vpop.permute.xlu0 %1420  ;;  %v2827_v42 = vshrl.u32 %v4175_v26, 16  ;;  %v5490_v52 = vrot.slane %v2836_v35, 5  ;;  %v5539_v35 = vld [vmem:[%s4610_s7 + $0xa0] sm:$0xf] }
 0x153   : > { %1426 = vst.msk [vmem:[#allocation2 + $0x78] sm:$0xf] %vm1385_vm9, %v1421_v44  ;;  %2230 = vrot.lane.b32.xlu1 %v2162_v41, %s4516_s22  ;;  %v2640_v41 = vrot.slane %v2638_v22, 5 }
 0x154   : > { %2228 = vrot.lane.b32.xlu0 %v2159_v43, %s4516_s22  ;;  %v2830_v43 = vshll.u32 %v4175_v26, 16  ;;  %v2829_v58 = vrot.slane %v2827_v42, 4 }
 0x155   : > { %v1836_v53 = vpop.permute.xlu1 %1835  ;;  %v2641_v56 = vor.u32 %v2640_v41, %v2637_v39  ;;  %v1765_v39 = vshll.u32 %v4044_v25, 16 }
 0x156   : > { %1925 = vst.msk [vmem:[#allocation2 + $0x4] sm:$0xf] %vm1923_vm11, %v1836_v53  ;;  %v1834_v40 = vpop.permute.xlu0 %1833  ;;  %v2842_v53 = vrot.slane %v2840_v36, 4  ;;  %v2832_v59 = vrot.slane %v2830_v43, 5  ;;  %v1771_v36 = vshll.u32 %v4045_v24, 16  ;;  %v3240_v43 = vrot.slane %v4216_v30, 5 }
 0x157   : > { %1924 = vst.msk [vmem:[#allocation2] sm:$0xf] %vm1923_vm11, %v1834_v40  ;;  %2393 = vrot.lane.b32.xlu1 %v4119_v49, %s4517_s24  ;;  %v2651_v49 = vor.u32 %v2650_v34, %v5477_v33  ;;  %v2810_v40 = vrot.slane %v2809_v32, 4  ;;  %v4193_v34 = vld [vmem:[%s4610_s7 + $0x3c] sm:$0xe] }
 0x158   : > { %2391 = vrot.lane.b32.xlu0 %v4118_v54, %s4517_s24  ;;  %v2843_v0 = vor.u32 %v2842_v53, %v5490_v52  ;;  %v2833_v6 = vor.u32 %v2832_v59, %v2829_v58  ;;  %v3244_v53 = vrot.slane %v5539_v35, 5  ;;  %v1764_v58 = vrot.slane %v1762_v38, 4  ;;  %v4049_v38 = vld [vmem:[%s4610_s7 + $0xb0] sm:$0x1] }
 0x159   : > { %v1840_v2 = vpop.permute.xlu1 %1839  ;;  %v2652_v61 = vrot.slane %v2651_v49, 4  ;;  %v2815_v50 = vsel %vm4621_vm2, %v2810_v40, %v5462_v5  ;;  %v4219_v40 = vld [vmem:[%s4610_s7 + $0xa4] sm:$0x1]  ;;  %v1767_v59 = vrot.slane %v1765_v39, 5 }
 0x15a   : > { %1927 = vst.msk [vmem:[#allocation2 + $0xc] sm:$0xf] %vm1923_vm11, %v1840_v2  ;;  %v1838_v4 = vpop.permute.xlu0 %1837  ;;  %v4191_v2 = vld [vmem:[%s4610_s7 + $0x34] sm:$0xf]  ;;  %v2844_v11 = vrot.slane %v2843_v0, 4  ;;  %v1607_v0 = vshrl.u32 %v4024_v47, 16 }
 0x15b   : > { %1926 = vst.msk [vmem:[#allocation2 + $0x8] sm:$0xf] %vm1923_vm11, %v1838_v4  ;;  %2425 = vrot.lane.b32.xlu1 %v4135_v1, %s4517_s24  ;;  %v2846_v1 = vshll.u32 %v4177_v57, 16  ;;  %v2642_v4 = vrot.slane %v2641_v56, 4  ;;  %v3181_v9 = vrot.slane %v4191_v2, 5  ;;  %v2657_v10 = vsel %vm4621_vm2, %v2652_v61, %v2656_v63 }
 0x15c   : > { %2423 = vrot.lane.b32.xlu0 %v4134_v3, %s4517_s24  ;;  %v5553_v56 = vrot.slane %v1771_v36, 5  ;;  %v4046_v61 = vld [vmem:[%s4610_s7 + $0xa4] sm:$0x1]  ;;  %v1603_v63 = vshll.u32 %v4024_v47, 16  ;;  %v1768_v15 = vor.u32 %v1767_v59, %v1764_v58  ;;  %v1805_v47 = vshll.u32 %v4049_v38, 16 }
 0x15d   : > { %v1844_v19 = vpop.permute.xlu1 %1843  ;;  %v2848_v5 = vrot.slane %v2846_v1, 5  ;;  %v2647_v13 = vsel %vm4621_vm2, %v2642_v4, %v5477_v33  ;;  %v3188_v33 = vrot.slane %v4194_v21, 5  ;;  %v4048_v4 = vld [vmem:[%s4610_s7 + $0xac] sm:$0xf] }
 0x15e   : > { %1929 = vst.msk [vmem:[#allocation2 + $0x14] sm:$0xf] %vm1923_vm11, %v1844_v19  ;;  %v1842_v7 = vpop.permute.xlu0 %1841  ;;  %v4190_v19 = vld [vmem:[%s4610_s7 + $0x30] sm:$0xe]  ;;  %v1769_v36 = vrot.slane %v1768_v15, 4 }
 0x15f   : > { %1928 = vst.msk [vmem:[#allocation2 + $0x10] sm:$0xf] %vm1923_vm11, %v1842_v7  ;;  %2397 = vrot.lane.b32.xlu1 %v4121_v14, %s4517_s24  ;;  %v2834_v14 = vrot.slane %v2833_v6, 4  ;;  %v2849_v22 = vsel %vm4621_vm2, %v2844_v11, %v2848_v5  ;;  %v3237_v7 = vrot.slane %v5515_v17, 5  ;;  %v4228_v29 = vrot.slane %v4190_v19, 9 }
 0x160   : > { %2395 = vrot.lane.b32.xlu0 %v4120_v20, %s4517_s24  ;;  %v3183_v20 = vrot.slane %v3181_v9, 4  ;;  %v3190_v49 = vrot.slane %v3188_v33, 4  ;;  %v3247_v11 = vrot.slane %v4219_v40, 5  ;;  %v4047_v5 = vld [vmem:[%s4610_s7 + $0xa8] sm:$0xf]  ;;  %v5573_v17 = vrot.slane %v1603_v63, 5 }
 0x161   : > { %v1848_v37 = vpop.permute.xlu1 %1847  ;;  %v3239_v42 = vrot.slane %v3237_v7, 4  ;;  %v1795_v19 = vshll.u32 %v4048_v4, 16  ;;  %v1789_v25 = vshll.u32 %v4047_v5, 16  ;;  %v4090_v63 = vld [vmem:[%s4610_s7 + $0xa0] sm:$0xf] }
 0x162   : > { %1931 = vst.msk [vmem:[#allocation2 + $0x1c] sm:$0xf] %vm1923_vm11, %v1848_v37  ;;  %v1846_v44 = vpop.permute.xlu0 %1845  ;;  %v1775_v37 = vshrl.u32 %v4045_v24, 16  ;;  %v3185_v41 = vsel %vm4765_vm6, %v3183_v20, %v3184_v23  ;;  %v1799_v20 = vshrl.u32 %v4048_v4, 16  ;;  %v1786_v24 = vshrl.u32 %v4047_v5, 16 }
 0x163   : > { %1930 = vst.msk [vmem:[#allocation2 + $0x18] sm:$0xf] %vm1923_vm11, %v1846_v44  ;;  %2429 = vrot.lane.b32.xlu1 %v4137_v28, %s4517_s24  ;;  %v2839_v28 = vsel %vm4621_vm2, %v2834_v14, %v5490_v52  ;;  %v4229_v52 = vrot.slane %v4193_v34, 9  ;;  %v1781_v14 = vshll.u32 %v4046_v61, 16  ;;  %v4067_v61 = vld [vmem:[%s4610_s7 + $0x44] sm:$0x1] }
 0x164   : > { %2427 = vrot.lane.b32.xlu0 %v4136_v16, %s4517_s24  ;;  %v4195_v16 = vld [vmem:[%s4610_s7 + $0x44] sm:$0x1]  ;;  %v1777_v57 = vrot.slane %v1775_v37, 4  ;;  %v1801_v34 = vrot.slane %v1799_v20, 4  ;;  %v1788_v39 = vrot.slane %v1786_v24, 4  ;;  %v2165_v4 = vrot.slane %v4090_v63, 5 }
 0x165   : > { %v1852_v54 = vpop.permute.xlu1 %1851  ;;  %v3191_v51 = vrot.slane %v4195_v16, 5 }
 0x166   : > { %1933 = vst.msk [vmem:[#allocation2 + $0x24] sm:$0xf] %vm1923_vm11, %v1852_v54  ;;  %v1850_v55 = vpop.permute.xlu0 %1849  ;;  %v4023_v54 = vld [vmem:[%s4610_s7 + $0x48] sm:$0xf] }
 0x167   : > { %1932 = vst.msk [vmem:[#allocation2 + $0x20] sm:$0xf] %vm1923_vm11, %v1850_v55  ;;  %2908 = vrot.lane.b32.xlu1 %v2633_v45, %s4518_s26  ;;  %v3182_v45 = vsel %vm4765_vm6, %v4228_v29, %v3181_v9  ;;  %v3241_v55 = vsel %vm4765_vm6, %v3239_v42, %v3240_v43  ;;  %v3189_v9 = vsel %vm4765_vm6, %v4229_v52, %v3188_v33  ;;  %v1797_v33 = vrot.slane %v1795_v19, 5 }
 0x168   : > { %2906 = vrot.lane.b32.xlu0 %v2623_v46, %s4518_s26  ;;  %v4236_v46 = vrot.slane %v4214_v31, 9  ;;  %v1783_v31 = vrot.slane %v1781_v14, 5  ;;  %v2167_v14 = vrot.slane %v2165_v4, 4 }
 0x169   : > { %v1868_v3 = vpop.permute.xlu1 %1867 }
 0x16a   : > { %1941 = vst.msk [vmem:[#allocation2 + $0x44] sm:$0xf] %vm1923_vm11, %v1868_v3  ;;  %v1866_v8 = vpop.permute.xlu0 %1865  ;;  %v3238_v2 = vsel %vm4765_vm6, %v4236_v46, %v3237_v7  ;;  %v1594_v3 = vshrl.u32 %v4023_v54, 16  ;;  %v1802_v46 = vor.u32 %v1801_v34, %v1797_v33 }
 0x16b   : > { %1940 = vst.msk [vmem:[#allocation2 + $0x40] sm:$0xf] %vm1923_vm11, %v1866_v8  ;;  %2940 = vrot.lane.b32.xlu1 %v2825_v60, %s4518_s26  ;;  %v4217_v60 = vld [vmem:[%s4610_s7 + $0x9c] sm:$0xe]  ;;  %v3192_v8 = vsel %vm4765_vm6, %v3190_v49, %v3191_v51  ;;  %v1774_v49 = vsel %vm4621_vm2, %v1769_v36, %v5553_v56 }
 0x16c   : > { %2938 = vrot.lane.b32.xlu0 %v2815_v50, %s4518_s26  ;;  %v1597_v50 = vshll.u32 %v4023_v54, 16  ;;  %v1596_v23 = vrot.slane %v1594_v3, 4 }
 0x16d   : > { %v1872_v12 = vpop.permute.xlu1 %1871 }
 0x16e   : > { %1943 = vst.msk [vmem:[#allocation2 + $0x4c] sm:$0xf] %vm1923_vm11, %v1872_v12  ;;  %v1870_v18 = vpop.permute.xlu0 %1869  ;;  %v4237_v12 = vrot.slane %v4217_v60, 9  ;;  %v1599_v7 = vrot.slane %v1597_v50, 5  ;;  %v2112_v50 = vrot.slane %v4067_v61, 5 }
 0x16f   : > { %1942 = vst.msk [vmem:[#allocation2 + $0x48] sm:$0xf] %vm1923_vm11, %v1870_v18  ;;  %2912 = vrot.lane.b32.xlu1 %v2657_v10, %s4518_s26  ;;  %v3246_v10 = vrot.slane %v3244_v53, 4  ;;  %v1609_v18 = vrot.slane %v1607_v0, 4 }
 0x170   : > { %2910 = vrot.lane.b32.xlu0 %v2647_v13, %s4518_s26  ;;  %v1778_v13 = vor.u32 %v1777_v57, %v5553_v56  ;;  %v3245_v29 = vsel %vm4765_vm6, %v4237_v12, %v3244_v53  ;;  %v1600_v37 = vor.u32 %v1599_v7, %v1596_v23  ;;  %v4066_v53 = vld [vmem:[%s4610_s7 + $0x40] sm:$0xf]  ;;  %v1803_v57 = vrot.slane %v1802_v46, 4  ;;  %v4089_v12 = vld [vmem:[%s4610_s7 + $0x9c] sm:$0xe] }
 0x171   : > { %v2187_v26 = vpop.permute.xlu1 %2186  ;;  %v1807_v56 = vrot.slane %v1805_v47, 5  ;;  %v2109_v58 = vrot.slane %v4066_v53, 5  ;;  %v4110_v20 = vrot.slane %v4089_v12, 9  ;;  %v4068_v7 = vld [vmem:[%s4610_s7 + $0x48] sm:$0xe] }
 0x172   : > { %2276 = vst.msk [vmem:[#allocation2 + $0x4] sm:$0xf] %vm2274_vm12, %v2187_v26  ;;  %v2185_v32 = vpop.permute.xlu0 %2184  ;;  %v1779_v30 = vrot.slane %v1778_v13, 4  ;;  %v1601_v51 = vrot.slane %v1600_v37, 4  ;;  %v4123_v53 = vld [vmem:[%s4610_s7 + $0x4c] sm:$0xf] }
 0x173   : > { %2275 = vst.msk [vmem:[#allocation2] sm:$0xf] %vm2274_vm12, %v2185_v32  ;;  %2944 = vrot.lane.b32.xlu1 %v2849_v22, %s4518_s26  ;;  %v4025_v22 = vld [vmem:[%s4610_s7 + $0x50] sm:$0x1]  ;;  %v1610_v32 = vor.u32 %v1609_v18, %v5573_v17  ;;  %v2111_v3 = vrot.slane %v2109_v58, 4 }
 0x174   : > { %2942 = vrot.lane.b32.xlu0 %v2839_v28, %s4518_s26  ;;  %v3248_v28 = vsel %vm4765_vm6, %v3246_v10, %v3247_v11  ;;  %v1613_v16 = vshll.u32 %v4025_v22, 16  ;;  %v1784_v43 = vsel %vm4621_vm2, %v1779_v30, %v1783_v31  ;;  %v4091_v10 = vld [vmem:[%s4610_s7 + $0xa4] sm:$0x1]  ;;  %v4069_v11 = vld [vmem:[%s4610_s7 + $0x4c] sm:$0xf]  ;;  %v2166_v30 = vsel %vm4765_vm6, %v4110_v20, %v2165_v4 }
 0x175   : > { %v2219_v44 = vpop.permute.xlu1 %2218  ;;  %v2113_v13 = vsel %vm4765_vm6, %v2111_v3, %v2112_v50  ;;  %v2168_v15 = vrot.slane %v4091_v10, 5  ;;  %v4093_v22 = vld [vmem:[%s4610_s7 + $0xac] sm:$0xf]  ;;  %v4103_v31 = vrot.slane %v4068_v7, 9 }
 0x176   : > { %2292 = vst.msk [vmem:[#allocation2 + $0x44] sm:$0xf] %vm2274_vm12, %v2219_v44  ;;  %v2217_v48 = vpop.permute.xlu0 %2216  ;;  %v1611_v44 = vrot.slane %v1610_v32, 4  ;;  %v4094_v32 = vld [vmem:[%s4610_s7 + $0xb0] sm:$0x1] }
 0x177   : > { %2291 = vst.msk [vmem:[#allocation2 + $0x40] sm:$0xf] %vm2274_vm12, %v2217_v48  ;;  %3273 = vrot.lane.b32.xlu1 %v3185_v41, %s4519_s11  ;;  %v1791_v41 = vrot.slane %v1789_v25, 5  ;;  %v2169_v24 = vsel %vm4765_vm6, %v2167_v14, %v2168_v15  ;;  %v2175_v36 = vrot.slane %v4094_v32, 5  ;;  %v4139_v50 = vld [vmem:[%s4610_s7 + $0xac] sm:$0xf] }
 0x178   : > { %3271 = vrot.lane.b32.xlu0 %v3182_v45, %s4519_s11  ;;  %v1615_v45 = vrot.slane %v1613_v16, 5  ;;  %v4124_v14 = vld [vmem:[%s4610_s7 + $0x54] sm:$0xf]  ;;  %v4141_v32 = vld [vmem:[%s4610_s7 + $0xb8] sm:$0xf] }
 0x179   : > { %v2191_v1 = vpop.permute.xlu1 %2190  ;;  %v1792_v52 = vor.u32 %v1791_v41, %v1788_v39 }
 0x17a   : > { %2278 = vst.msk [vmem:[#allocation2 + $0xc] sm:$0xf] %vm2274_vm12, %v2191_v1  ;;  %v2189_v6 = vpop.permute.xlu0 %2188  ;;  %v1616_v40 = vsel %vm4621_vm2, %v1611_v44, %v1615_v45  ;;  %v4065_v1 = vld [vmem:[%s4610_s7 + $0x3c] sm:$0xe] }
 0x17b   : > { %2277 = vst.msk [vmem:[#allocation2 + $0x8] sm:$0xf] %vm2274_vm12, %v2189_v6  ;;  %3305 = vrot.lane.b32.xlu1 %v3241_v55, %s4519_s11  ;;  %v1606_v55 = vsel %vm4621_vm2, %v1601_v51, %v5573_v17  ;;  %v1793_v60 = vrot.slane %v1792_v52, 4  ;;  %v2116_v17 = vrot.slane %v4069_v11, 5  ;;  %v4125_v11 = vld [vmem:[%s4610_s7 + $0x58] sm:$0xf] }
 0x17c   : > { %3303 = vrot.lane.b32.xlu0 %v3238_v2, %s4519_s11  ;;  %v1808_v2 = vsel %vm4621_vm2, %v1803_v57, %v1807_v56  ;;  %v4122_v56 = vld [vmem:[%s4610_s7 + $0x48] sm:$0xf] }
 0x17d   : > { %v2223_v21 = vpop.permute.xlu1 %2222  ;;  %v2118_v25 = vrot.slane %v2116_v17, 4  ;;  %v2117_v38 = vsel %vm4765_vm6, %v4103_v31, %v2116_v17  ;;  %v4181_v31 = vld [vmem:[%s4610_s7 + $0xb4] sm:$0xf] }
 0x17e   : > { %2294 = vst.msk [vmem:[#allocation2 + $0x4c] sm:$0xf] %vm2274_vm12, %v2223_v21  ;;  %v2221_v26 = vpop.permute.xlu0 %2220  ;;  %v4070_v21 = vld [vmem:[%s4610_s7 + $0x50] sm:$0x1] }
 0x17f   : > { %2293 = vst.msk [vmem:[#allocation2 + $0x48] sm:$0xf] %vm2274_vm12, %v2221_v26  ;;  %3277 = vrot.lane.b32.xlu1 %v3192_v8, %s4519_s11  ;;  %v1798_v8 = vsel %vm4621_vm2, %v1793_v60, %v1797_v33  ;;  %v2119_v26 = vrot.slane %v4070_v21, 5  ;;  %v4092_v33 = vld [vmem:[%s4610_s7 + $0xa8] sm:$0xe] }
 0x180   : > { %3275 = vrot.lane.b32.xlu0 %v3189_v9, %s4519_s11  ;;  %v4102_v9 = vrot.slane %v4065_v1, 9  ;;  %v4111_v39 = vrot.slane %v4092_v33, 9  ;;  %v4180_v21 = vld [vmem:[%s4610_s7 + $0xb0] sm:$0x1] }
 0x181   : > { %v2386_v35 = vpop.permute.xlu1 %2385  ;;  %v2120_v34 = vsel %vm4765_vm6, %v2118_v25, %v2119_v26  ;;  %v4182_v26 = vld [vmem:[%s4610_s7 + $0xb8] sm:$0xf] }
 0x182   : > { %2469 = vst.msk [vmem:[#allocation2 + $0x4] sm:$0xf] %vm2467_vm13, %v2386_v35  ;;  %v2384_v42 = vpop.permute.xlu0 %2383  ;;  %v2110_v19 = vsel %vm4765_vm6, %v4102_v9, %v2109_v58  ;;  %v4156_v58 = vld [vmem:[%s4610_s7 + $0x50] sm:$0x1]  ;;  %v4158_v9 = vld [vmem:[%s4610_s7 + $0x58] sm:$0xf] }
 0x183   : > { %2468 = vst.msk [vmem:[#allocation2] sm:$0xf] %vm2467_vm13, %v2384_v42  ;;  %3309 = vrot.lane.b32.xlu1 %v3248_v28, %s4519_s11  ;;  %v2172_v28 = vrot.slane %v4093_v22, 5  ;;  %v4155_v42 = vld [vmem:[%s4610_s7 + $0x4c] sm:$0xf]  ;;  %v2678_v4 = vshll.u32 %v4156_v58, 16 }
 0x184   : > { %3307 = vrot.lane.b32.xlu0 %v3245_v29, %s4519_s11  ;;  %v2692_v22 = vshll.u32 %v4158_v9, 16 }
 0x185   : > { %v2418_v48 = vpop.permute.xlu1 %2417  ;;  %v2174_v35 = vrot.slane %v2172_v28, 4  ;;  %v2173_v46 = vsel %vm4765_vm6, %v4111_v39, %v2172_v28  ;;  %v2680_v20 = vrot.slane %v2678_v4, 5 }
 0x186   : > { %2485 = vst.msk [vmem:[#allocation2 + $0x44] sm:$0xf] %vm2467_vm13, %v2418_v48  ;;  %v2416_v54 = vpop.permute.xlu0 %2415  ;;  %v2668_v48 = vshll.u32 %v4155_v42, 16 }
 0x187   : > { %2484 = vst.msk [vmem:[#allocation2 + $0x40] sm:$0xf] %vm2467_vm13, %v2416_v54  ;;  %1883 = vrot.lane.b32.xlu1 %v1784_v43, %s4515_s21  ;;  %v4154_v43 = vld [vmem:[%s4610_s7 + $0x48] sm:$0xf]  ;;  %v2176_v44 = vsel %vm4765_vm6, %v2174_v35, %v2175_v36  ;;  %v4179_v54 = vld [vmem:[%s4610_s7 + $0xac] sm:$0xf] }
 0x188   : > { %1881 = vrot.lane.b32.xlu0 %v1774_v49, %s4515_s21  ;;  %v2672_v49 = vshrl.u32 %v4155_v42, 16  ;;  %v2659_v51 = vshrl.u32 %v4154_v43, 16  ;;  %v2662_v52 = vshll.u32 %v4154_v43, 16  ;;  %v2864_v1 = vshrl.u32 %v4179_v54, 16 }
 0x189   : > { %v2390_v59 = vpop.permute.xlu1 %2389  ;;  %v2870_v35 = vshll.u32 %v4180_v21, 16  ;;  %v2888_v42 = vshrl.u32 %v4182_v26, 16 }
 0x18a   : > { %2471 = vst.msk [vmem:[#allocation2 + $0xc] sm:$0xf] %vm2467_vm13, %v2390_v59  ;;  %v2388_v0 = vpop.permute.xlu0 %2387  ;;  %v2674_v60 = vrot.slane %v2672_v49, 4  ;;  %v2661_v61 = vrot.slane %v2659_v51, 4  ;;  %v2664_v63 = vrot.slane %v2662_v52, 5  ;;  %v2866_v17 = vrot.slane %v2864_v1, 4 }
 0x18b   : > { %2470 = vst.msk [vmem:[#allocation2 + $0x8] sm:$0xf] %vm2467_vm13, %v2388_v0  ;;  %1855 = vrot.lane.b32.xlu1 %v1616_v40, %s4515_s21  ;;  %v4178_v40 = vld [vmem:[%s4610_s7 + $0xa8] sm:$0xf]  ;;  %v2860_v0 = vshll.u32 %v4179_v54, 16  ;;  %v2890_v58 = vrot.slane %v2888_v42, 4 }
 0x18c   : > { %1853 = vrot.lane.b32.xlu0 %v1606_v55, %s4515_s21  ;;  %v5668_v55 = vrot.slane %v2668_v48, 5  ;;  %v2854_v3 = vshll.u32 %v4178_v40, 16  ;;  %v2665_v12 = vor.u32 %v2664_v63, %v2661_v61  ;;  %v4183_v63 = vld [vmem:[%s4610_s7 + $0xbc] sm:$0x1] }
 0x18d   : > { %v2422_v6 = vpop.permute.xlu1 %2421  ;;  %v5683_v15 = vrot.slane %v2860_v0, 5 }
 0x18e   : > { %2487 = vst.msk [vmem:[#allocation2 + $0x4c] sm:$0xf] %vm2467_vm13, %v2422_v6  ;;  %v2420_v5 = vpop.permute.xlu0 %2419  ;;  %v2666_v33 = vrot.slane %v2665_v12, 4  ;;  %v4197_v12 = vld [vmem:[%s4610_s7 + $0x4c] sm:$0xf] }
 0x18f   : > { %2486 = vst.msk [vmem:[#allocation2 + $0x48] sm:$0xf] %vm2467_vm13, %v2420_v5  ;;  %1887 = vrot.lane.b32.xlu1 %v1808_v2, %s4515_s21  ;;  %v2851_v2 = vshrl.u32 %v4178_v40, 16  ;;  %v2675_v5 = vor.u32 %v2674_v60, %v5668_v55 }
 0x190   : > { %1885 = vrot.lane.b32.xlu0 %v1798_v8, %s4515_s21  ;;  %v4138_v8 = vld [vmem:[%s4610_s7 + $0xa8] sm:$0xf]  ;;  %v2671_v60 = vsel %vm4621_vm2, %v2666_v33, %v5668_v55  ;;  %v5752_v33 = vld [vmem:[%s4610_s7 + $0x58] sm:$0xf] }
 0x191   : > { %v2901_v18 = vpop.permute.xlu1 %2900 }
 0x192   : > { %2984 = vst.msk [vmem:[#allocation2 + $0x4] sm:$0xf] %vm2982_vm14, %v2901_v18  ;;  %v2899_v23 = vpop.permute.xlu0 %2898  ;;  %v2853_v18 = vrot.slane %v2851_v2, 4 }
 0x193   : > { %2983 = vst.msk [vmem:[#allocation2] sm:$0xf] %vm2982_vm14, %v2899_v23  ;;  %2202 = vrot.lane.b32.xlu1 %v2113_v13, %s4516_s22  ;;  %v4157_v13 = vld [vmem:[%s4610_s7 + $0x54] sm:$0xf]  ;;  %v2696_v23 = vshrl.u32 %v4158_v9, 16 }
 0x194   : > { %2200 = vrot.lane.b32.xlu0 %v2110_v19, %s4516_s22  ;;  %v2856_v19 = vrot.slane %v2854_v3, 5  ;;  %v2686_v25 = vshll.u32 %v4157_v13, 16 }
 0x195   : > { %v2933_v29 = vpop.permute.xlu1 %2932  ;;  %v2698_v39 = vrot.slane %v2696_v23, 4 }
 0x196   : > { %3000 = vst.msk [vmem:[#allocation2 + $0x44] sm:$0xf] %vm2982_vm14, %v2933_v29  ;;  %v2931_v16 = vpop.permute.xlu0 %2930  ;;  %v2857_v36 = vor.u32 %v2856_v19, %v2853_v18  ;;  %v3195_v19 = vrot.slane %v4197_v12, 5 }
 0x197   : > { %2999 = vst.msk [vmem:[#allocation2 + $0x40] sm:$0xf] %vm2982_vm14, %v2931_v16  ;;  %2234 = vrot.lane.b32.xlu1 %v2169_v24, %s4516_s22  ;;  %v2683_v24 = vshrl.u32 %v4157_v13, 16  ;;  %v4140_v16 = vld [vmem:[%s4610_s7 + $0xb4] sm:$0xf] }
 0x198   : > { %2232 = vrot.lane.b32.xlu0 %v2166_v30, %s4516_s22  ;;  %v2676_v30 = vrot.slane %v2675_v5, 4  ;;  %v2858_v40 = vrot.slane %v2857_v36, 4 }
 0x199   : > { %v2905_v37 = vpop.permute.xlu1 %2904 }
 0x19a   : > { %2986 = vst.msk [vmem:[#allocation2 + $0xc] sm:$0xf] %vm2982_vm14, %v2905_v37  ;;  %v2903_v41 = vpop.permute.xlu0 %2902  ;;  %v4159_v37 = vld [vmem:[%s4610_s7 + $0x5c] sm:$0x1]  ;;  %v2681_v51 = vsel %vm4621_vm2, %v2676_v30, %v2680_v20  ;;  %v5734_v20 = vld [vmem:[%s4610_s7 + $0xac] sm:$0xf] }
 0x19b   : > { %2985 = vst.msk [vmem:[#allocation2 + $0x8] sm:$0xf] %vm2982_vm14, %v2903_v41  ;;  %2206 = vrot.lane.b32.xlu1 %v2120_v34, %s4516_s22  ;;  %v2867_v34 = vor.u32 %v2866_v17, %v5683_v15  ;;  %v2884_v41 = vshll.u32 %v4182_v26, 16  ;;  %v2702_v54 = vshll.u32 %v4159_v37, 16  ;;  %v3251_v26 = vrot.slane %v5734_v20, 5 }
 0x19c   : > { %2204 = vrot.lane.b32.xlu0 %v2117_v38, %s4516_s22  ;;  %v5698_v38 = vrot.slane %v2692_v22, 5  ;;  %v4220_v37 = vld [vmem:[%s4610_s7 + $0xa8] sm:$0xe] }
 0x19d   : > { %v2937_v45 = vpop.permute.xlu1 %2936  ;;  %v2868_v52 = vrot.slane %v2867_v34, 4  ;;  %v2704_v4 = vrot.slane %v2702_v54, 5 }
 0x19e   : > { %3002 = vst.msk [vmem:[#allocation2 + $0x4c] sm:$0xf] %vm2982_vm14, %v2937_v45  ;;  %v2935_v47 = vpop.permute.xlu0 %2934  ;;  %v2688_v45 = vrot.slane %v2686_v25, 5  ;;  %v4196_v25 = vld [vmem:[%s4610_s7 + $0x48] sm:$0xe] }
 0x19f   : > { %3001 = vst.msk [vmem:[#allocation2 + $0x48] sm:$0xf] %vm2982_vm14, %v2935_v47  ;;  %2238 = vrot.lane.b32.xlu1 %v2176_v44, %s4516_s22  ;;  %v2685_v44 = vrot.slane %v2683_v24, 4  ;;  %v2878_v47 = vshll.u32 %v4181_v31, 16  ;;  %v4230_v36 = vrot.slane %v4196_v25, 9 }
 0x1a0   : > { %2236 = vrot.lane.b32.xlu0 %v2173_v46, %s4516_s22  ;;  %v2875_v46 = vshrl.u32 %v4181_v31, 16  ;;  %v3197_v31 = vrot.slane %v3195_v19, 4 }
 0x1a1   : > { %v3266_v57 = vpop.permute.xlu1 %3265  ;;  %v2689_v61 = vor.u32 %v2688_v45, %v2685_v44  ;;  %v2880_v1 = vrot.slane %v2878_v47, 5  ;;  %v3253_v45 = vrot.slane %v3251_v26, 4  ;;  %v3202_v47 = vrot.slane %v5752_v33, 5  ;;  %v1955_v33 = vld [vmem:[%s5088_s14 + $0x4] sm:$0xf] }
 0x1a2   : > { %3349 = vst.msk [vmem:[#allocation2 + $0x4] sm:$0xf] %vm3347_vm15, %v3266_v57  ;;  %v3264_v59 = vpop.permute.xlu0 %3263  ;;  %v2699_v57 = vor.u32 %v2698_v39, %v5698_v38  ;;  %v2877_v0 = vrot.slane %v2875_v46, 4  ;;  %v5760_v39 = vld [vmem:[%s4610_s7 + $0xb8] sm:$0xf]  ;;  %v3196_v54 = vsel %vm4765_vm6, %v4230_v36, %v3195_v19 }
 0x1a3   : > { %3348 = vst.msk [vmem:[#allocation2] sm:$0xf] %vm3347_vm15, %v3264_v59  ;;  %2401 = vrot.lane.b32.xlu1 %v4123_v53, %s4517_s24  ;;  %v2872_v53 = vrot.slane %v2870_v35, 5 }
 0x1a4   : > { %2399 = vrot.lane.b32.xlu0 %v4122_v56, %s4517_s24  ;;  %v5708_v56 = vrot.slane %v2884_v41, 5  ;;  %v2700_v55 = vrot.slane %v2699_v57, 4  ;;  %v2881_v5 = vor.u32 %v2880_v1, %v2877_v0  ;;  %v4199_v57 = vld [vmem:[%s4610_s7 + $0x54] sm:$0xe] }
 0x1a5   : > { %v3298_v6 = vpop.permute.xlu1 %3297 }
 0x1a6   : > { %3365 = vst.msk [vmem:[#allocation2 + $0x44] sm:$0xf] %vm3347_vm15, %v3298_v6  ;;  %v3296_v10 = vpop.permute.xlu0 %3295  ;;  %v2891_v6 = vor.u32 %v2890_v58, %v5708_v56  ;;  %v2882_v23 = vrot.slane %v2881_v5, 4  ;;  %v3258_v58 = vrot.slane %v5760_v39, 5  ;;  %v4231_v5 = vrot.slane %v4199_v57, 9 }
 0x1a7   : > { %3364 = vst.msk [vmem:[#allocation2 + $0x40] sm:$0xf] %vm3347_vm15, %v3296_v10  ;;  %2433 = vrot.lane.b32.xlu1 %v4139_v50, %s4517_s24  ;;  %v2873_v50 = vsel %vm4621_vm2, %v2868_v52, %v2872_v53  ;;  %v2863_v10 = vsel %vm4621_vm2, %v2858_v40, %v5683_v15  ;;  %v2705_v15 = vsel %vm4621_vm2, %v2700_v55, %v2704_v4  ;;  %v4050_v52 = vld [vmem:[%s4610_s7 + $0xb4] sm:$0xf]  ;;  %v4238_v40 = vrot.slane %v4220_v37, 9 }
 0x1a8   : > { %2431 = vrot.lane.b32.xlu0 %v4138_v8, %s4517_s24  ;;  %v2894_v8 = vshll.u32 %v4183_v63, 16  ;;  %v2892_v17 = vrot.slane %v2891_v6, 4  ;;  %v2887_v35 = vsel %vm4621_vm2, %v2882_v23, %v5708_v56  ;;  %v4225_v56 = vld [vmem:[%s4610_s7 + $0xbc] sm:$0x1]  ;;  %v1810_v55 = vshrl.u32 %v4050_v52, 16 }
 0x1a9   : > { %v3270_v7 = vpop.permute.xlu1 %3269  ;;  %v1813_v4 = vshll.u32 %v4050_v52, 16  ;;  %v3260_v12 = vrot.slane %v3258_v58, 4  ;;  %v1954_v39 = vld [vmem:[%s5088_s14] sm:$0xf] }
 0x1aa   : > { %3351 = vst.msk [vmem:[#allocation2 + $0xc] sm:$0xf] %vm3347_vm15, %v3270_v7  ;;  %v3268_v28 = vpop.permute.xlu0 %3267  ;;  %v4417_v29 = vld [vmem:[#allocation2] sm:$0xff]   ;;  %v2896_v18 = vrot.slane %v2894_v8, 5  ;;  %v4198_v7 = vld [vmem:[%s4610_s7 + $0x50] sm:$0x1] }
 0x1ab   : > { %3350 = vst.msk [vmem:[#allocation2 + $0x8] sm:$0xf] %vm3347_vm15, %v3268_v28  ;;  %2405 = vrot.lane.b32.xlu1 %v4125_v11, %s4517_s24  ;;  %4309 = vmatprep.mubr.msk.bf16.mxu0 %vm3557_vm0, %v4417_v29  ;;  %v2690_v11 = vrot.slane %v2689_v61, 4  ;;  %v4027_v28 = vld [vmem:[%s4610_s7 + $0x58] sm:$0xf]  ;;  %v3204_v8 = vrot.slane %v3202_v47, 4 }
 0x1ac   : > { %2403 = vrot.lane.b32.xlu0 %v4124_v14, %s4517_s24  ;;  %v4026_v29 = vld [vmem:[%s4610_s7 + $0x54] sm:$0xf]  ;;  %v2897_v30 = vsel %vm4621_vm2, %v2892_v17, %v2896_v18  ;;  %v1627_v41 = vshll.u32 %v4027_v28, 16  ;;  %v1631_v42 = vshrl.u32 %v4027_v28, 16 }
 0x1ad   : > { %v3302_v43 = vpop.permute.xlu1 %3301  ;;  %v2695_v22 = vsel %vm4621_vm2, %v2690_v11, %v5698_v38  ;;  %v1621_v44 = vshll.u32 %v4026_v29, 16  ;;  %v3252_v11 = vsel %vm4765_vm6, %v4238_v40, %v3251_v26  ;;  %v4052_v26 = vld [vmem:[%s4610_s7 + $0xbc] sm:$0x1]  ;;  %v1961_v40 = vshll.u32 %v1954_v39, 16 }
 0x1ae   : > { %3367 = vst.msk [vmem:[#allocation2 + $0x4c] sm:$0xf] %vm3347_vm15, %v3302_v43  ;;  %v3300_v48 = vpop.permute.xlu0 %3299  ;;  %v4419_v49 = vld [vmem:[#allocation2 + $0x40] sm:$0xff]   ;;  %v1618_v43 = vshrl.u32 %v4026_v29, 16  ;;  %v5778_v61 = vrot.slane %v1627_v41, 5  ;;  %v1633_v63 = vrot.slane %v1631_v42, 4 }
 0x1af   : > { %3366 = vst.msk [vmem:[#allocation2 + $0x48] sm:$0xf] %vm3347_vm15, %v3300_v48  ;;  %2437 = vrot.lane.b32.xlu1 %v4141_v32, %s4517_s24  ;;  %4325 = vmatprep.mubr.msk.bf16.mxu1 %vm3557_vm0, %v4419_v49  ;;  %v3198_v32 = vrot.slane %v4198_v7, 5  ;;  %v4201_v49 = vld [vmem:[%s4610_s7 + $0x5c] sm:$0x1]  ;;  %v1623_v1 = vrot.slane %v1621_v44, 5 }
 0x1b0   : > { %2435 = vrot.lane.b32.xlu0 %v4140_v16, %s4517_s24  ;;  %v4222_v16 = vld [vmem:[%s4610_s7 + $0xb0] sm:$0x1]  ;;  %v1620_v0 = vrot.slane %v1618_v43, 4  ;;  %v1634_v18 = vor.u32 %v1633_v63, %v5778_v61  ;;  %v1812_v7 = vrot.slane %v1810_v55, 4  ;;  %v1829_v43 = vshll.u32 %v4052_v26, 16 }
 0x1b1   : > { %v1876_v59 = vpop.permute.xlu1 %1875  ;;  %v3254_v46 = vrot.slane %v4222_v16, 5  ;;  %v3199_v48 = vsel %vm4765_vm6, %v3197_v31, %v3198_v32  ;;  %v3203_v31 = vsel %vm4765_vm6, %v4231_v5, %v3202_v47  ;;  %v1967_v47 = vshll.u32 %v1955_v33, 16  ;;  %v4073_v26 = vld [vmem:[%s4610_s7 + $0x5c] sm:$0x1] }
 0x1b2   : > { %1945 = vst.msk [vmem:[#allocation2 + $0x54] sm:$0xf] %vm1923_vm11, %v1876_v59  ;;  %v1874_v2 = vpop.permute.xlu0 %1873  ;;  %v4420_v3 = vld [vmem:[#allocation2 + $0x8] sm:$0xff]   ;;  %v1624_v20 = vor.u32 %v1623_v1, %v1620_v0  ;;  %v1635_v37 = vrot.slane %v1634_v18, 4  ;;  %v4072_v18 = vld [vmem:[%s4610_s7 + $0x58] sm:$0xf] }
 0x1b3   : > { %1944 = vst.msk [vmem:[#allocation2 + $0x50] sm:$0xf] %vm1923_vm11, %v1874_v2  ;;  %2916 = vrot.lane.b32.xlu1 %v2681_v51, %s4518_s26  ;;  %4310 = vmatmul.mubr.msk.bf16.vlgmr.msra.gmra.mxu0 %vm3557_vm0, %v4420_v3  ;;  %v4051_v51 = vld [vmem:[%s4610_s7 + $0xb8] sm:$0xf]  ;;  %v4028_v2 = vld [vmem:[%s4610_s7 + $0x5c] sm:$0x1]  ;;  %v3255_v6 = vsel %vm4765_vm6, %v3253_v45, %v3254_v46 }
 0x1b4   : > { %2914 = vrot.lane.b32.xlu0 %v2671_v60, %s4518_s26  ;;  %v4223_v60 = vld [vmem:[%s4610_s7 + $0xb4] sm:$0xe]  ;;  %v1819_v3 = vshll.u32 %v4051_v51, 16  ;;  %v1637_v19 = vshll.u32 %v4028_v2, 16  ;;  %v1625_v41 = vrot.slane %v1624_v20, 4  ;;  %v1969_v1 = vrot.slane %v1967_v47, 5 }
 0x1b5   : > { %v1880_v9 = vpop.permute.xlu1 %1879  ;;  %v4239_v17 = vrot.slane %v4223_v60, 9  ;;  %v1831_v60 = vrot.slane %v1829_v43, 5 }
 0x1b6   : > { %1947 = vst.msk [vmem:[#allocation2 + $0x5c] sm:$0xf] %vm1923_vm11, %v1880_v9  ;;  %v1878_v13 = vpop.permute.xlu0 %1877  ;;  %v4421_v14 = vld [vmem:[#allocation2 + $0x48] sm:$0xff]   ;;  %v3205_v9 = vrot.slane %v4201_v49, 5 }
 0x1b7   : > { %1946 = vst.msk [vmem:[#allocation2 + $0x58] sm:$0xf] %vm1923_vm11, %v1878_v13  ;;  %2948 = vrot.lane.b32.xlu1 %v2873_v50, %s4518_s26  ;;  %4326 = vmatmul.mubr.msk.bf16.vlgmr.msra.gmra.mxu1 %vm3557_vm0, %v4421_v14  ;;  %v1823_v50 = vshrl.u32 %v4051_v51, 16  ;;  %v3261_v13 = vrot.slane %v4225_v56, 5  ;;  %v4030_v14 = vld [vmem:[%s4610_s7 + $0x64] sm:$0xf]  ;;  %v3259_v36 = vsel %vm4765_vm6, %v4239_v17, %v3258_v58  ;;  %v1630_v58 = vsel %vm4621_vm2, %v1625_v41, %v5778_v61 }
 0x1b8   : > { %2946 = vrot.lane.b32.xlu0 %v2863_v10, %s4518_s26  ;;  %v3206_v25 = vsel %vm4765_vm6, %v3204_v8, %v3205_v9  ;;  %v1651_v28 = vshll.u32 %v4030_v14, 16  ;;  %v1655_v29 = vshrl.u32 %v4030_v14, 16  ;;  %v4031_v51 = vld [vmem:[%s4610_s7 + $0x68] sm:$0x1]  ;;  %v1963_v8 = vrot.slane %v1961_v40, 5 }
 0x1b9   : > { %v2195_v21 = vpop.permute.xlu1 %2194  ;;  %v1825_v23 = vrot.slane %v1823_v50, 4  ;;  %v1661_v0 = vshll.u32 %v4031_v51, 16  ;;  %v4095_v41 = vld [vmem:[%s4610_s7 + $0xb4] sm:$0xe]  ;;  %v2306_v51 = vld [vmem:[%s5088_s14 + $0x4] sm:$0xf] }
 0x1ba   : > { %2280 = vst.msk [vmem:[#allocation2 + $0x14] sm:$0xf] %vm2274_vm12, %v2195_v21  ;;  %v2193_v24 = vpop.permute.xlu0 %2192  ;;  %v4029_v21 = vld [vmem:[%s4610_s7 + $0x60] sm:$0xf]  ;;  %v5813_v45 = vrot.slane %v1651_v28, 5  ;;  %v1657_v46 = vrot.slane %v1655_v29, 4 }
 0x1bb   : > { %2279 = vst.msk [vmem:[#allocation2 + $0x10] sm:$0xf] %vm2274_vm12, %v2193_v24  ;;  %2920 = vrot.lane.b32.xlu1 %v2705_v15, %s4518_s26  ;;  %v1815_v24 = vrot.slane %v1813_v4, 5  ;;  %v1642_v32 = vshrl.u32 %v4029_v21, 16  ;;  %v1645_v16 = vshll.u32 %v4029_v21, 16 }
 0x1bc   : > { %2918 = vrot.lane.b32.xlu0 %v2695_v22, %s4518_s26  ;;  %v5794_v22 = vrot.slane %v1819_v3, 5  ;;  %v1658_v63 = vor.u32 %v1657_v46, %v5813_v45  ;;  %v1956_v4 = vld [vmem:[%s5088_s14 + $0x8] sm:$0x1]  ;;  %v4096_v28 = vld [vmem:[%s4610_s7 + $0xb8] sm:$0xf] }
 0x1bd   : > { %v2227_v34 = vpop.permute.xlu1 %2226  ;;  %v1816_v44 = vor.u32 %v1815_v24, %v1812_v7  ;;  %v1644_v52 = vrot.slane %v1642_v32, 4 }
 0x1be   : > { %2296 = vst.msk [vmem:[#allocation2 + $0x54] sm:$0xf] %vm2274_vm12, %v2227_v34  ;;  %v2225_v38 = vpop.permute.xlu0 %2224  ;;  %v1826_v42 = vor.u32 %v1825_v23, %v5794_v22  ;;  %v2123_v23 = vrot.slane %v4072_v18, 5  ;;  %v4127_v18 = vld [vmem:[%s4610_s7 + $0x64] sm:$0xf] }
 0x1bf   : > { %2295 = vst.msk [vmem:[#allocation2 + $0x50] sm:$0xf] %vm2274_vm12, %v2225_v38  ;;  %2952 = vrot.lane.b32.xlu1 %v2897_v30, %s4518_s26  ;;  %v1639_v38 = vrot.slane %v1637_v19, 5  ;;  %v1817_v50 = vrot.slane %v1816_v44, 4 }
 0x1c0   : > { %2950 = vrot.lane.b32.xlu0 %v2887_v35, %s4518_s26  ;;  %v3262_v35 = vsel %vm4765_vm6, %v3260_v12, %v3261_v13  ;;  %v1977_v12 = vshll.u32 %v1956_v4, 16  ;;  %v2125_v32 = vrot.slane %v2123_v23, 4 }
 0x1c1   : > { %v2199_v53 = vpop.permute.xlu1 %2198  ;;  %v1640_v56 = vsel %vm4621_vm2, %v1635_v37, %v1639_v38  ;;  %v1822_v14 = vsel %vm4621_vm2, %v1817_v50, %v5794_v22  ;;  %v4097_v37 = vld [vmem:[%s4610_s7 + $0xbc] sm:$0x1]  ;;  %v4075_v38 = vld [vmem:[%s4610_s7 + $0x64] sm:$0xf] }
 0x1c2   : > { %2282 = vst.msk [vmem:[#allocation2 + $0x1c] sm:$0xf] %vm2274_vm12, %v2199_v53  ;;  %v2197_v59 = vpop.permute.xlu0 %2196  ;;  %v1647_v53 = vrot.slane %v1645_v16, 5  ;;  %v1979_v22 = vrot.slane %v1977_v12, 5  ;;  %v2126_v16 = vrot.slane %v4073_v26, 5  ;;  %v2182_v44 = vrot.slane %v4097_v37, 5 }
 0x1c3   : > { %2281 = vst.msk [vmem:[#allocation2 + $0x18] sm:$0xf] %vm2274_vm12, %v2197_v59  ;;  %3281 = vrot.lane.b32.xlu1 %v3199_v48, %s4519_s11  ;;  %v1971_v48 = vshrl.u32 %v1955_v33, 16  ;;  %v1827_v59 = vrot.slane %v1826_v42, 4  ;;  %v2179_v33 = vrot.slane %v4096_v28, 5 }
 0x1c4   : > { %3279 = vrot.lane.b32.xlu0 %v3196_v54, %s4519_s11  ;;  %v1958_v54 = vshrl.u32 %v1954_v39, 16  ;;  %v1648_v55 = vor.u32 %v1647_v53, %v1644_v52  ;;  %v2127_v42 = vsel %vm4765_vm6, %v2125_v32, %v2126_v16  ;;  %v4074_v53 = vld [vmem:[%s4610_s7 + $0x60] sm:$0xe]  ;;  %v4164_v37 = vld [vmem:[%s4610_s7 + $0x70] sm:$0xf] }
 0x1c5   : > { %v2231_v10 = vpop.permute.xlu1 %2230  ;;  %v1973_v2 = vrot.slane %v1971_v48, 4  ;;  %v1832_v61 = vsel %vm4621_vm2, %v1827_v59, %v1831_v60  ;;  %v2181_v43 = vrot.slane %v2179_v33, 4  ;;  %v4112_v48 = vrot.slane %v4095_v41, 9  ;;  %v4129_v41 = vld [vmem:[%s4610_s7 + $0x70] sm:$0xf] }
 0x1c6   : > { %2298 = vst.msk [vmem:[#allocation2 + $0x5c] sm:$0xf] %vm2274_vm12, %v2231_v10  ;;  %v2229_v15 = vpop.permute.xlu0 %2228  ;;  %v1659_v10 = vrot.slane %v1658_v63, 4  ;;  %v4105_v60 = vrot.slane %v4074_v53, 9  ;;  %v2307_v63 = vld [vmem:[%s5088_s14 + $0x8] sm:$0x1] }
 0x1c7   : > { %2297 = vst.msk [vmem:[#allocation2 + $0x58] sm:$0xf] %vm2274_vm12, %v2229_v15  ;;  %3313 = vrot.lane.b32.xlu1 %v3255_v6, %s4519_s11  ;;  %v1960_v6 = vrot.slane %v1958_v54, 4  ;;  %v1974_v5 = vor.u32 %v1973_v2, %v1969_v1  ;;  %v1649_v15 = vrot.slane %v1648_v55, 4  ;;  %v2183_v54 = vsel %vm4765_vm6, %v2181_v43, %v2182_v44  ;;  %v4163_v44 = vld [vmem:[%s4610_s7 + $0x6c] sm:$0xf] }
 0x1c8   : > { %3311 = vrot.lane.b32.xlu0 %v3252_v11, %s4519_s11  ;;  %v1663_v11 = vrot.slane %v1661_v0, 5  ;;  %v2180_v59 = vsel %vm4765_vm6, %v4112_v48, %v2179_v33  ;;  %v2316_v50 = vrot.slane %v2307_v63, 5  ;;  %v2497_v33 = vld [vmem:[%s5088_s14 + $0x4] sm:$0xf]  ;;  %v2740_v53 = vshll.u32 %v4164_v37, 16 }
 0x1c9   : > { %v2394_v30 = vpop.permute.xlu1 %2393  ;;  %v1964_v17 = vor.u32 %v1963_v8, %v1960_v6  ;;  %v1975_v21 = vrot.slane %v1974_v5, 4  ;;  %v1654_v24 = vsel %vm4621_vm2, %v1649_v15, %v5813_v45  ;;  %v2130_v45 = vrot.slane %v4075_v38, 5  ;;  %v4161_v8 = vld [vmem:[%s4610_s7 + $0x64] sm:$0xf] }
 0x1ca   : > { %2473 = vst.msk [vmem:[#allocation2 + $0x14] sm:$0xf] %vm2467_vm13, %v2394_v30  ;;  %v2392_v34 = vpop.permute.xlu0 %2391  ;;  %v1664_v20 = vsel %vm4621_vm2, %v1659_v10, %v1663_v11  ;;  %v4071_v30 = vld [vmem:[%s4610_s7 + $0x54] sm:$0xe]  ;;  %v2716_v11 = vshll.u32 %v4161_v8, 16  ;;  %v2720_v5 = vshrl.u32 %v4161_v8, 16 }
 0x1cb   : > { %2472 = vst.msk [vmem:[#allocation2 + $0x10] sm:$0xf] %vm2467_vm13, %v2392_v34  ;;  %3285 = vrot.lane.b32.xlu1 %v3206_v25, %s4519_s11  ;;  %v1965_v25 = vrot.slane %v1964_v17, 4  ;;  %v2132_v40 = vrot.slane %v2130_v45, 4  ;;  %v2131_v4 = vsel %vm4765_vm6, %v4105_v60, %v2130_v45  ;;  %v4128_v45 = vld [vmem:[%s4610_s7 + $0x6c] sm:$0xf] }
 0x1cc   : > { %3283 = vrot.lane.b32.xlu0 %v3203_v31, %s4519_s11  ;;  %v1980_v31 = vsel %vm4621_vm2, %v1975_v21, %v1979_v22  ;;  %v3012_v21 = vld [vmem:[%s5088_s14 + $0x4] sm:$0xf]  ;;  %v3011_v22 = vld [vmem:[%s5088_s14] sm:$0xf]  ;;  %v5941_v8 = vrot.slane %v2740_v53, 5 }
 0x1cd   : > { %v2426_v49 = vpop.permute.xlu1 %2425  ;;  %v3018_v32 = vshrl.u32 %v3011_v22, 16  ;;  %v3021_v16 = vshll.u32 %v3011_v22, 16  ;;  %v3377_v53 = vld [vmem:[%s5088_s14 + $0x4] sm:$0xf] }
 0x1ce   : > { %2489 = vst.msk [vmem:[#allocation2 + $0x54] sm:$0xf] %vm2467_vm13, %v2426_v49  ;;  %v2424_v57 = vpop.permute.xlu0 %2423  ;;  %v4076_v49 = vld [vmem:[%s4610_s7 + $0x68] sm:$0x1] }
 0x1cf   : > { %2488 = vst.msk [vmem:[#allocation2 + $0x50] sm:$0xf] %vm2467_vm13, %v2424_v57  ;;  %3317 = vrot.lane.b32.xlu1 %v3262_v35, %s4519_s11  ;;  %v1970_v35 = vsel %vm4621_vm2, %v1965_v25, %v1969_v1  ;;  %v2133_v57 = vrot.slane %v4076_v49, 5  ;;  %v2305_v1 = vld [vmem:[%s5088_s14] sm:$0xe]  ;;  %v3020_v48 = vrot.slane %v3018_v32, 4 }
 0x1d0   : > { %3315 = vrot.lane.b32.xlu0 %v3259_v36, %s4519_s11  ;;  %v4104_v36 = vrot.slane %v4071_v30, 9  ;;  %v4113_v6 = vrot.slane %v2305_v1, 9  ;;  %v3027_v30 = vshll.u32 %v3012_v21, 16  ;;  %v3023_v49 = vrot.slane %v3021_v16, 5  ;;  %v2499_v1 = vld [vmem:[%s5088_s14 + $0x10] sm:$0xf] }
 0x1d1   : > { %v2398_v3 = vpop.permute.xlu1 %2397  ;;  %v2134_v2 = vsel %vm4765_vm6, %v2132_v40, %v2133_v57  ;;  %v2731_v57 = vshrl.u32 %v4163_v44, 16 }
 0x1d2   : > { %2475 = vst.msk [vmem:[#allocation2 + $0x1c] sm:$0xf] %vm2467_vm13, %v2398_v3  ;;  %v2396_v9 = vpop.permute.xlu0 %2395  ;;  %v2124_v47 = vsel %vm4765_vm6, %v4104_v36, %v2123_v23  ;;  %v2496_v36 = vld [vmem:[%s5088_s14] sm:$0xf] }
 0x1d3   : > { %2474 = vst.msk [vmem:[#allocation2 + $0x18] sm:$0xf] %vm2467_vm13, %v2396_v9  ;;  %1859 = vrot.lane.b32.xlu1 %v1640_v56, %s4515_s21  ;;  %v2313_v56 = vrot.slane %v2306_v51, 5 }
 0x1d4   : > { %1857 = vrot.lane.b32.xlu0 %v1630_v58, %s4515_s21 }
 0x1d5   : > { %v2430_v13 = vpop.permute.xlu1 %2429  ;;  %v2315_v3 = vrot.slane %v2313_v56, 4 }
 0x1d6   : > { %2491 = vst.msk [vmem:[#allocation2 + $0x5c] sm:$0xf] %vm2467_vm13, %v2430_v13  ;;  %v2428_v19 = vpop.permute.xlu0 %2427  ;;  %v2314_v13 = vsel %vm4765_vm6, %v4113_v6, %v2313_v56  ;;  %v2734_v56 = vshll.u32 %v4163_v44, 16  ;;  %v4165_v6 = vld [vmem:[%s4610_s7 + $0x74] sm:$0x1] }
 0x1d7   : > { %2490 = vst.msk [vmem:[#allocation2 + $0x58] sm:$0xf] %vm2467_vm13, %v2428_v19  ;;  %1891 = vrot.lane.b32.xlu1 %v1832_v61, %s4515_s21  ;;  %v4160_v61 = vld [vmem:[%s4610_s7 + $0x60] sm:$0xf]  ;;  %v2317_v10 = vsel %vm4765_vm6, %v2315_v3, %v2316_v50  ;;  %v5904_v19 = vrot.slane %v2716_v11, 5 }
 0x1d8   : > { %1889 = vrot.lane.b32.xlu0 %v1822_v14, %s4515_s21  ;;  %v2707_v15 = vshrl.u32 %v4160_v61, 16  ;;  %v2710_v17 = vshll.u32 %v4160_v61, 16 }
 0x1d9   : > { %v2909_v7 = vpop.permute.xlu1 %2908 }
 0x1da   : > { %2988 = vst.msk [vmem:[#allocation2 + $0x14] sm:$0xf] %vm2982_vm14, %v2909_v7  ;;  %v2907_v29 = vpop.permute.xlu0 %2906  ;;  %v4126_v7 = vld [vmem:[%s4610_s7 + $0x60] sm:$0xf]  ;;  %v2709_v26 = vrot.slane %v2707_v15, 4  ;;  %v2712_v28 = vrot.slane %v2710_v17, 5 }
 0x1db   : > { %2987 = vst.msk [vmem:[#allocation2 + $0x10] sm:$0xf] %vm2982_vm14, %v2907_v29  ;;  %1863 = vrot.lane.b32.xlu1 %v1664_v20, %s4515_s21  ;;  %v2722_v20 = vrot.slane %v2720_v5, 4  ;;  %v4162_v29 = vld [vmem:[%s4610_s7 + $0x68] sm:$0x1]  ;;  %v2733_v5 = vrot.slane %v2731_v57, 4 }
 0x1dc   : > { %1861 = vrot.lane.b32.xlu0 %v1654_v24, %s4515_s21  ;;  %v2713_v43 = vor.u32 %v2712_v28, %v2709_v26 }
 0x1dd   : > { %v2941_v34 = vpop.permute.xlu1 %2940 }
 0x1de   : > { %3004 = vst.msk [vmem:[#allocation2 + $0x54] sm:$0xf] %vm2982_vm14, %v2941_v34  ;;  %v2939_v39 = vpop.permute.xlu0 %2938  ;;  %v2723_v34 = vor.u32 %v2722_v20, %v5904_v19  ;;  %v2714_v3 = vrot.slane %v2713_v43, 4 }
 0x1df   : > { %3003 = vst.msk [vmem:[#allocation2 + $0x50] sm:$0xf] %vm2982_vm14, %v2939_v39  ;;  %1983 = vrot.lane.b32.xlu1 %v1980_v31, %s4515_s21  ;;  %v3031_v31 = vshrl.u32 %v3012_v21, 16 }
 0x1e0   : > { %1981 = vrot.lane.b32.xlu0 %v1970_v35, %s4515_s21  ;;  %v2724_v51 = vrot.slane %v2723_v34, 4  ;;  %v2719_v20 = vsel %vm4621_vm2, %v2714_v3, %v5904_v19 }
 0x1e1   : > { %v2913_v46 = vpop.permute.xlu1 %2912 }
 0x1e2   : > { %2990 = vst.msk [vmem:[#allocation2 + $0x1c] sm:$0xf] %vm2982_vm14, %v2913_v46  ;;  %v2911_v52 = vpop.permute.xlu0 %2910  ;;  %v5925_v46 = vrot.slane %v3027_v30, 5  ;;  %v3016_v30 = vld [vmem:[%s5088_s14 + $0x14] sm:$0x1] }
 0x1e3   : > { %2989 = vst.msk [vmem:[#allocation2 + $0x18] sm:$0xf] %vm2982_vm14, %v2911_v52  ;;  %2210 = vrot.lane.b32.xlu1 %v2127_v42, %s4516_s22  ;;  %v2726_v42 = vshll.u32 %v4162_v29, 16  ;;  %v3013_v52 = vld [vmem:[%s5088_s14 + $0x8] sm:$0x1] }
 0x1e4   : > { %2208 = vrot.lane.b32.xlu0 %v2124_v47, %s4516_s22  ;;  %v3033_v47 = vrot.slane %v3031_v31, 4 }
 0x1e5   : > { %v2945_v58 = vpop.permute.xlu1 %2944  ;;  %v2728_v63 = vrot.slane %v2726_v42, 5  ;;  %v4203_v42 = vld [vmem:[%s4610_s7 + $0x64] sm:$0xf] }
 0x1e6   : > { %3006 = vst.msk [vmem:[#allocation2 + $0x5c] sm:$0xf] %vm2982_vm14, %v2945_v58  ;;  %v2943_v0 = vpop.permute.xlu0 %2942  ;;  %v3015_v58 = vld [vmem:[%s5088_s14 + $0x10] sm:$0xf]  ;;  %v3034_v50 = vor.u32 %v3033_v47, %v5925_v46  ;;  %v3209_v47 = vrot.slane %v4203_v42, 5 }
 0x1e7   : > { %3005 = vst.msk [vmem:[#allocation2 + $0x58] sm:$0xf] %vm2982_vm14, %v2943_v0  ;;  %2242 = vrot.lane.b32.xlu1 %v2183_v54, %s4516_s22  ;;  %v2744_v54 = vshrl.u32 %v4164_v37, 16  ;;  %v3014_v0 = vld [vmem:[%s5088_s14 + $0xc] sm:$0xf]  ;;  %v3051_v61 = vshll.u32 %v3015_v58, 16 }
 0x1e8   : > { %2240 = vrot.lane.b32.xlu0 %v2180_v59, %s4516_s22  ;;  %v3035_v21 = vrot.slane %v3034_v50, 4  ;;  %v3376_v50 = vld [vmem:[%s5088_s14] sm:$0xe] }
 0x1e9   : > { %v3274_v55 = vpop.permute.xlu1 %3273 }
 0x1ea   : > { %3353 = vst.msk [vmem:[#allocation2 + $0x14] sm:$0xf] %vm3347_vm15, %v3274_v55  ;;  %v3272_v9 = vpop.permute.xlu0 %3271  ;;  %v3037_v55 = vshll.u32 %v3013_v52, 16  ;;  %v4204_v52 = vld [vmem:[%s4610_s7 + $0x68] sm:$0x1] }
 0x1eb   : > { %3352 = vst.msk [vmem:[#allocation2 + $0x10] sm:$0xf] %vm3347_vm15, %v3272_v9  ;;  %2214 = vrot.lane.b32.xlu1 %v2134_v2, %s4516_s22  ;;  %v2498_v2 = vld [vmem:[%s5088_s14 + $0xc] sm:$0xf]  ;;  %v2746_v9 = vrot.slane %v2744_v54, 4 }
 0x1ec   : > { %2212 = vrot.lane.b32.xlu0 %v2131_v4, %s4516_s22  ;;  %v3024_v4 = vor.u32 %v3023_v49, %v3020_v48  ;;  %v3039_v22 = vrot.slane %v3037_v55, 5 }
 0x1ed   : > { %v3306_v12 = vpop.permute.xlu1 %3305 }
 0x1ee   : > { %3369 = vst.msk [vmem:[#allocation2 + $0x54] sm:$0xf] %vm3347_vm15, %v3306_v12  ;;  %v3304_v14 = vpop.permute.xlu0 %3303  ;;  %v2736_v12 = vrot.slane %v2734_v56, 5  ;;  %v3025_v28 = vrot.slane %v3024_v4, 4  ;;  %v3040_v16 = vsel %vm4621_vm2, %v3035_v21, %v3039_v22  ;;  %v3211_v56 = vrot.slane %v3209_v47, 4 }
 0x1ef   : > { %3368 = vst.msk [vmem:[#allocation2 + $0x50] sm:$0xf] %vm3347_vm15, %v3304_v14  ;;  %2320 = vrot.lane.b32.xlu1 %v2317_v10, %s4516_s22  ;;  %v3055_v10 = vshrl.u32 %v3015_v58, 16  ;;  %v3045_v14 = vshll.u32 %v3014_v0, 16  ;;  %v3212_v58 = vrot.slane %v4204_v52, 5 }
 0x1f0   : > { %2318 = vrot.lane.b32.xlu0 %v2314_v13, %s4516_s22  ;;  %v3042_v13 = vshrl.u32 %v3014_v0, 16  ;;  %v2737_v29 = vor.u32 %v2736_v12, %v2733_v5  ;;  %v4205_v12 = vld [vmem:[%s4610_s7 + $0x6c] sm:$0xe]  ;;  %v3381_v22 = vld [vmem:[%s5088_s14 + $0x14] sm:$0x1]  ;;  %s4283_s22 = sshll.u32 %s4502_s18, 12 }
 0x1f1   : > { %v3278_v23 = vpop.permute.xlu1 %3277  ;;  %v3047_v32 = vrot.slane %v3045_v14, 5  ;;  %v3213_v27 = vsel %vm4765_vm6, %v3211_v56, %v3212_v58  ;;  %v4233_v21 = vrot.slane %v4205_v12, 9  ;;  %s6172_s30 = scalar_lea.hbm %s6230_s4, %s4283_s22 }
 0x1f2   : > { %3355 = vst.msk [vmem:[#allocation2 + $0x1c] sm:$0xf] %vm3347_vm15, %v3278_v23  ;;  %v3276_v24 = vpop.permute.xlu0 %3275  ;;  %v4422_v25 = vld [vmem:[#allocation2 + $0x10] sm:$0xff]   ;;  %v2747_v23 = vor.u32 %v2746_v9, %v5941_v8  ;;  %v3044_v31 = vrot.slane %v3042_v13, 4 }
 0x1f3   : > { %3354 = vst.msk [vmem:[#allocation2 + $0x18] sm:$0xf] %vm3347_vm15, %v3276_v24  ;;  %2409 = vrot.lane.b32.xlu1 %v4127_v18, %s4517_s24  ;;  %4313 = vmatprep.mubr.msk.bf16.mxu0 %vm3557_vm0, %v4422_v25  ;;  %v2729_v18 = vsel %vm4621_vm2, %v2724_v51, %v2728_v63  ;;  %v3053_v24 = vrot.slane %v3051_v61, 5  ;;  %v3057_v25 = vrot.slane %v3055_v10, 4  ;;  %v4240_v61 = vrot.slane %v3376_v50, 9 }
 0x1f4   : > { %2407 = vrot.lane.b32.xlu0 %v4126_v7, %s4517_s24  ;;  %v2750_v7 = vshll.u32 %v4165_v6, 16  ;;  %v4207_v10 = vld [vmem:[%s4610_s7 + $0x74] sm:$0x1] }
 0x1f5   : > { %v3310_v35 = vpop.permute.xlu1 %3309 }
 0x1f6   : > { %3371 = vst.msk [vmem:[#allocation2 + $0x5c] sm:$0xf] %vm3347_vm15, %v3310_v35  ;;  %v3308_v38 = vpop.permute.xlu0 %3307  ;;  %v4423_v39 = vld [vmem:[#allocation2 + $0x50] sm:$0xff]   ;;  %v2752_v34 = vrot.slane %v2750_v7, 5  ;;  %v3058_v35 = vor.u32 %v3057_v25, %v3053_v24  ;;  %v3379_v7 = vld [vmem:[%s5088_s14 + $0xc] sm:$0xe] }
 0x1f7   : > { %3370 = vst.msk [vmem:[#allocation2 + $0x58] sm:$0xf] %vm3347_vm15, %v3308_v38  ;;  %2506 = vrot.lane.b32.xlu1 %v2497_v33, %s4517_s24  ;;  %4329 = vmatprep.mubr.msk.bf16.mxu1 %vm3557_vm0, %v4423_v39  ;;  %v2748_v33 = vrot.slane %v2747_v23, 4  ;;  %v3030_v38 = vsel %vm4621_vm2, %v3025_v28, %v5925_v46  ;;  %v2738_v39 = vrot.slane %v2737_v29, 4 }
 0x1f8   : > { %2504 = vrot.lane.b32.xlu0 %v2496_v36, %s4517_s24  ;;  %v3061_v36 = vshll.u32 %v3016_v30, 16  ;;  %v4241_v30 = vrot.slane %v3379_v7, 9 }
 0x1f9   : > { %v1884_v40 = vpop.permute.xlu1 %1883  ;;  %v2753_v44 = vsel %vm4621_vm2, %v2748_v33, %v2752_v34  ;;  %v2743_v49 = vsel %vm4621_vm2, %v2738_v39, %v5941_v8 }
 0x1fa   : > { %1949 = vst.msk [vmem:[#allocation2 + $0x64] sm:$0xf] %vm1923_vm11, %v1884_v40  ;;  %v1882_v59 = vpop.permute.xlu0 %1881  ;;  %v4424_v60 = vld [vmem:[#allocation2 + $0x18] sm:$0xff]   ;;  %v3063_v46 = vrot.slane %v3061_v36, 5  ;;  %v4202_v40 = vld [vmem:[%s4610_s7 + $0x60] sm:$0xe] }
 0x1fb   : > { %1948 = vst.msk [vmem:[#allocation2 + $0x60] sm:$0xf] %vm1923_vm11, %v1882_v59  ;;  %2413 = vrot.lane.b32.xlu1 %v4129_v41, %s4517_s24  ;;  %4314 = vmatmul.mubr.msk.bf16.gmra.mxu0 %vm3557_vm0, %v4424_v60  ;;  %v3048_v41 = vor.u32 %v3047_v32, %v3044_v31  ;;  %v3390_v59 = vrot.slane %v3377_v53, 5  ;;  %v4232_v0 = vrot.slane %v4202_v40, 9 }
 0x1fc   : > { %2411 = vrot.lane.b32.xlu0 %v4128_v45, %s4517_s24  ;;  %v3059_v45 = vrot.slane %v3058_v35, 4 }
 0x1fd   : > { %v1856_v11 = vpop.permute.xlu1 %1855  ;;  %v3049_v51 = vrot.slane %v3048_v41, 4  ;;  %v3392_v55 = vrot.slane %v3390_v59, 4  ;;  %v3210_v9 = vsel %vm4765_vm6, %v4232_v0, %v3209_v47 }
 0x1fe   : > { %1935 = vst.msk [vmem:[#allocation2 + $0x2c] sm:$0xf] %vm1923_vm11, %v1856_v11  ;;  %v1854_v15 = vpop.permute.xlu0 %1853  ;;  %v4425_v17 = vld [vmem:[#allocation2 + $0x58] sm:$0xff]   ;;  %v3064_v57 = vsel %vm4621_vm2, %v3059_v45, %v3063_v46  ;;  %v3380_v11 = vld [vmem:[%s5088_s14 + $0x10] sm:$0xf] }
 0x1ff   : > { %1934 = vst.msk [vmem:[#allocation2 + $0x28] sm:$0xf] %vm1923_vm11, %v1854_v15  ;;  %2510 = vrot.lane.b32.xlu1 %v2499_v1, %s4517_s24  ;;  %4330 = vmatmul.mubr.msk.bf16.gmra.mxu1 %vm3557_vm0, %v4425_v17  ;;  %v3054_v63 = vsel %vm4621_vm2, %v3049_v51, %v3053_v24  ;;  %v3378_v1 = vld [vmem:[%s5088_s14 + $0x8] sm:$0x1]  ;;  %v3219_v15 = vrot.slane %v4207_v10, 5  ;;  %v3397_v17 = vrot.slane %v3380_v11, 5 }
 0x200   : > { %2508 = vrot.lane.b32.xlu0 %v2498_v2, %s4517_s24  ;;  %v4206_v2 = vld [vmem:[%s4610_s7 + $0x70] sm:$0xf]  ;;  %v3393_v4 = vrot.slane %v3378_v1, 5  ;;  %s240_s7 = sand.u32 1, %s4494_s16  }
 0x201   : > { %v1888_v26 = vpop.permute.xlu1 %1887  ;;  %v3216_v6 = vrot.slane %v4206_v2, 5  ;;  %v3399_v25 = vrot.slane %v3397_v17, 4  ;;  %s3959_s14 = sshll.u32 %s240_s7, 8  ;;  %s6180_s18 = scalar_lea.sflag [#allocation4], %s240_s7 }
 0x202   : > { %1951 = vst.msk [vmem:[#allocation2 + $0x6c] sm:$0xf] %vm1923_vm11, %v1888_v26  ;;  %v1886_v19 = vpop.permute.xlu0 %1885  ;;  %v3394_v13 = vsel %vm4765_vm6, %v3392_v55, %v3393_v4  ;;  %v3400_v26 = vrot.slane %v3381_v22, 5  ;;  %s6087_s21 = scalar_lea.vmem [#allocation3], %s3959_s14 }
 0x203   : > { %1950 = vst.msk [vmem:[#allocation2 + $0x68] sm:$0xf] %vm1923_vm11, %v1886_v19  ;;  %2924 = vrot.lane.b32.xlu1 %v2729_v18, %s4518_s26  ;;  %v3218_v14 = vrot.slane %v3216_v6, 4  ;;  %v3217_v29 = vsel %vm4765_vm6, %v4233_v21, %v3216_v6  ;;  %s3851_s24 = sshll.u32 %s6087_s21, 4  ;;  %s6175_s24 = int_to_ptr.vmem [resolvable:$true] %s3851_s24 }
 0x204   : > { %2922 = vrot.lane.b32.xlu0 %v2719_v20, %s4518_s26  ;;  %v3391_v20 = vsel %vm4765_vm6, %v4240_v61, %v3390_v59  ;;  %v3401_v32 = vsel %vm4765_vm6, %v3399_v25, %v3400_v26  ;;  %s4434_s5 = scalar_lea.vmem %s6175_s24, 4096  ;;  %p4441_p1 = scmp.lt.s32.totalorder %s6175_s24, %s4439_s8 }
 0x205   : > { %v2203_v37 = vpop.permute.xlu1 %2202  ;;  %v3220_v24 = vsel %vm4765_vm6, %v3218_v14, %v3219_v15  ;;  %p4435_p12 = scmp.ne.s32.totalorder %s6175_s24, %s4434_s5  ;;  %p4442_p2 = scmp.lt.s32.totalorder %s4440_s10, %s4434_s5 }
 0x206   : > { %2284 = vst.msk [vmem:[#allocation2 + $0x24] sm:$0xf] %vm2274_vm12, %v2203_v37  ;;  %v2201_v43 = vpop.permute.xlu0 %2200 }
 0x207   : > { %2283 = vst.msk [vmem:[#allocation2 + $0x20] sm:$0xf] %vm2274_vm12, %v2201_v43  ;;  %3067 = vrot.lane.b32.xlu1 %v3040_v16, %s4518_s26  ;;  %v3398_v16 = vsel %vm4765_vm6, %v4241_v30, %v3397_v17  ;;  %v6078_v17 = vld [vmem:[%s6229_s3] ss:$0 sm:$0xff]  ;;  %p4436_p13 = pnand %p4435_p12, %p4587_p4  ;;  %p4443_p3 = por %p4442_p2, %p4441_p1 }
 0x208   : > { %3065 = vrot.lane.b32.xlu0 %v3030_v38, %s4518_s26 }
 0x209   : > { %v2235_v48 = vpop.permute.xlu1 %2234  ;;  %p4437_p0 = pneg %p4436_p13 }
 0x20a   : > { %2300 = vst.msk [vmem:[#allocation2 + $0x64] sm:$0xf] %vm2274_vm12, %v2235_v48  ;;  %v2233_v54 = vpop.permute.xlu0 %2232 }
 0x20b   : > { %2299 = vst.msk [vmem:[#allocation2 + $0x60] sm:$0xf] %vm2274_vm12, %v2233_v54  ;;  %2928 = vrot.lane.b32.xlu1 %v2753_v44, %s4518_s26  ;;  %p4444_p5 = pnand %p4443_p3, %p4437_p0 }
 0x20c   : > { %2926 = vrot.lane.b32.xlu0 %v2743_v49, %s4518_s26 }
 0x20d   : > { %v2207_v60 = vpop.permute.xlu1 %2206 }
 0x20e   : > { %2286 = vst.msk [vmem:[#allocation2 + $0x2c] sm:$0xf] %vm2274_vm12, %v2207_v60  ;;  %v2205_v3 = vpop.permute.xlu0 %2204 }
 0x20f   : > { %2285 = vst.msk [vmem:[#allocation2 + $0x28] sm:$0xf] %vm2274_vm12, %v2205_v3  ;;  %3071 = vrot.lane.b32.xlu1 %v3064_v57, %s4518_s26 }
 0x210   : > { %3069 = vrot.lane.b32.xlu0 %v3054_v63, %s4518_s26 }
 0x211   : > { %v2239_v8 = vpop.permute.xlu1 %2238 }
 0x212   : > { %2302 = vst.msk [vmem:[#allocation2 + $0x6c] sm:$0xf] %vm2274_vm12, %v2239_v8  ;;  %v2237_v5 = vpop.permute.xlu0 %2236 }
 0x213   : > { %2301 = vst.msk [vmem:[#allocation2 + $0x68] sm:$0xf] %vm2274_vm12, %v2237_v5  ;;  %3289 = vrot.lane.b32.xlu1 %v3213_v27, %s4519_s11 }
 0x214   : > { %3287 = vrot.lane.b32.xlu0 %v3210_v9, %s4519_s11 }
 0x215   : > { %v2402_v18 = vpop.permute.xlu1 %2401 }
 0x216   : > { %2477 = vst.msk [vmem:[#allocation2 + $0x24] sm:$0xf] %vm2467_vm13, %v2402_v18  ;;  %v2400_v23 = vpop.permute.xlu0 %2399 }
 0x217   : > { %2476 = vst.msk [vmem:[#allocation2 + $0x20] sm:$0xf] %vm2467_vm13, %v2400_v23  ;;  %3404 = vrot.lane.b32.xlu1 %v3394_v13, %s4519_s11 }
 0x218   : > { %3402 = vrot.lane.b32.xlu0 %v3391_v20, %s4519_s11 }
 0x219   : > { %v2434_v28 = vpop.permute.xlu1 %2433 }
 0x21a   : > { %2493 = vst.msk [vmem:[#allocation2 + $0x64] sm:$0xf] %vm2467_vm13, %v2434_v28  ;;  %v2432_v31 = vpop.permute.xlu0 %2431 }
 0x21b   : > { %2492 = vst.msk [vmem:[#allocation2 + $0x60] sm:$0xf] %vm2467_vm13, %v2432_v31  ;;  %3293 = vrot.lane.b32.xlu1 %v3220_v24, %s4519_s11 }
 0x21c   : > { %3291 = vrot.lane.b32.xlu0 %v3217_v29, %s4519_s11 }
 0x21d   : > { %v2406_v19 = vpop.permute.xlu1 %2405 }
 0x21e   : > { %2479 = vst.msk [vmem:[#allocation2 + $0x2c] sm:$0xf] %vm2467_vm13, %v2406_v19  ;;  %v2404_v33 = vpop.permute.xlu0 %2403 }
 0x21f   : > { %2478 = vst.msk [vmem:[#allocation2 + $0x28] sm:$0xf] %vm2467_vm13, %v2404_v33  ;;  %3408 = vrot.lane.b32.xlu1 %v3401_v32, %s4519_s11 }
 0x220   : > { %3406 = vrot.lane.b32.xlu0 %v3398_v16, %s4519_s11 }
 0x221   : > { %v2438_v34 = vpop.permute.xlu1 %2437 }
 0x222   : > { %2495 = vst.msk [vmem:[#allocation2 + $0x6c] sm:$0xf] %vm2467_vm13, %v2438_v34  ;;  %v2436_v35 = vpop.permute.xlu0 %2435 }
 0x223   : > { %2494 = vst.msk [vmem:[#allocation2 + $0x68] sm:$0xf] %vm2467_vm13, %v2436_v35 }
 0x225   : > { %v2917_v36 = vpop.permute.xlu1 %2916 }
 0x226   : > { %2992 = vst.msk [vmem:[#allocation2 + $0x24] sm:$0xf] %vm2982_vm14, %v2917_v36  ;;  %v2915_v62 = vpop.permute.xlu0 %2914 }
 0x227   : > { %2991 = vst.msk [vmem:[#allocation2 + $0x20] sm:$0xf] %vm2982_vm14, %v2915_v62 }
 0x229   : > { %v2949_v37 = vpop.permute.xlu1 %2948 }
 0x22a   : > { %3008 = vst.msk [vmem:[#allocation2 + $0x64] sm:$0xf] %vm2982_vm14, %v2949_v37  ;;  %v2947_v38 = vpop.permute.xlu0 %2946 }
 0x22b   : > { %3007 = vst.msk [vmem:[#allocation2 + $0x60] sm:$0xf] %vm2982_vm14, %v2947_v38 }
 0x22d   : > { %v2921_v39 = vpop.permute.xlu1 %2920 }
 0x22e   : > { %2994 = vst.msk [vmem:[#allocation2 + $0x2c] sm:$0xf] %vm2982_vm14, %v2921_v39  ;;  %v2919_v41 = vpop.permute.xlu0 %2918 }
 0x22f   : > { %2993 = vst.msk [vmem:[#allocation2 + $0x28] sm:$0xf] %vm2982_vm14, %v2919_v41 }
 0x231   : > { %v2953_v42 = vpop.permute.xlu1 %2952 }
 0x232   : > { %3010 = vst.msk [vmem:[#allocation2 + $0x6c] sm:$0xf] %vm2982_vm14, %v2953_v42  ;;  %v2951_v43 = vpop.permute.xlu0 %2950 }
 0x233   : > { %3009 = vst.msk [vmem:[#allocation2 + $0x68] sm:$0xf] %vm2982_vm14, %v2951_v43 }
 0x235   : > { %v3282_v44 = vpop.permute.xlu1 %3281 }
 0x236   : > { %3357 = vst.msk [vmem:[#allocation2 + $0x24] sm:$0xf] %vm3347_vm15, %v3282_v44  ;;  %v3280_v45 = vpop.permute.xlu0 %3279 }
 0x237   : > { %3356 = vst.msk [vmem:[#allocation2 + $0x20] sm:$0xf] %vm3347_vm15, %v3280_v45 }
 0x239   : > { %v3314_v46 = vpop.permute.xlu1 %3313 }
 0x23a   : > { %3373 = vst.msk [vmem:[#allocation2 + $0x64] sm:$0xf] %vm3347_vm15, %v3314_v46  ;;  %v3312_v47 = vpop.permute.xlu0 %3311 }
 0x23b   : > { %3372 = vst.msk [vmem:[#allocation2 + $0x60] sm:$0xf] %vm3347_vm15, %v3312_v47 }
 0x23d   : > { %v3286_v48 = vpop.permute.xlu1 %3285 }
 0x23e   : > { %3359 = vst.msk [vmem:[#allocation2 + $0x2c] sm:$0xf] %vm3347_vm15, %v3286_v48  ;;  %v3284_v49 = vpop.permute.xlu0 %3283  ;;  %v4426_v51 = vld [vmem:[#allocation2 + $0x20] sm:$0xff]  }
 0x23f   : > { %3358 = vst.msk [vmem:[#allocation2 + $0x28] sm:$0xf] %vm3347_vm15, %v3284_v49  ;;  %4317 = vmatprep.mubr.msk.bf16.mxu0 %vm3557_vm0, %v4426_v51 }
 0x241   : > { %v3318_v52 = vpop.permute.xlu1 %3317 }
 0x242   : > { %3375 = vst.msk [vmem:[#allocation2 + $0x6c] sm:$0xf] %vm3347_vm15, %v3318_v52  ;;  %v3316_v53 = vpop.permute.xlu0 %3315  ;;  %v4427_v54 = vld [vmem:[#allocation2 + $0x60] sm:$0xff]  }
 0x243   : > { %3374 = vst.msk [vmem:[#allocation2 + $0x68] sm:$0xf] %vm3347_vm15, %v3316_v53  ;;  %4333 = vmatprep.mubr.msk.bf16.mxu1 %vm3557_vm0, %v4427_v54 }
 0x245   : > { %v1860_v40 = vpop.permute.xlu1 %1859 }
 0x246   : > { %1937 = vst.msk [vmem:[#allocation2 + $0x34] sm:$0xf] %vm1923_vm11, %v1860_v40  ;;  %v1858_v57 = vpop.permute.xlu0 %1857  ;;  %v4428_v56 = vld [vmem:[#allocation2 + $0x28] sm:$0xff]  }
 0x247   : > { %1936 = vst.msk [vmem:[#allocation2 + $0x30] sm:$0xf] %vm1923_vm11, %v1858_v57  ;;  %4318 = vmatmul.mubr.msk.bf16.gmra.mxu0 %vm3557_vm0, %v4428_v56 }
 0x249   : > { %v1892_v58 = vpop.permute.xlu1 %1891 }
 0x24a   : > { %1953 = vst.msk [vmem:[#allocation2 + $0x74] sm:$0xf] %vm1923_vm11, %v1892_v58  ;;  %v1890_v59 = vpop.permute.xlu0 %1889  ;;  %v4429_v60 = vld [vmem:[#allocation2 + $0x68] sm:$0xff]  }
 0x24b   : > { %1952 = vst.msk [vmem:[#allocation2 + $0x70] sm:$0xf] %vm1923_vm11, %v1890_v59  ;;  %4334 = vmatmul.mubr.msk.bf16.gmra.mxu1 %vm3557_vm0, %v4429_v60 }
 0x24d   : > { %v1864_v63 = vpop.permute.xlu1 %1863 }
 0x24e   : > { %1939 = vst.msk [vmem:[#allocation2 + $0x3c] sm:$0xf] %vm1923_vm11, %v1864_v63  ;;  %v1862_v0 = vpop.permute.xlu0 %1861 }
 0x24f   : > { %1938 = vst.msk [vmem:[#allocation2 + $0x38] sm:$0xf] %vm1923_vm11, %v1862_v0 }
 0x251   : > { %v1984_v1 = vpop.permute.xlu1 %1983 }
 0x252   : > { %1988 = vst.msk [vmem:[#allocation2 + $0x7c] sm:$0xf] %vm1923_vm11, %v1984_v1  ;;  %v1982_v2 = vpop.permute.xlu0 %1981 }
 0x253   : > { %1987 = vst.msk [vmem:[#allocation2 + $0x78] sm:$0xf] %vm1923_vm11, %v1982_v2 }
 0x255   : > { %v2211_v3 = vpop.permute.xlu1 %2210 }
 0x256   : > { %2288 = vst.msk [vmem:[#allocation2 + $0x34] sm:$0xf] %vm2274_vm12, %v2211_v3  ;;  %v2209_v50 = vpop.permute.xlu0 %2208 }
 0x257   : > { %2287 = vst.msk [vmem:[#allocation2 + $0x30] sm:$0xf] %vm2274_vm12, %v2209_v50 }
 0x259   : > { %v2243_v27 = vpop.permute.xlu1 %2242 }
 0x25a   : > { %2304 = vst.msk [vmem:[#allocation2 + $0x74] sm:$0xf] %vm2274_vm12, %v2243_v27  ;;  %v2241_v55 = vpop.permute.xlu0 %2240 }
 0x25b   : > { %2303 = vst.msk [vmem:[#allocation2 + $0x70] sm:$0xf] %vm2274_vm12, %v2241_v55 }
 0x25d   : > { %v2215_v4 = vpop.permute.xlu1 %2214 }
 0x25e   : > { %2290 = vst.msk [vmem:[#allocation2 + $0x3c] sm:$0xf] %vm2274_vm12, %v2215_v4  ;;  %v2213_v6 = vpop.permute.xlu0 %2212 }
 0x25f   : > { %2289 = vst.msk [vmem:[#allocation2 + $0x38] sm:$0xf] %vm2274_vm12, %v2213_v6 }
 0x261   : > { %v2321_v8 = vpop.permute.xlu1 %2320 }
 0x262   : > { %2325 = vst.msk [vmem:[#allocation2 + $0x7c] sm:$0xf] %vm2274_vm12, %v2321_v8  ;;  %v2319_v9 = vpop.permute.xlu0 %2318 }
 0x263   : > { %2324 = vst.msk [vmem:[#allocation2 + $0x78] sm:$0xf] %vm2274_vm12, %v2319_v9 }
 0x265   : > { %v2410_v61 = vpop.permute.xlu1 %2409 }
 0x266   : > { %2481 = vst.msk [vmem:[#allocation2 + $0x34] sm:$0xf] %vm2467_vm13, %v2410_v61  ;;  %v2408_v10 = vpop.permute.xlu0 %2407 }
 0x267   : > { %2480 = vst.msk [vmem:[#allocation2 + $0x30] sm:$0xf] %vm2467_vm13, %v2408_v10 }
 0x269   : > { %v2507_v11 = vpop.permute.xlu1 %2506 }
 0x26a   : > { %2517 = vst.msk [vmem:[#allocation2 + $0x74] sm:$0xf] %vm2467_vm13, %v2507_v11  ;;  %v2505_v5 = vpop.permute.xlu0 %2504 }
 0x26b   : > { %2516 = vst.msk [vmem:[#allocation2 + $0x70] sm:$0xf] %vm2467_vm13, %v2505_v5 }
 0x26d   : > { %v2414_v12 = vpop.permute.xlu1 %2413 }
 0x26e   : > { %2483 = vst.msk [vmem:[#allocation2 + $0x3c] sm:$0xf] %vm2467_vm13, %v2414_v12  ;;  %v2412_v13 = vpop.permute.xlu0 %2411 }
 0x26f   : > { %2482 = vst.msk [vmem:[#allocation2 + $0x38] sm:$0xf] %vm2467_vm13, %v2412_v13 }
 0x271   : > { %v2511_v14 = vpop.permute.xlu1 %2510 }
 0x272   : > { %2519 = vst.msk [vmem:[#allocation2 + $0x7c] sm:$0xf] %vm2467_vm13, %v2511_v14  ;;  %v2509_v15 = vpop.permute.xlu0 %2508 }
 0x273   : > { %2518 = vst.msk [vmem:[#allocation2 + $0x78] sm:$0xf] %vm2467_vm13, %v2509_v15  ;;  %v4311_v18 = vpop.f32.mrf.mxu0 }
 0x274   : > { %v3653_v20 = vadd.f32 %v4311_v18, %v6078_v17 }
 0x275   : > { %v2925_v21 = vpop.permute.xlu1 %2924  ;;  %v3644_v23 = vpop.f32.mrf.mxu0 }
 0x276   : > { %2996 = vst.msk [vmem:[#allocation2 + $0x34] sm:$0xf] %vm2982_vm14, %v2925_v21  ;;  %v2923_v22 = vpop.permute.xlu0 %2922  ;;  %v3773_v7 = vmax.f32 %v3653_v20, 0.0  ;;  %v3645_v24 = vadd.f32 %v6078_v17, %v3644_v23 }
 0x277   : > { %2995 = vst.msk [vmem:[#allocation2 + $0x30] sm:$0xf] %vm2982_vm14, %v2923_v22  ;;  %v4312_v25 = vpop.f32.mrf.mxu0  ;;  %v4327_v26 = vpop.f32.mrf.mxu1 }
 0x278   : > { %3805 = vst [vmem:[%s6087_s21 + $0x10] sm:$0xff] %v3773_v7  ;;  %v3771_v28 = vmax.f32 %v3645_v24, 0.0  ;;  %v3656_v29 = vadd.f32 %v4312_v25, %v6078_v17  ;;  %v3717_v30 = vadd.f32 %v4327_v26, %v6078_v17 }
 0x279   : > { %v3068_v31 = vpop.permute.xlu1 %3067  ;;  %v3647_v19 = vpop.f32.mrf.mxu0 }
 0x27a   : > { %3078 = vst.msk [vmem:[#allocation2 + $0x74] sm:$0xf] %vm2982_vm14, %v3068_v31  ;;  %v3066_v32 = vpop.permute.xlu0 %3065  ;;  %3803 = vst [vmem:[%s6087_s21] sm:$0xff] %v3771_v28  ;;  %v3774_v16 = vmax.f32 %v3656_v29, 0.0  ;;  %v3789_v33 = vmax.f32 %v3717_v30, 0.0  ;;  %v3648_v34 = vadd.f32 %v6078_v17, %v3647_v19  ;;  %v3708_v35 = vpop.f32.mrf.mxu1 }
 0x27b   : > { %3077 = vst.msk [vmem:[#allocation2 + $0x70] sm:$0xf] %vm2982_vm14, %v3066_v32  ;;  %v3709_v36 = vadd.f32 %v6078_v17, %v3708_v35 }
 0x27c   : > { %3806 = vst [vmem:[%s6087_s21 + $0x18] sm:$0xff] %v3774_v16  ;;  %3821 = vst [vmem:[%s6087_s21 + $0x90] sm:$0xff] %v3789_v33  ;;  %v3772_v62 = vmax.f32 %v3648_v34, 0.0  ;;  %v4328_v37 = vpop.f32.mrf.mxu1 }
 0x27d   : > { %v2929_v38 = vpop.permute.xlu1 %2928  ;;  %v3787_v39 = vmax.f32 %v3709_v36, 0.0  ;;  %v3720_v41 = vadd.f32 %v4328_v37, %v6078_v17 }
 0x27e   : > { %2998 = vst.msk [vmem:[#allocation2 + $0x3c] sm:$0xf] %vm2982_vm14, %v2929_v38  ;;  %v2927_v42 = vpop.permute.xlu0 %2926  ;;  %3804 = vst [vmem:[%s6087_s21 + $0x8] sm:$0xff] %v3772_v62  ;;  %v3711_v43 = vpop.f32.mrf.mxu1 }
 0x27f   : > { %2997 = vst.msk [vmem:[#allocation2 + $0x38] sm:$0xf] %vm2982_vm14, %v2927_v42  ;;  %3819 = vst [vmem:[%s6087_s21 + $0x80] sm:$0xff] %v3787_v39  ;;  %v3790_v44 = vmax.f32 %v3720_v41, 0.0  ;;  %v3712_v45 = vadd.f32 %v6078_v17, %v3711_v43 }
 0x281   : > { %v3072_v46 = vpop.permute.xlu1 %3071  ;;  %3822 = vst [vmem:[%s6087_s21 + $0x98] sm:$0xff] %v3790_v44  ;;  %v3788_v47 = vmax.f32 %v3712_v45, 0.0 }
 0x282   : > { %3080 = vst.msk [vmem:[#allocation2 + $0x7c] sm:$0xf] %vm2982_vm14, %v3072_v46  ;;  %v3070_v48 = vpop.permute.xlu0 %3069 }
 0x283   : > { %3079 = vst.msk [vmem:[#allocation2 + $0x78] sm:$0xf] %vm2982_vm14, %v3070_v48  ;;  %3820 = vst [vmem:[%s6087_s21 + $0x88] sm:$0xff] %v3788_v47 }
 0x285   : > { %v3290_v49 = vpop.permute.xlu1 %3289 }
 0x286   : > { %3361 = vst.msk [vmem:[#allocation2 + $0x34] sm:$0xf] %vm3347_vm15, %v3290_v49  ;;  %v3288_v51 = vpop.permute.xlu0 %3287 }
 0x287   : > { %3360 = vst.msk [vmem:[#allocation2 + $0x30] sm:$0xf] %vm3347_vm15, %v3288_v51 }
 0x289   : > { %v3405_v52 = vpop.permute.xlu1 %3404 }
 0x28a   : > { %3415 = vst.msk [vmem:[#allocation2 + $0x74] sm:$0xf] %vm3347_vm15, %v3405_v52  ;;  %v3403_v53 = vpop.permute.xlu0 %3402 }
 0x28b   : > { %3414 = vst.msk [vmem:[#allocation2 + $0x70] sm:$0xf] %vm3347_vm15, %v3403_v53 }
 0x28d   : > { %v3294_v54 = vpop.permute.xlu1 %3293 }
 0x28e   : > { %3363 = vst.msk [vmem:[#allocation2 + $0x3c] sm:$0xf] %vm3347_vm15, %v3294_v54  ;;  %v3292_v40 = vpop.permute.xlu0 %3291  ;;  %v4430_v57 = vld [vmem:[#allocation2 + $0x30] sm:$0xff]  }
 0x28f   : > { %3362 = vst.msk [vmem:[#allocation2 + $0x38] sm:$0xf] %vm3347_vm15, %v3292_v40  ;;  %4321 = vmatprep.mubr.msk.bf16.mxu0 %vm3557_vm0, %v4430_v57 }
 0x291   : > { %v3409_v56 = vpop.permute.xlu1 %3408 }
 0x292   : > { %3417 = vst.msk [vmem:[#allocation2 + $0x7c] sm:$0xf] %vm3347_vm15, %v3409_v56  ;;  %v3407_v58 = vpop.permute.xlu0 %3406  ;;  %v4431_v59 = vld [vmem:[#allocation2 + $0x70] sm:$0xff]  }
 0x293   : > { %3416 = vst.msk [vmem:[#allocation2 + $0x78] sm:$0xf] %vm3347_vm15, %v3407_v58  ;;  %4337 = vmatprep.mubr.msk.bf16.mxu1 %vm3557_vm0, %v4431_v59 }
 0x296   : > { %v4432_v60 = vld [vmem:[#allocation2 + $0x38] sm:$0xff]  }
 0x297   : > { %4322 = vmatmul.mubr.msk.bf16.gmra.mxu0 %vm3557_vm0, %v4432_v60 }
 0x29a   : > { %v4433_v63 = vld [vmem:[#allocation2 + $0x78] sm:$0xff]  }
 0x29b   : > { %4338 = vmatmul.mubr.msk.bf16.gmra.mxu1 %vm3557_vm0, %v4433_v63 }
 0x2bb   : > { %v4315_v0 = vpop.f32.mrf.mxu0 }
 0x2bc   : > { %v3669_v1 = vadd.f32 %v4315_v0, %v6078_v17 }
 0x2bd   : > { %v3660_v2 = vpop.f32.mrf.mxu0 }
 0x2be   : > { %v3777_v3 = vmax.f32 %v3669_v1, 0.0  ;;  %v3661_v50 = vadd.f32 %v6078_v17, %v3660_v2 }
 0x2bf   : > { %v4316_v27 = vpop.f32.mrf.mxu0  ;;  %v4331_v55 = vpop.f32.mrf.mxu1 }
 0x2c0   : > { %3809 = vst [vmem:[%s6087_s21 + $0x30] sm:$0xff] %v3777_v3  ;;  %v3775_v4 = vmax.f32 %v3661_v50, 0.0  ;;  %v3672_v6 = vadd.f32 %v4316_v27, %v6078_v17  ;;  %v3733_v8 = vadd.f32 %v4331_v55, %v6078_v17 }
 0x2c1   : > { %v3663_v9 = vpop.f32.mrf.mxu0  ;;  %v3724_v61 = vpop.f32.mrf.mxu1 }
 0x2c2   : > { %3807 = vst [vmem:[%s6087_s21 + $0x20] sm:$0xff] %v3775_v4  ;;  %v3778_v10 = vmax.f32 %v3672_v6, 0.0  ;;  %v3793_v11 = vmax.f32 %v3733_v8, 0.0  ;;  %v3664_v5 = vadd.f32 %v6078_v17, %v3663_v9  ;;  %v3725_v12 = vadd.f32 %v6078_v17, %v3724_v61 }
 0x2c3   : > { %v4332_v13 = vpop.f32.mrf.mxu1 }
 0x2c4   : > { %3810 = vst [vmem:[%s6087_s21 + $0x38] sm:$0xff] %v3778_v10  ;;  %3825 = vst [vmem:[%s6087_s21 + $0xb0] sm:$0xff] %v3793_v11  ;;  %v3776_v14 = vmax.f32 %v3664_v5, 0.0  ;;  %v3791_v15 = vmax.f32 %v3725_v12, 0.0  ;;  %v3736_v18 = vadd.f32 %v4332_v13, %v6078_v17 }
 0x2c5   : > { %v3727_v20 = vpop.f32.mrf.mxu1 }
 0x2c6   : > { %3808 = vst [vmem:[%s6087_s21 + $0x28] sm:$0xff] %v3776_v14  ;;  %3823 = vst [vmem:[%s6087_s21 + $0xa0] sm:$0xff] %v3791_v15  ;;  %v3794_v21 = vmax.f32 %v3736_v18, 0.0  ;;  %v3728_v22 = vadd.f32 %v6078_v17, %v3727_v20 }
 0x2c8   : > { %3826 = vst [vmem:[%s6087_s21 + $0xb8] sm:$0xff] %v3794_v21  ;;  %v3792_v23 = vmax.f32 %v3728_v22, 0.0 }
 0x2ca   : > { %3824 = vst [vmem:[%s6087_s21 + $0xa8] sm:$0xff] %v3792_v23 }
 0x307   : > { %v4319_v7 = vpop.f32.mrf.mxu0 }
 0x308   : > { %v3685_v24 = vadd.f32 %v4319_v7, %v6078_v17 }
 0x309   : > { %v3676_v25 = vpop.f32.mrf.mxu0 }
 0x30a   : > { %v3781_v26 = vmax.f32 %v3685_v24, 0.0  ;;  %v3677_v28 = vadd.f32 %v6078_v17, %v3676_v25 }
 0x30b   : > { %v4320_v29 = vpop.f32.mrf.mxu0  ;;  %v4335_v30 = vpop.f32.mrf.mxu1 }
 0x30c   : > { %3813 = vst [vmem:[%s6087_s21 + $0x50] sm:$0xff] %v3781_v26  ;;  %v3779_v31 = vmax.f32 %v3677_v28, 0.0  ;;  %v3688_v32 = vadd.f32 %v4320_v29, %v6078_v17  ;;  %v3749_v19 = vadd.f32 %v4335_v30, %v6078_v17 }
 0x30d   : > { %v3679_v16 = vpop.f32.mrf.mxu0  ;;  %v3740_v33 = vpop.f32.mrf.mxu1 }
 0x30e   : > { %3811 = vst [vmem:[%s6087_s21 + $0x40] sm:$0xff] %v3779_v31  ;;  %v3782_v34 = vmax.f32 %v3688_v32, 0.0  ;;  %v3797_v35 = vmax.f32 %v3749_v19, 0.0  ;;  %v3680_v36 = vadd.f32 %v6078_v17, %v3679_v16  ;;  %v3741_v62 = vadd.f32 %v6078_v17, %v3740_v33 }
 0x30f   : > { %v4336_v37 = vpop.f32.mrf.mxu1 }
 0x310   : > { %3814 = vst [vmem:[%s6087_s21 + $0x58] sm:$0xff] %v3782_v34  ;;  %3829 = vst [vmem:[%s6087_s21 + $0xd0] sm:$0xff] %v3797_v35  ;;  %v3780_v38 = vmax.f32 %v3680_v36, 0.0  ;;  %v3795_v39 = vmax.f32 %v3741_v62, 0.0  ;;  %v3752_v41 = vadd.f32 %v4336_v37, %v6078_v17 }
 0x311   : > { %v3743_v42 = vpop.f32.mrf.mxu1 }
 0x312   : > { %3812 = vst [vmem:[%s6087_s21 + $0x48] sm:$0xff] %v3780_v38  ;;  %3827 = vst [vmem:[%s6087_s21 + $0xc0] sm:$0xff] %v3795_v39  ;;  %v3798_v43 = vmax.f32 %v3752_v41, 0.0  ;;  %v3744_v44 = vadd.f32 %v6078_v17, %v3743_v42 }
 0x314   : > { %3830 = vst [vmem:[%s6087_s21 + $0xd8] sm:$0xff] %v3798_v43  ;;  %v3796_v45 = vmax.f32 %v3744_v44, 0.0 }
 0x316   : > { %3828 = vst [vmem:[%s6087_s21 + $0xc8] sm:$0xff] %v3796_v45 }
 0x357   : > { %v4323_v46 = vpop.f32.mrf.mxu0 }
 0x358   : > { %v3701_v47 = vadd.f32 %v4323_v46, %v6078_v17 }
 0x359   : > { %v3692_v48 = vpop.f32.mrf.mxu0 }
 0x35a   : > { %v3785_v49 = vmax.f32 %v3701_v47, 0.0  ;;  %v3693_v51 = vadd.f32 %v6078_v17, %v3692_v48 }
 0x35b   : > { %v4324_v52 = vpop.f32.mrf.mxu0  ;;  %v4339_v53 = vpop.f32.mrf.mxu1 }
 0x35c   : > { %3817 = vst [vmem:[%s6087_s21 + $0x70] sm:$0xff] %v3785_v49  ;;  %v3783_v54 = vmax.f32 %v3693_v51, 0.0  ;;  %v3704_v40 = vadd.f32 %v4324_v52, %v6078_v17  ;;  %v3765_v57 = vadd.f32 %v4339_v53, %v6078_v17 }
 0x35d   : > { %v3695_v56 = vpop.f32.mrf.mxu0  ;;  %v3756_v58 = vpop.f32.mrf.mxu1 }
 0x35e   : > { %3815 = vst [vmem:[%s6087_s21 + $0x60] sm:$0xff] %v3783_v54  ;;  %v3786_v59 = vmax.f32 %v3704_v40, 0.0  ;;  %v3801_v60 = vmax.f32 %v3765_v57, 0.0  ;;  %v3696_v63 = vadd.f32 %v6078_v17, %v3695_v56  ;;  %v3757_v0 = vadd.f32 %v6078_v17, %v3756_v58 }
 0x35f   : > { %v4340_v1 = vpop.f32.mrf.mxu1 }
 0x360   : > { %3818 = vst [vmem:[%s6087_s21 + $0x78] sm:$0xff] %v3786_v59  ;;  %3833 = vst [vmem:[%s6087_s21 + $0xf0] sm:$0xff] %v3801_v60  ;;  %v3784_v2 = vmax.f32 %v3696_v63, 0.0  ;;  %v3799_v3 = vmax.f32 %v3757_v0, 0.0  ;;  %v3768_v50 = vadd.f32 %v4340_v1, %v6078_v17 }
 0x361   : > { %v3759_v27 = vpop.f32.mrf.mxu1 }
 0x362   : > { %3816 = vst [vmem:[%s6087_s21 + $0x68] sm:$0xff] %v3784_v2  ;;  %3831 = vst [vmem:[%s6087_s21 + $0xe0] sm:$0xff] %v3799_v3  ;;  %v3802_v55 = vmax.f32 %v3768_v50, 0.0  ;;  %v3760_v4 = vadd.f32 %v6078_v17, %v3759_v27 }
 0x364   : > { %3834 = vst [vmem:[%s6087_s21 + $0xf8] sm:$0xff] %v3802_v55  ;;  %v3800_v6 = vmax.f32 %v3760_v4, 0.0 }
 0x366   : > { %3832 = vst [vmem:[%s6087_s21 + $0xe8] sm:$0xff] %v3800_v6 }
 0x367   : > { %4447 = shalt.err (!%p4444_p5)
}
 0x368   : > { %s4448_s11 = scalar_lea.hbm %s6172_s30, 4096  ;;  %s4452_s13 = scalar_lea.hbm %s6230_s4, 8192 }
 0x369   : > { %p4449_p6 = scmp.ne.s32.totalorder %s6172_s30, %s4448_s11  ;;  %p4453_p10 = scmp.lt.s32.totalorder %s6172_s30, %s6230_s4 }
 0x36a   : > { %p4454_p11 = scmp.lt.s32.totalorder %s4452_s13, %s4448_s11 }
 0x36b   : > { %p4450_p7 = pnand %p4449_p6, %p4587_p4 }
 0x36c   : > { %p4455_p12 = por %p4454_p11, %p4453_p10 }
 0x36d   : > { %p4451_p9 = pneg %p4450_p7 }
 0x36f   : > { %p4456_p13 = pnand %p4455_p12, %p4451_p9 }
 0x371   : > { %4459 = shalt.err (!%p4456_p13)
}
 0x372   : > { %s4521_s22 = smov 128  }
 0x373   : > { %4351 = dma.vmem_to_hbm [thread:$0]  (%p4587_p4), %s6175_s24, 4096, %s6172_s30, %s6180_s18, %s4521_s22, %s4521_s22, %s4513_s9  }
 0x374 PF: > { %p4357_p0 = scmp.ge.s32.totalorder %s4510_s20, 2  ;;  %s3866_s26 = sand.u32 1, %s4490_s15  }
 0x375   : > { %s3867_s29 = scalar_lea.sflag [#allocation4], %s3866_s26 }
 0x376   : > { %p4354_p1 = pnand %p4357_p0, %p4594_p8 }
 0x378   : > { %p4355_p2 = pneg %p4354_p1 }
 0x37a   : > { %4485 = dma.done.wait (%p4355_p2), %s3867_s29, 4096  }
 0x37b   : > { %4487 = vsyncadd (%p4355_p2), %s3867_s29, 4294963200  ;;  %s17_s20 = sadd.s32 1, %s4510_s20   ;;  %s6237_s15 = smov %s4494_s16 }
 0x37c   : > { %p14_p3 = scmp.ge.s32.totalorder %s17_s20, 4   ;;  %s6238_s16 = smov %s4498_s17 }
 0x37d   : > { %s6239_s17 = smov %s4600_s28  ;;  %s6240_s18 = smov %s4506_s19 }
 0x37e   : > { %s6241_s19 = smov %s6243_s23  ;;  %16 = sbr.rel (!%p14_p3) target bundleno = 4 (0x4), region = 76 }
 0x383   :  { %3872 = vsyncpa [#allocation4], 1 }
 0x384   :  { %3874 = vsyncpa [#allocation4 + $0x1], 1 }

</bundles_post_ra>
